<compile_context>
chip_gen: v6e
topology: v6e:2x2x1
jax: 0.10.0
libtpu: 0.0.40
codegen_flags: <defaults>
</compile_context>

<pallas_src>
import functools

import jax
import jax.numpy as jnp
from jax import lax
from jax.experimental import pallas as pl
from jax.experimental.pallas import tpu as pltpu

_NEG_MASK = -9e15


# ----------------------------- tiling / compiler helpers -----------------------------
def _round_up(x, m):
    return (x + m - 1) // m * m


@functools.lru_cache(maxsize=None)
def _vmem_limit_bytes():
    # Generation-aware VMEM budget: ~70% of physical per-core VMEM
    # (v5e/v6e: 128 MiB -> ~90 MiB; v7x: 64 MiB -> ~45 MiB).
    try:
        cap = int(getattr(pltpu.get_tpu_info(), "vmem_capacity_bytes", 0))
    except Exception:
        cap = 0
    if cap <= 0:
        cap = 64 * 1024 * 1024
    return int(cap * 7 // 10)


def _cparams(semantics):
    return pltpu.CompilerParams(dimension_semantics=semantics,
                                vmem_limit_bytes=_vmem_limit_bytes())


def _tiling(n):
    """Return (n_pad, tm_rows, tm_flash, tk_flash)."""
    if n <= 1024:
        t = _round_up(max(n, 32), 32)     # 32-aligned so int8/bf16 tiles are safe
        return t, t, t, t
    n_pad = _round_up(n, 512)
    return n_pad, 512, 256, 512           # 512-row streaming tiles; 256x512 flash blocks


def _row_spec(tm, d):
    return pl.BlockSpec((tm, d), lambda i: (i, 0))


def _const_spec(shape):
    # whole array resident in VMEM for every grid step (weights / biases / scalars)
    return pl.BlockSpec(shape, lambda i: (0, 0))


def _bf16(w):
    return w.astype(jnp.bfloat16)


# ----------------------------- fused AE encoder + gat_1 "pre" -----------------------------
def _enc_gat1_kernel(x_ref, w1_ref, b1_ref, w2_ref, b2_ref, w3_ref, b3_ref,
                     wg_ref, ag_ref, h1_ref, h2_ref, z_ref, wh_ref, f_ref):
    xb = x_ref[...].astype(jnp.bfloat16)
    h1 = jnp.maximum(
        jnp.dot(xb, w1_ref[...], preferred_element_type=jnp.float32) + b1_ref[...], 0.0)
    h1_ref[...] = h1
    h2 = jnp.maximum(
        jnp.dot(h1.astype(jnp.bfloat16), w2_ref[...],
                preferred_element_type=jnp.float32) + b2_ref[...], 0.0)
    h2_ref[...] = h2
    z_ref[...] = jnp.dot(h2.astype(jnp.bfloat16), w3_ref[...],
                         preferred_element_type=jnp.float32) + b3_ref[...]
    # gat_1 pre: Wh and the 2 attention projections (single (dout,2) matmul)
    wh = jnp.dot(xb, wg_ref[...], preferred_element_type=jnp.float32)
    wh_ref[...] = wh.astype(jnp.bfloat16)
    f_ref[...] = jnp.dot(wh, ag_ref[...], preferred_element_type=jnp.float32)


def ae_encode_gat1(x, p, tm):
    n, d_in = x.shape
    w1, b1 = p["enc_1"]; w2, b2 = p["enc_2"]; w3, b3 = p["z_layer"]
    wg, ag = p["gat_1"]
    dg = wg.shape[1]
    a12 = jnp.concatenate([ag[:dg, :], ag[dg:, :]], axis=1)            # (dg, 2)
    w1b, w2b, w3b, wgb = _bf16(w1), _bf16(w2), _bf16(w3), _bf16(wg)
    h1, h2, z, wh, f = pl.pallas_call(
        _enc_gat1_kernel,
        grid=(n // tm,),
        in_specs=[_row_spec(tm, d_in),
                  _const_spec(w1b.shape), _const_spec(b1.shape),
                  _const_spec(w2b.shape), _const_spec(b2.shape),
                  _const_spec(w3b.shape), _const_spec(b3.shape),
                  _const_spec(wgb.shape), _const_spec(a12.shape)],
        out_specs=(_row_spec(tm, w1.shape[1]),
                   _row_spec(tm, w2.shape[1]),
                   _row_spec(tm, w3.shape[1]),
                   _row_spec(tm, dg),
                   _row_spec(tm, 2)),
        out_shape=(jax.ShapeDtypeStruct((n, w1.shape[1]), jnp.float32),
                   jax.ShapeDtypeStruct((n, w2.shape[1]), jnp.float32),
                   jax.ShapeDtypeStruct((n, w3.shape[1]), jnp.float32),
                   jax.ShapeDtypeStruct((n, dg), jnp.bfloat16),
                   jax.ShapeDtypeStruct((n, 2), jnp.float32)),
        compiler_params=_cparams(("parallel",)),
    )(x, w1b, b1, w2b, b2, w3b, b3, wgb, a12)
    f1 = f[:, 0:1]                      # (n, 1)
    f2t = f[:, 1:2].reshape(1, n)       # (1, n)  (tiny XLA relayout outside kernels)
    return h1, h2, z, wh, f1, f2t


# ----------------------------- fused AE decoder -----------------------------
def _ae_dec_kernel(z_ref, w1_ref, b1_ref, w2_ref, b2_ref, w3_ref, b3_ref, o_ref):
    h = jnp.maximum(
        jnp.dot(z_ref[...].astype(jnp.bfloat16), w1_ref[...],
                preferred_element_type=jnp.float32) + b1_ref[...], 0.0)
    h = jnp.maximum(
        jnp.dot(h.astype(jnp.bfloat16), w2_ref[...],
                preferred_element_type=jnp.float32) + b2_ref[...], 0.0)
    o_ref[...] = jnp.dot(h.astype(jnp.bfloat16), w3_ref[...],
                         preferred_element_type=jnp.float32) + b3_ref[...]


def ae_decode(z, p, tm):
    n, d_z = z.shape
    w1, b1 = p["dec_1"]; w2, b2 = p["dec_2"]; w3, b3 = p["x_bar"]
    w1b, w2b, w3b = _bf16(w1), _bf16(w2), _bf16(w3)
    return pl.pallas_call(
        _ae_dec_kernel,
        grid=(n // tm,),
        in_specs=[_row_spec(tm, d_z),
                  _const_spec(w1b.shape), _const_spec(b1.shape),
                  _const_spec(w2b.shape), _const_spec(b2.shape),
                  _const_spec(w3b.shape), _const_spec(b3.shape)],
        out_specs=_row_spec(tm, w3.shape[1]),
        out_shape=jax.ShapeDtypeStruct((n, w3.shape[1]), jnp.float32),
        compiler_params=_cparams(("parallel",)),
    )(z, w1b, b1, w2b, b2, w3b, b3)


# ----------------------------- GAT "pre" with folded fusion blend (layers 2, 3) -----------------------------
def _gat_pre_blend_kernel(x_ref, k_ref, wm_ref, w_ref, a_ref, wh_ref, f_ref):
    wm = wm_ref[...]                                        # (1,1) scalar blend weight
    h = wm * x_ref[...] + (1.0 - wm) * k_ref[...]
    wh = jnp.dot(h.astype(jnp.bfloat16), w_ref[...], preferred_element_type=jnp.float32)
    wh_ref[...] = wh.astype(jnp.bfloat16)
    f_ref[...] = jnp.dot(wh, a_ref[...], preferred_element_type=jnp.float32)


def gat_pre_blend(x, k, w_mean, w, a, tm):
    n, din = x.shape
    dout = w.shape[1]
    a12 = jnp.concatenate([a[:dout, :], a[dout:, :]], axis=1)
    wb = _bf16(w)
    wh, f = pl.pallas_call(
        _gat_pre_blend_kernel,
        grid=(n // tm,),
        in_specs=[_row_spec(tm, din), _row_spec(tm, din), _const_spec((1, 1)),
                  _const_spec(wb.shape), _const_spec(a12.shape)],
        out_specs=(_row_spec(tm, dout), _row_spec(tm, 2)),
        out_shape=(jax.ShapeDtypeStruct((n, dout), jnp.bfloat16),
                   jax.ShapeDtypeStruct((n, 2), jnp.float32)),
        compiler_params=_cparams(("parallel",)),
    )(x, k, w_mean, wb, a12)
    return wh, f[:, 0:1], f[:, 1:2].reshape(1, n)


# ----------------------------- block-sparse flash GAT attention -----------------------------
def _block_sparsity(adj_i8, tm, tk):
    """Compacted per-query-tile list of non-empty neighbour blocks (+ counts)."""
    n = adj_i8.shape[0]
    nbi, nbj = n // tm, n // tk
    blk = adj_i8.reshape(nbi, tm, nbj, tk).max(axis=(1, 3)) > 0       # (nbi, nbj) bool
    nblk = jnp.sum(blk, axis=1).astype(jnp.int32)                     # (nbi,)
    # stable argsort: non-empty block indices first, in ascending order
    order = jnp.argsort(1 - blk.astype(jnp.int32), axis=1, stable=True).astype(jnp.int32)
    s = jnp.arange(nbj, dtype=jnp.int32)[None, :]
    clamp = jnp.minimum(s, jnp.maximum(nblk - 1, 0)[:, None])
    nbr = jnp.take_along_axis(order, clamp, axis=1)                   # tail repeats last index
    return nbr, nblk


def _gat_flash_kernel(nbr_ref, nblk_ref, f1_ref, f2t_ref, wh_ref, adj_ref, o_ref,
                      m_sc, l_sc, acc_sc, *, alpha):
    i = pl.program_id(0)
    j = pl.program_id(1)

    @pl.when(j == 0)
    def _():
        m_sc[...] = jnp.full_like(m_sc, _NEG_MASK)
        l_sc[...] = jnp.zeros_like(l_sc)
        acc_sc[...] = jnp.zeros_like(acc_sc)

    @pl.when(j < nblk_ref[i])                       # skip empty neighbour blocks
    def _():
        # int8 adjacency block; unpack once (cheap VPU cast) and compare.
        adj_pos = adj_ref[...].astype(jnp.float32) > 0.0
        e = f1_ref[...] + f2t_ref[...]              # (tm, tk) broadcast add
        e = jnp.where(e > 0, e, alpha * e)          # LeakyReLU(alpha)
        e_m = jnp.where(adj_pos, e, _NEG_MASK)      # mask only for the running max
        m_prev = m_sc[...]
        m_new = jnp.maximum(m_prev, jnp.max(e_m, axis=1, keepdims=True))
        corr = jnp.exp(m_prev - m_new)
        p = jnp.where(adj_pos, jnp.exp(e - m_new), 0.0)
        l_sc[...] = corr * l_sc[...] + jnp.sum(p, axis=1, keepdims=True)
        acc_sc[...] = corr * acc_sc[...] + jnp.dot(
            p.astype(jnp.bfloat16), wh_ref[...], preferred_element_type=jnp.float32)
        m_sc[...] = m_new

    @pl.when(j == pl.num_programs(1) - 1)
    def _():
        # Rows without any edge (only padded rows when adj has self loops)
        # get l == 0; guard so they produce 0 instead of NaN.
        l = l_sc[...]
        inv = pl.reciprocal(jnp.where(l > 0.0, l, 1.0), approx=True)
        h = acc_sc[...] * inv
        # ELU (GraphAttentionLayer concat=True branch)
        o_ref[...] = jnp.where(h > 0, h, jnp.exp(jnp.minimum(h, 0.0)) - 1.0)


def gat_attend(f1, f2t, wh, adj_i8, nbr, nblk, tm, tk, alpha):
    n, dout = wh.shape
    return pl.pallas_call(
        functools.partial(_gat_flash_kernel, alpha=alpha),
        grid_spec=pltpu.PrefetchScalarGridSpec(
            num_scalar_prefetch=2,
            grid=(n // tm, n // tk),
            in_specs=[pl.BlockSpec((tm, 1), lambda i, j, nb, nc: (i, 0)),
                      pl.BlockSpec((1, tk), lambda i, j, nb, nc: (0, nb[i, j])),
                      pl.BlockSpec((tk, dout), lambda i, j, nb, nc: (nb[i, j], 0)),
                      pl.BlockSpec((tm, tk), lambda i, j, nb, nc: (i, nb[i, j]))],
            out_specs=pl.BlockSpec((tm, dout), lambda i, j, nb, nc: (i, 0)),
            scratch_shapes=[pltpu.VMEM((tm, 1), jnp.float32),
                            pltpu.VMEM((tm, 1), jnp.float32),
                            pltpu.VMEM((tm, dout), jnp.float32)]),
        out_shape=jax.ShapeDtypeStruct((n, dout), jnp.float32),
        compiler_params=_cparams(("parallel", "arbitrary")),
    )(nbr, nblk, f1, f2t, wh, adj_i8)


# ----------------------------- FusionLayer: scalar attention weight (reduce pass) -----------------------------
def _fusion_reduce_kernel(x_ref, k_ref, w1x_ref, w1k_ref, b1_ref,
                          w2_ref, b2_ref, w3a_ref, w3b_ref, b3a_ref, b3b_ref,
                          o_ref, *, tm, n_valid, inv_t):
    i = pl.program_id(0)

    @pl.when(i == 0)
    def _():
        o_ref[...] = jnp.zeros_like(o_ref)

    xb = x_ref[...].astype(jnp.bfloat16)
    kb = k_ref[...].astype(jnp.bfloat16)
    # fc1 on concat([x, k], 1) expressed as split matmuls
    h = jnp.maximum(
        jnp.dot(xb, w1x_ref[...], preferred_element_type=jnp.float32)
        + jnp.dot(kb, w1k_ref[...], preferred_element_type=jnp.float32)
        + b1_ref[...], 0.0)
    h = jnp.maximum(
        jnp.dot(h.astype(jnp.bfloat16), w2_ref[...],
                preferred_element_type=jnp.float32) + b2_ref[...], 0.0)
    l0 = jnp.dot(h, w3a_ref[...], preferred_element_type=jnp.float32) + b3a_ref[...]
    l1 = jnp.dot(h, w3b_ref[...], preferred_element_type=jnp.float32) + b3b_ref[...]
    s0 = 1.0 / (1.0 + jnp.exp(-l0))
    s1 = 1.0 / (1.0 + jnp.exp(-l1))
    # softmax over the 2 views of [s0/T, s1/T] == sigmoid((s0 - s1)/T)
    w0 = 1.0 / (1.0 + jnp.exp(-(s0 - s1) * inv_t))            # (tm, 1)
    rows = i * tm + lax.broadcasted_iota(jnp.int32, (tm, 1), 0)
    w0 = jnp.where(rows < n_valid, w0, 0.0)                   # drop padded rows
    o_ref[...] += jnp.sum(w0, axis=0, keepdims=True) * (1.0 / n_valid)


def fusion_weight(x, k, fp, tm, n_valid, temp=10.0):
    n_rows, d = x.shape
    w1, b1 = fp["fc1"]; w2, b2 = fp["fc2"]; w3, b3 = fp["fc3"]
    w1x, w1k = _bf16(w1[:d, :]), _bf16(w1[d:, :])
    w2b = _bf16(w2)
    w3a, w3b = w3[:, 0:1], w3[:, 1:2]
    b3a, b3b = b3[:, 0:1], b3[:, 1:2]
    return pl.pallas_call(
        functools.partial(_fusion_reduce_kernel, tm=tm, n_valid=n_valid,
                          inv_t=1.0 / temp),
        grid=(n_rows // tm,),
        in_specs=[_row_spec(tm, d), _row_spec(tm, d),
                  _const_spec(w1x.shape), _const_spec(w1k.shape), _const_spec(b1.shape),
                  _const_spec(w2b.shape), _const_spec(b2.shape),
                  _const_spec(w3a.shape), _const_spec(w3b.shape),
                  _const_spec(b3a.shape), _const_spec(b3b.shape)],
        out_specs=pl.BlockSpec((1, 1), lambda i: (0, 0)),
        out_shape=jax.ShapeDtypeStruct((1, 1), jnp.float32),
        compiler_params=_cparams(("arbitrary",)),
    )(x, k, w1x, w1k, b1, w2b, b2, w3a, w3b, b3a, b3b)


# ----------------------------- fused head: fuse3-blend + classifier-softmax + student-t q -----------------------------
def _head_kernel(h_ref, z_ref, wm_ref, w_ref, b_ref, ct_ref, c2_ref,
                 pred_ref, q_ref, *, v):
    wm = wm_ref[...]
    z = z_ref[...]
    hb = wm * h_ref[...] + (1.0 - wm) * z
    y = jnp.dot(hb, w_ref[...], preferred_element_type=jnp.float32) + b_ref[...]
    y = y - jnp.max(y, axis=1, keepdims=True)
    e = jnp.exp(y)
    pred_ref[...] = e / jnp.sum(e, axis=1, keepdims=True)
    # Student-t q from the same z tile: dist = ||z||^2 + ||c||^2 - 2 z c^T
    zz = jnp.sum(z * z, axis=1, keepdims=True)
    cross = jnp.dot(z, ct_ref[...], preferred_element_type=jnp.float32)
    dist = jnp.maximum(zz + c2_ref[...] - 2.0 * cross, 0.0)
    q = 1.0 / (1.0 + dist / v)
    if v != 1.0:                       # exponent (v+1)/2 is identity when v == 1
        q = q ** ((v + 1.0) / 2.0)
    q_ref[...] = q / jnp.sum(q, axis=1, keepdims=True)


def head(h, z, w_mean, lin, clusters, tm, v=1.0):
    n_rows, _ = h.shape
    w, b = lin
    k = clusters.shape[0]
    ct = clusters.T                                                  # (n_z, K)
    c2 = jnp.sum(clusters * clusters, axis=1).reshape(1, k)          # (1, K)
    return pl.pallas_call(
        functools.partial(_head_kernel, v=float(v)),
        grid=(n_rows // tm,),
        in_specs=[_row_spec(tm, h.shape[1]), _row_spec(tm, z.shape[1]),
                  _const_spec((1, 1)), _const_spec(w.shape), _const_spec(b.shape),
                  _const_spec(ct.shape), _const_spec(c2.shape)],
        out_specs=(_row_spec(tm, k), _row_spec(tm, k)),
        out_shape=(jax.ShapeDtypeStruct((n_rows, k), jnp.float32),
                   jax.ShapeDtypeStruct((n_rows, k), jnp.float32)),
        compiler_params=_cparams(("parallel",)),
    )(h, z, w_mean, w, b, ct, c2)


# ----------------------------- parameter init (deterministic, synthetic) -----------------------------
def _init_linear(key, din, dout, scale=0.1):
    kw, kb = jax.random.split(key)
    w = scale * jax.random.normal(kw, (din, dout), jnp.float32)   # stored (in, out)
    b = scale * jax.random.normal(kb, (1, dout), jnp.float32)
    return w, b


def _init_gat(key, din, dout, scale=0.1):
    kw, ka = jax.random.split(key)
    w = scale * jax.random.normal(kw, (din, dout), jnp.float32)
    a = scale * jax.random.normal(ka, (2 * dout, 1), jnp.float32)
    return w, a


def _init_fusion(key, last_dim, n_num=2):
    k1, k2, k3 = jax.random.split(key, 3)
    return {
        "fc1": _init_linear(k1, n_num * last_dim, 500),
        "fc2": _init_linear(k2, 500, 100),
        "fc3": _init_linear(k3, 100, n_num),
    }


def init_afc_params(key, n_enc_1, n_enc_2, n_dec_1, n_dec_2, n_input, n_z, n_clusters):
    ks = jax.random.split(key, 14)
    return {
        "enc_1": _init_linear(ks[0], n_input, n_enc_1),
        "enc_2": _init_linear(ks[1], n_enc_1, n_enc_2),
        "z_layer": _init_linear(ks[2], n_enc_2, n_z),
        "dec_1": _init_linear(ks[3], n_z, n_dec_1),
        "dec_2": _init_linear(ks[4], n_dec_1, n_dec_2),
        "x_bar": _init_linear(ks[5], n_dec_2, n_input),
        "gat_1": _init_gat(ks[6], n_input, n_enc_1),
        "gat_2": _init_gat(ks[7], n_enc_1, n_enc_2),
        "gat_3": _init_gat(ks[8], n_enc_2, n_z),
        "fuse1": _init_fusion(ks[9], n_enc_1),
        "fuse2": _init_fusion(ks[10], n_enc_2),
        "fuse3": _init_fusion(ks[11], n_z),
        "cluster_layer": 0.1 * jax.random.normal(ks[12], (n_clusters, n_z), jnp.float32),
        "linear": _init_linear(ks[13], n_z, n_clusters),
    }


# ----------------------------- full AFC forward -----------------------------
def afc_forward(p, x, adj, v=1.0, alpha=0.2, temp=10.0):
    n = x.shape[0]
    n_pad, tm, tmf, tkf = _tiling(n)
    if n_pad != n:
        x = jnp.pad(x, ((0, n_pad - n), (0, 0)))
        adj = jnp.pad(adj, ((0, n_pad - n), (0, n_pad - n)))

    adj_i8 = (adj > 0).astype(jnp.int8)              # 4x smaller O(N^2) HBM stream
    nbr, nblk = _block_sparsity(adj_i8, tmf, tkf)    # shared by all 3 GAT layers

    # --- AE encoder fused with gat_1 pre (x read from HBM once) ---
    enc_h1, enc_h2, z, wh, f1, f2t = ae_encode_gat1(x, p, tm)
    x_bar = ae_decode(z, p, tm)

    # --- GAT + attention-fusion branch (fusion blend folded into next consumer) ---
    h = gat_attend(f1, f2t, wh, adj_i8, nbr, nblk, tmf, tkf, alpha)
    wm = fusion_weight(h, enc_h1, p["fuse1"], tm, n, temp)

    wh, f1, f2t = gat_pre_blend(h, enc_h1, wm, *p["gat_2"], tm)
    h = gat_attend(f1, f2t, wh, adj_i8, nbr, nblk, tmf, tkf, alpha)
    wm = fusion_weight(h, enc_h2, p["fuse2"], tm, n, temp)

    wh, f1, f2t = gat_pre_blend(h, enc_h2, wm, *p["gat_3"], tm)
    h = gat_attend(f1, f2t, wh, adj_i8, nbr, nblk, tmf, tkf, alpha)
    wm = fusion_weight(h, z, p["fuse3"], tm, n, temp)

    # fuse3 blend + classifier softmax + student-t q, one row-tiled kernel
    predict, q = head(h, z, wm, p["linear"], p["cluster_layer"], tm, v)

    if n_pad != n:
        x_bar, q, predict, z = x_bar[:n], q[:n], predict[:n], z[:n]
    return x_bar, q, predict, z


if __name__ == "__main__":
    # small, forward-consistent shapes
    N = 8            # number of cells / graph nodes
    n_input = 32
    n_enc_1 = n_enc_2 = n_dec_1 = n_dec_2 = 16
    n_z = 8
    n_clusters = 4

    key = jax.random.PRNGKey(0)
    kp, kx, ka = jax.random.split(key, 3)

    params = init_afc_params(kp, n_enc_1, n_enc_2, n_dec_1, n_dec_2,
                             n_input, n_z, n_clusters)

    x = jax.random.normal(kx, (N, n_input), jnp.float32)

    # symmetric binary adjacency with self loops (dense, as adj.to_dense() implies)
    rnd = jax.random.uniform(ka, (N, N)) > 0.5
    adj = ((rnd | rnd.T) | jnp.eye(N, dtype=bool)).astype(jnp.float32)

    forward = jax.jit(afc_forward)
    x_bar, q, predict, z = forward(params, x, adj)
    jax.block_until_ready((x_bar, q, predict, z))

    assert x_bar.shape == (N, n_input)
    assert q.shape == (N, n_clusters)
    assert predict.shape == (N, n_clusters)
    assert z.shape == (N, n_z)
    assert bool(jnp.all(jnp.isfinite(x_bar)))
    assert bool(jnp.all(jnp.isfinite(q)))
    assert bool(jnp.all(jnp.isfinite(predict)))
    assert bool(jnp.all(jnp.isfinite(z)))

    print("KERNEL_OK")
</pallas_src>

<mosaic_0001>
module attributes {stable_mosaic.version = 11 : i64} {
  func.func @_enc_gat1_kernel(%arg0: i32, %arg1: memref<32x32xf32, #tpu.memory_space<vmem>>, %arg2: memref<32x16xbf16, #tpu.memory_space<vmem>>, %arg3: memref<1x16xf32, #tpu.memory_space<vmem>>, %arg4: memref<16x16xbf16, #tpu.memory_space<vmem>>, %arg5: memref<1x16xf32, #tpu.memory_space<vmem>>, %arg6: memref<16x8xbf16, #tpu.memory_space<vmem>>, %arg7: memref<1x8xf32, #tpu.memory_space<vmem>>, %arg8: memref<32x16xbf16, #tpu.memory_space<vmem>>, %arg9: memref<16x2xf32, #tpu.memory_space<vmem>>, %arg10: memref<32x16xf32, #tpu.memory_space<vmem>>, %arg11: memref<32x16xf32, #tpu.memory_space<vmem>>, %arg12: memref<32x8xf32, #tpu.memory_space<vmem>>, %arg13: memref<32x16xbf16, #tpu.memory_space<vmem>>, %arg14: memref<32x2xf32, #tpu.memory_space<vmem>>) attributes {dimension_semantics = [#tpu.dimension_semantics<parallel>], iteration_bounds = array<i64: 1>, scalar_prefetch = 0 : i64, scratch_operands = 0 : i64, tpu.core_type = #tpu.core_type<tc>, window_params = [{transform_indices = @transform_0, window_bounds = array<i64: 32, 32>}, {pipeline_mode = #tpu.pipeline_mode<synchronous>, transform_indices = @transform_1, window_bounds = array<i64: 32, 16>}, {pipeline_mode = #tpu.pipeline_mode<synchronous>, transform_indices = @transform_2, window_bounds = array<i64: 1, 16>}, {pipeline_mode = #tpu.pipeline_mode<synchronous>, transform_indices = @transform_3, window_bounds = array<i64: 16, 16>}, {pipeline_mode = #tpu.pipeline_mode<synchronous>, transform_indices = @transform_4, window_bounds = array<i64: 1, 16>}, {pipeline_mode = #tpu.pipeline_mode<synchronous>, transform_indices = @transform_5, window_bounds = array<i64: 16, 8>}, {pipeline_mode = #tpu.pipeline_mode<synchronous>, transform_indices = @transform_6, window_bounds = array<i64: 1, 8>}, {pipeline_mode = #tpu.pipeline_mode<synchronous>, transform_indices = @transform_7, window_bounds = array<i64: 32, 16>}, {pipeline_mode = #tpu.pipeline_mode<synchronous>, transform_indices = @transform_8, window_bounds = array<i64: 16, 2>}, {transform_indices = @transform_9, window_bounds = array<i64: 32, 16>}, {transform_indices = @transform_10, window_bounds = array<i64: 32, 16>}, {transform_indices = @transform_11, window_bounds = array<i64: 32, 8>}, {transform_indices = @transform_12, window_bounds = array<i64: 32, 16>}, {transform_indices = @transform_13, window_bounds = array<i64: 32, 2>}]} {
    %c0 = arith.constant 0 : index
    %c0_0 = arith.constant 0 : index
    %0 = vector.load %arg1[%c0, %c0_0] : memref<32x32xf32, #tpu.memory_space<vmem>>, vector<32x32xf32>
    %1 = arith.truncf %0 : vector<32x32xf32> to vector<32x32xbf16>
    %c0_1 = arith.constant 0 : index
    %c0_2 = arith.constant 0 : index
    %2 = vector.load %arg2[%c0_1, %c0_2] : memref<32x16xbf16, #tpu.memory_space<vmem>>, vector<32x16xbf16>
    %cst = arith.constant dense<0.000000e+00> : vector<32x16xf32>
    %3 = tpu.matmul %1, %2, %cst {dimension_numbers = #tpu.dot_dimension_numbers<[1], [0], [0], [1], [0, 0, 1, 1], [], []>} : vector<32x32xbf16>, vector<32x16xbf16>, vector<32x16xf32> -> vector<32x16xf32>
    %c0_3 = arith.constant 0 : index
    %c0_4 = arith.constant 0 : index
    %4 = vector.load %arg3[%c0_3, %c0_4] : memref<1x16xf32, #tpu.memory_space<vmem>>, vector<1x16xf32>
    %5 = vector.broadcast %4 : vector<1x16xf32> to vector<32x16xf32>
    %6 = arith.addf %3, %5 : vector<32x16xf32>
    %cst_5 = arith.constant 0.000000e+00 : f32
    %7 = vector.broadcast %cst_5 : f32 to vector<32x16xf32>
    %8 = arith.maximumf %6, %7 : vector<32x16xf32>
    %c0_6 = arith.constant 0 : index
    %c0_7 = arith.constant 0 : index
    %9 = vector.load %arg10[%c0_6, %c0_7] : memref<32x16xf32, #tpu.memory_space<vmem>>, vector<32x16xf32>
    tpu.vector_store %arg10[%c0_6, %c0_7], %8 {strides = array<i32>} : memref<32x16xf32, #tpu.memory_space<vmem>>, vector<32x16xf32>,
    %10 = arith.truncf %8 : vector<32x16xf32> to vector<32x16xbf16>
    %c0_8 = arith.constant 0 : index
    %c0_9 = arith.constant 0 : index
    %11 = vector.load %arg4[%c0_8, %c0_9] : memref<16x16xbf16, #tpu.memory_space<vmem>>, vector<16x16xbf16>
    %cst_10 = arith.constant dense<0.000000e+00> : vector<32x16xf32>
    %12 = tpu.matmul %10, %11, %cst_10 {dimension_numbers = #tpu.dot_dimension_numbers<[1], [0], [0], [1], [0, 0, 1, 1], [], []>} : vector<32x16xbf16>, vector<16x16xbf16>, vector<32x16xf32> -> vector<32x16xf32>
    %c0_11 = arith.constant 0 : index
    %c0_12 = arith.constant 0 : index
    %13 = vector.load %arg5[%c0_11, %c0_12] : memref<1x16xf32, #tpu.memory_space<vmem>>, vector<1x16xf32>
    %14 = vector.broadcast %13 : vector<1x16xf32> to vector<32x16xf32>
    %15 = arith.addf %12, %14 : vector<32x16xf32>
    %cst_13 = arith.constant 0.000000e+00 : f32
    %16 = vector.broadcast %cst_13 : f32 to vector<32x16xf32>
    %17 = arith.maximumf %15, %16 : vector<32x16xf32>
    %c0_14 = arith.constant 0 : index
    %c0_15 = arith.constant 0 : index
    %18 = vector.load %arg11[%c0_14, %c0_15] : memref<32x16xf32, #tpu.memory_space<vmem>>, vector<32x16xf32>
    tpu.vector_store %arg11[%c0_14, %c0_15], %17 {strides = array<i32>} : memref<32x16xf32, #tpu.memory_space<vmem>>, vector<32x16xf32>,
    %19 = arith.truncf %17 : vector<32x16xf32> to vector<32x16xbf16>
    %c0_16 = arith.constant 0 : index
    %c0_17 = arith.constant 0 : index
    %20 = vector.load %arg6[%c0_16, %c0_17] : memref<16x8xbf16, #tpu.memory_space<vmem>>, vector<16x8xbf16>
    %cst_18 = arith.constant dense<0.000000e+00> : vector<32x8xf32>
    %21 = tpu.matmul %19, %20, %cst_18 {dimension_numbers = #tpu.dot_dimension_numbers<[1], [0], [0], [1], [0, 0, 1, 1], [], []>} : vector<32x16xbf16>, vector<16x8xbf16>, vector<32x8xf32> -> vector<32x8xf32>
    %c0_19 = arith.constant 0 : index
    %c0_20 = arith.constant 0 : index
    %22 = vector.load %arg7[%c0_19, %c0_20] : memref<1x8xf32, #tpu.memory_space<vmem>>, vector<1x8xf32>
    %23 = vector.broadcast %22 : vector<1x8xf32> to vector<32x8xf32>
    %24 = arith.addf %21, %23 : vector<32x8xf32>
    %c0_21 = arith.constant 0 : index
    %c0_22 = arith.constant 0 : index
    %25 = vector.load %arg12[%c0_21, %c0_22] : memref<32x8xf32, #tpu.memory_space<vmem>>, vector<32x8xf32>
    tpu.vector_store %arg12[%c0_21, %c0_22], %24 {strides = array<i32>} : memref<32x8xf32, #tpu.memory_space<vmem>>, vector<32x8xf32>,
    %c0_23 = arith.constant 0 : index
    %c0_24 = arith.constant 0 : index
    %26 = vector.load %arg8[%c0_23, %c0_24] : memref<32x16xbf16, #tpu.memory_space<vmem>>, vector<32x16xbf16>
    %cst_25 = arith.constant dense<0.000000e+00> : vector<32x16xf32>
    %27 = tpu.matmul %1, %26, %cst_25 {dimension_numbers = #tpu.dot_dimension_numbers<[1], [0], [0], [1], [0, 0, 1, 1], [], []>} : vector<32x32xbf16>, vector<32x16xbf16>, vector<32x16xf32> -> vector<32x16xf32>
    %28 = arith.truncf %27 : vector<32x16xf32> to vector<32x16xbf16>
    %c0_26 = arith.constant 0 : index
    %c0_27 = arith.constant 0 : index
    %29 = vector.load %arg13[%c0_26, %c0_27] : memref<32x16xbf16, #tpu.memory_space<vmem>>, vector<32x16xbf16>
    tpu.vector_store %arg13[%c0_26, %c0_27], %28 {strides = array<i32>} : memref<32x16xbf16, #tpu.memory_space<vmem>>, vector<32x16xbf16>,
    %c0_28 = arith.constant 0 : index
    %c0_29 = arith.constant 0 : index
    %30 = vector.load %arg9[%c0_28, %c0_29] : memref<16x2xf32, #tpu.memory_space<vmem>>, vector<16x2xf32>
    %cst_30 = arith.constant dense<0.000000e+00> : vector<32x2xf32>
    %31 = tpu.matmul %27, %30, %cst_30 {dimension_numbers = #tpu.dot_dimension_numbers<[1], [0], [0], [1], [0, 0, 1, 1], [], []>} : vector<32x16xf32>, vector<16x2xf32>, vector<32x2xf32> -> vector<32x2xf32>
    %c0_31 = arith.constant 0 : index
    %c0_32 = arith.constant 0 : index
    %32 = vector.load %arg14[%c0_31, %c0_32] : memref<32x2xf32, #tpu.memory_space<vmem>>, vector<32x2xf32>
    tpu.vector_store %arg14[%c0_31, %c0_32], %31 {strides = array<i32>} : memref<32x2xf32, #tpu.memory_space<vmem>>, vector<32x2xf32>,
    return
  }
  func.func @transform_0(%arg0: i32) -> (i32, i32) {
    %c0_i32 = arith.constant 0 : i32
    %c0_i32_0 = arith.constant 0 : i32
    return %arg0, %c0_i32 : i32, i32
  }
  func.func @transform_1(%arg0: i32) -> (i32, i32) {
    %c0_i32 = arith.constant 0 : i32
    %c0_i32_0 = arith.constant 0 : i32
    %c0_i32_1 = arith.constant 0 : i32
    return %c0_i32, %c0_i32_0 : i32, i32
  }
  func.func @transform_2(%arg0: i32) -> (i32, i32) {
    %c0_i32 = arith.constant 0 : i32
    %c0_i32_0 = arith.constant 0 : i32
    %c0_i32_1 = arith.constant 0 : i32
    return %c0_i32, %c0_i32_0 : i32, i32
  }
  func.func @transform_3(%arg0: i32) -> (i32, i32) {
    %c0_i32 = arith.constant 0 : i32
    %c0_i32_0 = arith.constant 0 : i32
    %c0_i32_1 = arith.constant 0 : i32
    return %c0_i32, %c0_i32_0 : i32, i32
  }
  func.func @transform_4(%arg0: i32) -> (i32, i32) {
    %c0_i32 = arith.constant 0 : i32
    %c0_i32_0 = arith.constant 0 : i32
    %c0_i32_1 = arith.constant 0 : i32
    return %c0_i32, %c0_i32_0 : i32, i32
  }
  func.func @transform_5(%arg0: i32) -> (i32, i32) {
    %c0_i32 = arith.constant 0 : i32
    %c0_i32_0 = arith.constant 0 : i32
    %c0_i32_1 = arith.constant 0 : i32
    return %c0_i32, %c0_i32_0 : i32, i32
  }
  func.func @transform_6(%arg0: i32) -> (i32, i32) {
    %c0_i32 = arith.constant 0 : i32
    %c0_i32_0 = arith.constant 0 : i32
    %c0_i32_1 = arith.constant 0 : i32
    return %c0_i32, %c0_i32_0 : i32, i32
  }
  func.func @transform_7(%arg0: i32) -> (i32, i32) {
    %c0_i32 = arith.constant 0 : i32
    %c0_i32_0 = arith.constant 0 : i32
    %c0_i32_1 = arith.constant 0 : i32
    return %c0_i32, %c0_i32_0 : i32, i32
  }
  func.func @transform_8(%arg0: i32) -> (i32, i32) {
    %c0_i32 = arith.constant 0 : i32
    %c0_i32_0 = arith.constant 0 : i32
    %c0_i32_1 = arith.constant 0 : i32
    return %c0_i32, %c0_i32_0 : i32, i32
  }
  func.func @transform_9(%arg0: i32) -> (i32, i32) {
    %c0_i32 = arith.constant 0 : i32
    %c0_i32_0 = arith.constant 0 : i32
    return %arg0, %c0_i32 : i32, i32
  }
  func.func @transform_10(%arg0: i32) -> (i32, i32) {
    %c0_i32 = arith.constant 0 : i32
    %c0_i32_0 = arith.constant 0 : i32
    return %arg0, %c0_i32 : i32, i32
  }
  func.func @transform_11(%arg0: i32) -> (i32, i32) {
    %c0_i32 = arith.constant 0 : i32
    %c0_i32_0 = arith.constant 0 : i32
    return %arg0, %c0_i32 : i32, i32
  }
  func.func @transform_12(%arg0: i32) -> (i32, i32) {
    %c0_i32 = arith.constant 0 : i32
    %c0_i32_0 = arith.constant 0 : i32
    return %arg0, %c0_i32 : i32, i32
  }
  func.func @transform_13(%arg0: i32) -> (i32, i32) {
    %c0_i32 = arith.constant 0 : i32
    %c0_i32_0 = arith.constant 0 : i32
    return %arg0, %c0_i32 : i32, i32
  }
}

module attributes {stable_mosaic.version = 11 : i64} {
  func.func @_gat_flash_kernel(%arg0: i32, %arg1: i32, %arg2: memref<1x1xi32, #tpu.memory_space<smem>>, %arg3: memref<1xi32, #tpu.memory_space<smem>>, %arg4: memref<32x1xf32, #tpu.memory_space<vmem>>, %arg5: memref<1x32xf32, #tpu.memory_space<vmem>>, %arg6: memref<32x16xbf16, #tpu.memory_space<vmem>>, %arg7: memref<32x32xi8, #tpu.memory_space<vmem>>, %arg8: memref<32x16xf32, #tpu.memory_space<vmem>>, %arg9: memref<32x1xf32, #tpu.memory_space<vmem>>, %arg10: memref<32x1xf32, #tpu.memory_space<vmem>>, %arg11: memref<32x16xf32, #tpu.memory_space<vmem>>) attributes {dimension_semantics = [#tpu.dimension_semantics<parallel>, #tpu.dimension_semantics<arbitrary>], iteration_bounds = array<i64: 1, 1>, scalar_prefetch = 2 : i64, scratch_operands = 3 : i64, tpu.core_type = #tpu.core_type<tc>, window_params = [{transform_indices = @transform_0, window_bounds = array<i64: 32, 1>}, {transform_indices = @transform_1, window_bounds = array<i64: 1, 32>}, {transform_indices = @transform_2, window_bounds = array<i64: 32, 16>}, {transform_indices = @transform_3, window_bounds = array<i64: 32, 32>}, {transform_indices = @transform_4, window_bounds = array<i64: 32, 16>}]} {
    %c0_i32 = arith.constant 0 : i32
    %0 = arith.cmpi eq, %arg1, %c0_i32 : i32
    %1 = arith.extui %0 : i1 to i32
    %c0_i32_0 = arith.constant 0 : i32
    %2 = arith.cmpi ne, %1, %c0_i32_0 : i32
    scf.if %2 {
      %cst = arith.constant -9.000000e+15 : f32
      %11 = vector.broadcast %cst : f32 to vector<32x1xf32>
      %c0 = arith.constant 0 : index
      %c0_4 = arith.constant 0 : index
      %12 = vector.load %arg9[%c0, %c0_4] : memref<32x1xf32, #tpu.memory_space<vmem>>, vector<32x1xf32>
      tpu.vector_store %arg9[%c0, %c0_4], %11 {strides = array<i32>} : memref<32x1xf32, #tpu.memory_space<vmem>>, vector<32x1xf32>,
      %cst_5 = arith.constant 0.000000e+00 : f32
      %13 = vector.broadcast %cst_5 : f32 to vector<32x1xf32>
      %c0_6 = arith.constant 0 : index
      %c0_7 = arith.constant 0 : index
      %14 = vector.load %arg10[%c0_6, %c0_7] : memref<32x1xf32, #tpu.memory_space<vmem>>, vector<32x1xf32>
      tpu.vector_store %arg10[%c0_6, %c0_7], %13 {strides = array<i32>} : memref<32x1xf32, #tpu.memory_space<vmem>>, vector<32x1xf32>,
      %cst_8 = arith.constant 0.000000e+00 : f32
      %15 = vector.broadcast %cst_8 : f32 to vector<32x16xf32>
      %c0_9 = arith.constant 0 : index
      %c0_10 = arith.constant 0 : index
      %16 = vector.load %arg11[%c0_9, %c0_10] : memref<32x16xf32, #tpu.memory_space<vmem>>, vector<32x16xf32>
      tpu.vector_store %arg11[%c0_9, %c0_10], %15 {strides = array<i32>} : memref<32x16xf32, #tpu.memory_space<vmem>>, vector<32x16xf32>,
    } else {
    }
    %3 = arith.index_cast %arg0 : i32 to index
    %4 = memref.load %arg3[%3] : memref<1xi32, #tpu.memory_space<smem>>
    %5 = arith.cmpi slt, %arg1, %4 : i32
    %6 = arith.extui %5 : i1 to i32
    %c0_i32_1 = arith.constant 0 : i32
    %7 = arith.cmpi ne, %6, %c0_i32_1 : i32
    scf.if %7 {
      %c0 = arith.constant 0 : index
      %c0_4 = arith.constant 0 : index
      %11 = vector.load %arg7[%c0, %c0_4] : memref<32x32xi8, #tpu.memory_space<vmem>>, vector<32x32xi8>
      %12 = arith.sitofp %11 : vector<32x32xi8> to vector<32x32xf32>
      %cst = arith.constant 0.000000e+00 : f32
      %13 = vector.broadcast %cst : f32 to vector<32x32xf32>
      %14 = arith.cmpf ogt, %12, %13 : vector<32x32xf32>
      %c0_5 = arith.constant 0 : index
      %c0_6 = arith.constant 0 : index
      %15 = vector.load %arg4[%c0_5, %c0_6] : memref<32x1xf32, #tpu.memory_space<vmem>>, vector<32x1xf32>
      %c0_7 = arith.constant 0 : index
      %c0_8 = arith.constant 0 : index
      %16 = vector.load %arg5[%c0_7, %c0_8] : memref<1x32xf32, #tpu.memory_space<vmem>>, vector<1x32xf32>
      %17 = vector.broadcast %15 : vector<32x1xf32> to vector<32x32xf32>
      %18 = vector.broadcast %16 : vector<1x32xf32> to vector<32x32xf32>
      %19 = arith.addf %17, %18 : vector<32x32xf32>
      %cst_9 = arith.constant 0.000000e+00 : f32
      %20 = vector.broadcast %cst_9 : f32 to vector<32x32xf32>
      %21 = arith.cmpf ogt, %19, %20 : vector<32x32xf32>
      %cst_10 = arith.constant 2.000000e-01 : f32
      %22 = vector.broadcast %cst_10 : f32 to vector<32x32xf32>
      %23 = arith.mulf %22, %19 : vector<32x32xf32>
      %24 = arith.select %21, %19, %23 : vector<32x32xi1>, vector<32x32xf32>
      %cst_11 = arith.constant -9.000000e+15 : f32
      %25 = vector.broadcast %cst_11 : f32 to vector<32x32xf32>
      %26 = arith.select %14, %24, %25 : vector<32x32xi1>, vector<32x32xf32>
      %c0_12 = arith.constant 0 : index
      %c0_13 = arith.constant 0 : index
      %27 = vector.load %arg9[%c0_12, %c0_13] : memref<32x1xf32, #tpu.memory_space<vmem>>, vector<32x1xf32>
      %cst_14 = arith.constant dense<0xFF800000> : vector<32xf32>
      %28 = vector.multi_reduction <maximumf>, %26, %cst_14 [1] : vector<32x32xf32> to vector<32xf32>
      %29 = vector.shape_cast %28 : vector<32xf32> to vector<32x1xf32>
      %30 = arith.maximumf %27, %29 : vector<32x1xf32>
      %31 = arith.subf %27, %30 : vector<32x1xf32>
      %32 = math.exp %31 : vector<32x1xf32>
      %33 = vector.broadcast %30 : vector<32x1xf32> to vector<32x32xf32>
      %34 = arith.subf %24, %33 : vector<32x32xf32>
      %35 = math.exp %34 : vector<32x32xf32>
      %cst_15 = arith.constant 0.000000e+00 : f32
      %36 = vector.broadcast %cst_15 : f32 to vector<32x32xf32>
      %37 = arith.select %14, %35, %36 : vector<32x32xi1>, vector<32x32xf32>
      %c0_16 = arith.constant 0 : index
      %c0_17 = arith.constant 0 : index
      %38 = vector.load %arg10[%c0_16, %c0_17] : memref<32x1xf32, #tpu.memory_space<vmem>>, vector<32x1xf32>
      %39 = arith.mulf %32, %38 : vector<32x1xf32>
      %cst_18 = arith.constant dense<0.000000e+00> : vector<32xf32>
      %40 = vector.multi_reduction <add>, %37, %cst_18 [1] : vector<32x32xf32> to vector<32xf32>
      %41 = vector.shape_cast %40 : vector<32xf32> to vector<32x1xf32>
      %42 = arith.addf %39, %41 : vector<32x1xf32>
      %c0_19 = arith.constant 0 : index
      %c0_20 = arith.constant 0 : index
      %43 = vector.load %arg10[%c0_19, %c0_20] : memref<32x1xf32, #tpu.memory_space<vmem>>, vector<32x1xf32>
      tpu.vector_store %arg10[%c0_19, %c0_20], %42 {strides = array<i32>} : memref<32x1xf32, #tpu.memory_space<vmem>>, vector<32x1xf32>,
      %c0_21 = arith.constant 0 : index
      %c0_22 = arith.constant 0 : index
      %44 = vector.load %arg11[%c0_21, %c0_22] : memref<32x16xf32, #tpu.memory_space<vmem>>, vector<32x16xf32>
      %45 = vector.broadcast %32 : vector<32x1xf32> to vector<32x16xf32>
      %46 = arith.mulf %45, %44 : vector<32x16xf32>
      %47 = arith.truncf %37 : vector<32x32xf32> to vector<32x32xbf16>
      %c0_23 = arith.constant 0 : index
      %c0_24 = arith.constant 0 : index
      %48 = vector.load %arg6[%c0_23, %c0_24] : memref<32x16xbf16, #tpu.memory_space<vmem>>, vector<32x16xbf16>
      %cst_25 = arith.constant dense<0.000000e+00> : vector<32x16xf32>
      %49 = tpu.matmul %47, %48, %cst_25 {dimension_numbers = #tpu.dot_dimension_numbers<[1], [0], [0], [1], [0, 0, 1, 1], [], []>} : vector<32x32xbf16>, vector<32x16xbf16>, vector<32x16xf32> -> vector<32x16xf32>
      %50 = arith.addf %46, %49 : vector<32x16xf32>
      %c0_26 = arith.constant 0 : index
      %c0_27 = arith.constant 0 : index
      %51 = vector.load %arg11[%c0_26, %c0_27] : memref<32x16xf32, #tpu.memory_space<vmem>>, vector<32x16xf32>
      tpu.vector_store %arg11[%c0_26, %c0_27], %50 {strides = array<i32>} : memref<32x16xf32, #tpu.memory_space<vmem>>, vector<32x16xf32>,
      %c0_28 = arith.constant 0 : index
      %c0_29 = arith.constant 0 : index
      %52 = vector.load %arg9[%c0_28, %c0_29] : memref<32x1xf32, #tpu.memory_space<vmem>>, vector<32x1xf32>
      tpu.vector_store %arg9[%c0_28, %c0_29], %30 {strides = array<i32>} : memref<32x1xf32, #tpu.memory_space<vmem>>, vector<32x1xf32>,
    } else {
    }
    %c0_i32_2 = arith.constant 0 : i32
    %8 = arith.cmpi eq, %arg1, %c0_i32_2 : i32
    %9 = arith.extui %8 : i1 to i32
    %c0_i32_3 = arith.constant 0 : i32
    %10 = arith.cmpi ne, %9, %c0_i32_3 : i32
    scf.if %10 {
      %c0 = arith.constant 0 : index
      %c0_4 = arith.constant 0 : index
      %11 = vector.load %arg10[%c0, %c0_4] : memref<32x1xf32, #tpu.memory_space<vmem>>, vector<32x1xf32>
      %cst = arith.constant 0.000000e+00 : f32
      %12 = vector.broadcast %cst : f32 to vector<32x1xf32>
      %13 = arith.cmpf ogt, %11, %12 : vector<32x1xf32>
      %cst_5 = arith.constant 1.000000e+00 : f32
      %14 = vector.broadcast %cst_5 : f32 to vector<32x1xf32>
      %15 = arith.select %13, %11, %14 : vector<32x1xi1>, vector<32x1xf32>
      %16 = tpu.reciprocal %15 {approx = true} : vector<32x1xf32> -> vector<32x1xf32>
      %c0_6 = arith.constant 0 : index
      %c0_7 = arith.constant 0 : index
      %17 = vector.load %arg11[%c0_6, %c0_7] : memref<32x16xf32, #tpu.memory_space<vmem>>, vector<32x16xf32>
      %18 = vector.broadcast %16 : vector<32x1xf32> to vector<32x16xf32>
      %19 = arith.mulf %17, %18 : vector<32x16xf32>
      %cst_8 = arith.constant 0.000000e+00 : f32
      %20 = vector.broadcast %cst_8 : f32 to vector<32x16xf32>
      %21 = arith.cmpf ogt, %19, %20 : vector<32x16xf32>
      %cst_9 = arith.constant 0.000000e+00 : f32
      %22 = vector.broadcast %cst_9 : f32 to vector<32x16xf32>
      %23 = arith.minimumf %19, %22 : vector<32x16xf32>
      %24 = math.exp %23 : vector<32x16xf32>
      %cst_10 = arith.constant 1.000000e+00 : f32
      %25 = vector.broadcast %cst_10 : f32 to vector<32x16xf32>
      %26 = arith.subf %24, %25 : vector<32x16xf32>
      %27 = arith.select %21, %19, %26 : vector<32x16xi1>, vector<32x16xf32>
      %c0_11 = arith.constant 0 : index
      %c0_12 = arith.constant 0 : index
      %28 = vector.load %arg8[%c0_11, %c0_12] : memref<32x16xf32, #tpu.memory_space<vmem>>, vector<32x16xf32>
      tpu.vector_store %arg8[%c0_11, %c0_12], %27 {strides = array<i32>} : memref<32x16xf32, #tpu.memory_space<vmem>>, vector<32x16xf32>,
    } else {
    }
    return
  }
  func.func @transform_0(%arg0: i32, %arg1: i32, %arg2: memref<1x1xi32, #tpu.memory_space<smem>>, %arg3: memref<1xi32, #tpu.memory_space<smem>>) -> (i32, i32) {
    %c0_i32 = arith.constant 0 : i32
    %c0_i32_0 = arith.constant 0 : i32
    return %arg0, %c0_i32 : i32, i32
  }
  func.func @transform_1(%arg0: i32, %arg1: i32, %arg2: memref<1x1xi32, #tpu.memory_space<smem>>, %arg3: memref<1xi32, #tpu.memory_space<smem>>) -> (i32, i32) {
    %0 = arith.index_cast %arg0 : i32 to index
    %1 = arith.index_cast %arg1 : i32 to index
    %2 = memref.load %arg2[%0, %1] : memref<1x1xi32, #tpu.memory_space<smem>>
    %c0_i32 = arith.constant 0 : i32
    %c0_i32_0 = arith.constant 0 : i32
    return %c0_i32, %2 : i32, i32
  }
  func.func @transform_2(%arg0: i32, %arg1: i32, %arg2: memref<1x1xi32, #tpu.memory_space<smem>>, %arg3: memref<1xi32, #tpu.memory_space<smem>>) -> (i32, i32) {
    %0 = arith.index_cast %arg0 : i32 to index
    %1 = arith.index_cast %arg1 : i32 to index
    %2 = memref.load %arg2[%0, %1] : memref<1x1xi32, #tpu.memory_space<smem>>
    %c0_i32 = arith.constant 0 : i32
    %c0_i32_0 = arith.constant 0 : i32
    return %2, %c0_i32 : i32, i32
  }
  func.func @transform_3(%arg0: i32, %arg1: i32, %arg2: memref<1x1xi32, #tpu.memory_space<smem>>, %arg3: memref<1xi32, #tpu.memory_space<smem>>) -> (i32, i32) {
    %0 = arith.index_cast %arg0 : i32 to index
    %1 = arith.index_cast %arg1 : i32 to index
    %2 = memref.load %arg2[%0, %1] : memref<1x1xi32, #tpu.memory_space<smem>>
    %c0_i32 = arith.constant 0 : i32
    return %arg0, %2 : i32, i32
  }
  func.func @transform_4(%arg0: i32, %arg1: i32, %arg2: memref<1x1xi32, #tpu.memory_space<smem>>, %arg3: memref<1xi32, #tpu.memory_space<smem>>) -> (i32, i32) {
    %c0_i32 = arith.constant 0 : i32
    %c0_i32_0 = arith.constant 0 : i32
    return %arg0, %c0_i32 : i32, i32
  }
}

module attributes {stable_mosaic.version = 11 : i64} {
  func.func @_ae_dec_kernel(%arg0: i32, %arg1: memref<32x8xf32, #tpu.memory_space<vmem>>, %arg2: memref<8x16xbf16, #tpu.memory_space<vmem>>, %arg3: memref<1x16xf32, #tpu.memory_space<vmem>>, %arg4: memref<16x16xbf16, #tpu.memory_space<vmem>>, %arg5: memref<1x16xf32, #tpu.memory_space<vmem>>, %arg6: memref<16x32xbf16, #tpu.memory_space<vmem>>, %arg7: memref<1x32xf32, #tpu.memory_space<vmem>>, %arg8: memref<32x32xf32, #tpu.memory_space<vmem>>) attributes {dimension_semantics = [#tpu.dimension_semantics<parallel>], iteration_bounds = array<i64: 1>, scalar_prefetch = 0 : i64, scratch_operands = 0 : i64, tpu.core_type = #tpu.core_type<tc>, window_params = [{transform_indices = @transform_0, window_bounds = array<i64: 32, 8>}, {pipeline_mode = #tpu.pipeline_mode<synchronous>, transform_indices = @transform_1, window_bounds = array<i64: 8, 16>}, {pipeline_mode = #tpu.pipeline_mode<synchronous>, transform_indices = @transform_2, window_bounds = array<i64: 1, 16>}, {pipeline_mode = #tpu.pipeline_mode<synchronous>, transform_indices = @transform_3, window_bounds = array<i64: 16, 16>}, {pipeline_mode = #tpu.pipeline_mode<synchronous>, transform_indices = @transform_4, window_bounds = array<i64: 1, 16>}, {pipeline_mode = #tpu.pipeline_mode<synchronous>, transform_indices = @transform_5, window_bounds = array<i64: 16, 32>}, {pipeline_mode = #tpu.pipeline_mode<synchronous>, transform_indices = @transform_6, window_bounds = array<i64: 1, 32>}, {transform_indices = @transform_7, window_bounds = array<i64: 32, 32>}]} {
    %c0 = arith.constant 0 : index
    %c0_0 = arith.constant 0 : index
    %0 = vector.load %arg1[%c0, %c0_0] : memref<32x8xf32, #tpu.memory_space<vmem>>, vector<32x8xf32>
    %1 = arith.truncf %0 : vector<32x8xf32> to vector<32x8xbf16>
    %c0_1 = arith.constant 0 : index
    %c0_2 = arith.constant 0 : index
    %2 = vector.load %arg2[%c0_1, %c0_2] : memref<8x16xbf16, #tpu.memory_space<vmem>>, vector<8x16xbf16>
    %cst = arith.constant dense<0.000000e+00> : vector<32x16xf32>
    %3 = tpu.matmul %1, %2, %cst {dimension_numbers = #tpu.dot_dimension_numbers<[1], [0], [0], [1], [0, 0, 1, 1], [], []>} : vector<32x8xbf16>, vector<8x16xbf16>, vector<32x16xf32> -> vector<32x16xf32>
    %c0_3 = arith.constant 0 : index
    %c0_4 = arith.constant 0 : index
    %4 = vector.load %arg3[%c0_3, %c0_4] : memref<1x16xf32, #tpu.memory_space<vmem>>, vector<1x16xf32>
    %5 = vector.broadcast %4 : vector<1x16xf32> to vector<32x16xf32>
    %6 = arith.addf %3, %5 : vector<32x16xf32>
    %cst_5 = arith.constant 0.000000e+00 : f32
    %7 = vector.broadcast %cst_5 : f32 to vector<32x16xf32>
    %8 = arith.maximumf %6, %7 : vector<32x16xf32>
    %9 = arith.truncf %8 : vector<32x16xf32> to vector<32x16xbf16>
    %c0_6 = arith.constant 0 : index
    %c0_7 = arith.constant 0 : index
    %10 = vector.load %arg4[%c0_6, %c0_7] : memref<16x16xbf16, #tpu.memory_space<vmem>>, vector<16x16xbf16>
    %cst_8 = arith.constant dense<0.000000e+00> : vector<32x16xf32>
    %11 = tpu.matmul %9, %10, %cst_8 {dimension_numbers = #tpu.dot_dimension_numbers<[1], [0], [0], [1], [0, 0, 1, 1], [], []>} : vector<32x16xbf16>, vector<16x16xbf16>, vector<32x16xf32> -> vector<32x16xf32>
    %c0_9 = arith.constant 0 : index
    %c0_10 = arith.constant 0 : index
    %12 = vector.load %arg5[%c0_9, %c0_10] : memref<1x16xf32, #tpu.memory_space<vmem>>, vector<1x16xf32>
    %13 = vector.broadcast %12 : vector<1x16xf32> to vector<32x16xf32>
    %14 = arith.addf %11, %13 : vector<32x16xf32>
    %cst_11 = arith.constant 0.000000e+00 : f32
    %15 = vector.broadcast %cst_11 : f32 to vector<32x16xf32>
    %16 = arith.maximumf %14, %15 : vector<32x16xf32>
    %17 = arith.truncf %16 : vector<32x16xf32> to vector<32x16xbf16>
    %c0_12 = arith.constant 0 : index
    %c0_13 = arith.constant 0 : index
    %18 = vector.load %arg6[%c0_12, %c0_13] : memref<16x32xbf16, #tpu.memory_space<vmem>>, vector<16x32xbf16>
    %cst_14 = arith.constant dense<0.000000e+00> : vector<32x32xf32>
    %19 = tpu.matmul %17, %18, %cst_14 {dimension_numbers = #tpu.dot_dimension_numbers<[1], [0], [0], [1], [0, 0, 1, 1], [], []>} : vector<32x16xbf16>, vector<16x32xbf16>, vector<32x32xf32> -> vector<32x32xf32>
    %c0_15 = arith.constant 0 : index
    %c0_16 = arith.constant 0 : index
    %20 = vector.load %arg7[%c0_15, %c0_16] : memref<1x32xf32, #tpu.memory_space<vmem>>, vector<1x32xf32>
    %21 = vector.broadcast %20 : vector<1x32xf32> to vector<32x32xf32>
    %22 = arith.addf %19, %21 : vector<32x32xf32>
    %c0_17 = arith.constant 0 : index
    %c0_18 = arith.constant 0 : index
    %23 = vector.load %arg8[%c0_17, %c0_18] : memref<32x32xf32, #tpu.memory_space<vmem>>, vector<32x32xf32>
    tpu.vector_store %arg8[%c0_17, %c0_18], %22 {strides = array<i32>} : memref<32x32xf32, #tpu.memory_space<vmem>>, vector<32x32xf32>,
    return
  }
  func.func @transform_0(%arg0: i32) -> (i32, i32) {
    %c0_i32 = arith.constant 0 : i32
    %c0_i32_0 = arith.constant 0 : i32
    return %arg0, %c0_i32 : i32, i32
  }
  func.func @transform_1(%arg0: i32) -> (i32, i32) {
    %c0_i32 = arith.constant 0 : i32
    %c0_i32_0 = arith.constant 0 : i32
    %c0_i32_1 = arith.constant 0 : i32
    return %c0_i32, %c0_i32_0 : i32, i32
  }
  func.func @transform_2(%arg0: i32) -> (i32, i32) {
    %c0_i32 = arith.constant 0 : i32
    %c0_i32_0 = arith.constant 0 : i32
    %c0_i32_1 = arith.constant 0 : i32
    return %c0_i32, %c0_i32_0 : i32, i32
  }
  func.func @transform_3(%arg0: i32) -> (i32, i32) {
    %c0_i32 = arith.constant 0 : i32
    %c0_i32_0 = arith.constant 0 : i32
    %c0_i32_1 = arith.constant 0 : i32
    return %c0_i32, %c0_i32_0 : i32, i32
  }
  func.func @transform_4(%arg0: i32) -> (i32, i32) {
    %c0_i32 = arith.constant 0 : i32
    %c0_i32_0 = arith.constant 0 : i32
    %c0_i32_1 = arith.constant 0 : i32
    return %c0_i32, %c0_i32_0 : i32, i32
  }
  func.func @transform_5(%arg0: i32) -> (i32, i32) {
    %c0_i32 = arith.constant 0 : i32
    %c0_i32_0 = arith.constant 0 : i32
    %c0_i32_1 = arith.constant 0 : i32
    return %c0_i32, %c0_i32_0 : i32, i32
  }
  func.func @transform_6(%arg0: i32) -> (i32, i32) {
    %c0_i32 = arith.constant 0 : i32
    %c0_i32_0 = arith.constant 0 : i32
    %c0_i32_1 = arith.constant 0 : i32
    return %c0_i32, %c0_i32_0 : i32, i32
  }
  func.func @transform_7(%arg0: i32) -> (i32, i32) {
    %c0_i32 = arith.constant 0 : i32
    %c0_i32_0 = arith.constant 0 : i32
    return %arg0, %c0_i32 : i32, i32
  }
}

module attributes {stable_mosaic.version = 11 : i64} {
  func.func @_fusion_reduce_kernel(%arg0: i32, %arg1: memref<32x16xf32, #tpu.memory_space<vmem>>, %arg2: memref<32x16xf32, #tpu.memory_space<vmem>>, %arg3: memref<16x500xbf16, #tpu.memory_space<vmem>>, %arg4: memref<16x500xbf16, #tpu.memory_space<vmem>>, %arg5: memref<1x500xf32, #tpu.memory_space<vmem>>, %arg6: memref<500x100xbf16, #tpu.memory_space<vmem>>, %arg7: memref<1x100xf32, #tpu.memory_space<vmem>>, %arg8: memref<100x1xf32, #tpu.memory_space<vmem>>, %arg9: memref<100x1xf32, #tpu.memory_space<vmem>>, %arg10: memref<1x1xf32, #tpu.memory_space<vmem>>, %arg11: memref<1x1xf32, #tpu.memory_space<vmem>>, %arg12: memref<1x1xf32, #tpu.memory_space<vmem>>) attributes {dimension_semantics = [#tpu.dimension_semantics<arbitrary>], iteration_bounds = array<i64: 1>, scalar_prefetch = 0 : i64, scratch_operands = 0 : i64, tpu.core_type = #tpu.core_type<tc>, window_params = [{transform_indices = @transform_0, window_bounds = array<i64: 32, 16>}, {transform_indices = @transform_1, window_bounds = array<i64: 32, 16>}, {pipeline_mode = #tpu.pipeline_mode<synchronous>, transform_indices = @transform_2, window_bounds = array<i64: 16, 500>}, {pipeline_mode = #tpu.pipeline_mode<synchronous>, transform_indices = @transform_3, window_bounds = array<i64: 16, 500>}, {pipeline_mode = #tpu.pipeline_mode<synchronous>, transform_indices = @transform_4, window_bounds = array<i64: 1, 500>}, {pipeline_mode = #tpu.pipeline_mode<synchronous>, transform_indices = @transform_5, window_bounds = array<i64: 500, 100>}, {pipeline_mode = #tpu.pipeline_mode<synchronous>, transform_indices = @transform_6, window_bounds = array<i64: 1, 100>}, {pipeline_mode = #tpu.pipeline_mode<synchronous>, transform_indices = @transform_7, window_bounds = array<i64: 100, 1>}, {pipeline_mode = #tpu.pipeline_mode<synchronous>, transform_indices = @transform_8, window_bounds = array<i64: 100, 1>}, {pipeline_mode = #tpu.pipeline_mode<synchronous>, transform_indices = @transform_9, window_bounds = array<i64: 1, 1>}, {pipeline_mode = #tpu.pipeline_mode<synchronous>, transform_indices = @transform_10, window_bounds = array<i64: 1, 1>}, {pipeline_mode = #tpu.pipeline_mode<synchronous>, transform_indices = @transform_11, window_bounds = array<i64: 1, 1>}]} {
    %c0_i32 = arith.constant 0 : i32
    %0 = arith.cmpi eq, %arg0, %c0_i32 : i32
    %1 = arith.extui %0 : i1 to i32
    %c0_i32_0 = arith.constant 0 : i32
    %2 = arith.cmpi ne, %1, %c0_i32_0 : i32
    scf.if %2 {
      %cst_45 = arith.constant 0.000000e+00 : f32
      %74 = vector.broadcast %cst_45 : f32 to vector<1x1xf32>
      %c0_46 = arith.constant 0 : index
      %c0_47 = arith.constant 0 : index
      %75 = vector.load %arg12[%c0_46, %c0_47] : memref<1x1xf32, #tpu.memory_space<vmem>>, vector<1x1xf32>
      tpu.vector_store %arg12[%c0_46, %c0_47], %74 {strides = array<i32>} : memref<1x1xf32, #tpu.memory_space<vmem>>, vector<1x1xf32>,
    } else {
    }
    %c0 = arith.constant 0 : index
    %c0_1 = arith.constant 0 : index
    %3 = vector.load %arg1[%c0, %c0_1] : memref<32x16xf32, #tpu.memory_space<vmem>>, vector<32x16xf32>
    %4 = arith.truncf %3 : vector<32x16xf32> to vector<32x16xbf16>
    %c0_2 = arith.constant 0 : index
    %c0_3 = arith.constant 0 : index
    %5 = vector.load %arg2[%c0_2, %c0_3] : memref<32x16xf32, #tpu.memory_space<vmem>>, vector<32x16xf32>
    %6 = arith.truncf %5 : vector<32x16xf32> to vector<32x16xbf16>
    %c0_4 = arith.constant 0 : index
    %c0_5 = arith.constant 0 : index
    %7 = vector.load %arg3[%c0_4, %c0_5] : memref<16x500xbf16, #tpu.memory_space<vmem>>, vector<16x500xbf16>
    %cst = arith.constant dense<0.000000e+00> : vector<32x500xf32>
    %8 = tpu.matmul %4, %7, %cst {dimension_numbers = #tpu.dot_dimension_numbers<[1], [0], [0], [1], [0, 0, 1, 1], [], []>} : vector<32x16xbf16>, vector<16x500xbf16>, vector<32x500xf32> -> vector<32x500xf32>
    %c0_6 = arith.constant 0 : index
    %c0_7 = arith.constant 0 : index
    %9 = vector.load %arg4[%c0_6, %c0_7] : memref<16x500xbf16, #tpu.memory_space<vmem>>, vector<16x500xbf16>
    %cst_8 = arith.constant dense<0.000000e+00> : vector<32x500xf32>
    %10 = tpu.matmul %6, %9, %cst_8 {dimension_numbers = #tpu.dot_dimension_numbers<[1], [0], [0], [1], [0, 0, 1, 1], [], []>} : vector<32x16xbf16>, vector<16x500xbf16>, vector<32x500xf32> -> vector<32x500xf32>
    %11 = arith.addf %8, %10 : vector<32x500xf32>
    %c0_9 = arith.constant 0 : index
    %c0_10 = arith.constant 0 : index
    %12 = vector.load %arg5[%c0_9, %c0_10] : memref<1x500xf32, #tpu.memory_space<vmem>>, vector<1x500xf32>
    %13 = vector.broadcast %12 : vector<1x500xf32> to vector<32x500xf32>
    %14 = arith.addf %11, %13 : vector<32x500xf32>
    %cst_11 = arith.constant 0.000000e+00 : f32
    %15 = vector.broadcast %cst_11 : f32 to vector<32x500xf32>
    %16 = arith.maximumf %14, %15 : vector<32x500xf32>
    %17 = arith.truncf %16 : vector<32x500xf32> to vector<32x500xbf16>
    %c0_12 = arith.constant 0 : index
    %c0_13 = arith.constant 0 : index
    %18 = vector.load %arg6[%c0_12, %c0_13] : memref<500x100xbf16, #tpu.memory_space<vmem>>, vector<500x100xbf16>
    %cst_14 = arith.constant dense<0.000000e+00> : vector<32x100xf32>
    %19 = tpu.matmul %17, %18, %cst_14 {dimension_numbers = #tpu.dot_dimension_numbers<[1], [0], [0], [1], [0, 0, 1, 1], [], []>} : vector<32x500xbf16>, vector<500x100xbf16>, vector<32x100xf32> -> vector<32x100xf32>
    %c0_15 = arith.constant 0 : index
    %c0_16 = arith.constant 0 : index
    %20 = vector.load %arg7[%c0_15, %c0_16] : memref<1x100xf32, #tpu.memory_space<vmem>>, vector<1x100xf32>
    %21 = vector.broadcast %20 : vector<1x100xf32> to vector<32x100xf32>
    %22 = arith.addf %19, %21 : vector<32x100xf32>
    %cst_17 = arith.constant 0.000000e+00 : f32
    %23 = vector.broadcast %cst_17 : f32 to vector<32x100xf32>
    %24 = arith.maximumf %22, %23 : vector<32x100xf32>
    %c0_18 = arith.constant 0 : index
    %c0_19 = arith.constant 0 : index
    %25 = vector.load %arg8[%c0_18, %c0_19] : memref<100x1xf32, #tpu.memory_space<vmem>>, vector<100x1xf32>
    %cst_20 = arith.constant dense<0.000000e+00> : vector<32x1xf32>
    %26 = tpu.matmul %24, %25, %cst_20 {dimension_numbers = #tpu.dot_dimension_numbers<[1], [0], [0], [1], [0, 0, 1, 1], [], []>} : vector<32x100xf32>, vector<100x1xf32>, vector<32x1xf32> -> vector<32x1xf32>
    %c0_21 = arith.constant 0 : index
    %c0_22 = arith.constant 0 : index
    %27 = vector.load %arg10[%c0_21, %c0_22] : memref<1x1xf32, #tpu.memory_space<vmem>>, vector<1x1xf32>
    %28 = vector.broadcast %27 : vector<1x1xf32> to vector<32x1xf32>
    %29 = arith.addf %26, %28 : vector<32x1xf32>
    %c0_23 = arith.constant 0 : index
    %c0_24 = arith.constant 0 : index
    %30 = vector.load %arg9[%c0_23, %c0_24] : memref<100x1xf32, #tpu.memory_space<vmem>>, vector<100x1xf32>
    %cst_25 = arith.constant dense<0.000000e+00> : vector<32x1xf32>
    %31 = tpu.matmul %24, %30, %cst_25 {dimension_numbers = #tpu.dot_dimension_numbers<[1], [0], [0], [1], [0, 0, 1, 1], [], []>} : vector<32x100xf32>, vector<100x1xf32>, vector<32x1xf32> -> vector<32x1xf32>
    %c0_26 = arith.constant 0 : index
    %c0_27 = arith.constant 0 : index
    %32 = vector.load %arg11[%c0_26, %c0_27] : memref<1x1xf32, #tpu.memory_space<vmem>>, vector<1x1xf32>
    %33 = vector.broadcast %32 : vector<1x1xf32> to vector<32x1xf32>
    %34 = arith.addf %31, %33 : vector<32x1xf32>
    %cst_28 = arith.constant 0.000000e+00 : f32
    %35 = vector.broadcast %cst_28 : f32 to vector<32x1xf32>
    %36 = arith.subf %35, %29 : vector<32x1xf32>
    %37 = math.exp %36 : vector<32x1xf32>
    %cst_29 = arith.constant 1.000000e+00 : f32
    %38 = vector.broadcast %cst_29 : f32 to vector<32x1xf32>
    %39 = arith.addf %38, %37 : vector<32x1xf32>
    %cst_30 = arith.constant 1.000000e+00 : f32
    %40 = vector.broadcast %cst_30 : f32 to vector<32x1xf32>
    %41 = arith.divf %40, %39 : vector<32x1xf32>
    %cst_31 = arith.constant 0.000000e+00 : f32
    %42 = vector.broadcast %cst_31 : f32 to vector<32x1xf32>
    %43 = arith.subf %42, %34 : vector<32x1xf32>
    %44 = math.exp %43 : vector<32x1xf32>
    %cst_32 = arith.constant 1.000000e+00 : f32
    %45 = vector.broadcast %cst_32 : f32 to vector<32x1xf32>
    %46 = arith.addf %45, %44 : vector<32x1xf32>
    %cst_33 = arith.constant 1.000000e+00 : f32
    %47 = vector.broadcast %cst_33 : f32 to vector<32x1xf32>
    %48 = arith.divf %47, %46 : vector<32x1xf32>
    %49 = arith.subf %41, %48 : vector<32x1xf32>
    %cst_34 = arith.constant 0.000000e+00 : f32
    %50 = vector.broadcast %cst_34 : f32 to vector<32x1xf32>
    %51 = arith.subf %50, %49 : vector<32x1xf32>
    %cst_35 = arith.constant 1.000000e-01 : f32
    %52 = vector.broadcast %cst_35 : f32 to vector<32x1xf32>
    %53 = arith.mulf %51, %52 : vector<32x1xf32>
    %54 = math.exp %53 : vector<32x1xf32>
    %cst_36 = arith.constant 1.000000e+00 : f32
    %55 = vector.broadcast %cst_36 : f32 to vector<32x1xf32>
    %56 = arith.addf %55, %54 : vector<32x1xf32>
    %cst_37 = arith.constant 1.000000e+00 : f32
    %57 = vector.broadcast %cst_37 : f32 to vector<32x1xf32>
    %58 = arith.divf %57, %56 : vector<32x1xf32>
    %c32_i32 = arith.constant 32 : i32
    %59 = arith.muli %arg0, %c32_i32 : i32
    %60 = tpu.iota {dimensions = array<i32: 0>} : vector<32x1xi32>
    %61 = vector.broadcast %59 : i32 to vector<32x1xi32>
    %62 = arith.addi %61, %60 : vector<32x1xi32>
    %c8_i32 = arith.constant 8 : i32
    %63 = vector.broadcast %c8_i32 : i32 to vector<32x1xi32>
    %64 = arith.cmpi slt, %62, %63 : vector<32x1xi32>
    %cst_38 = arith.constant 0.000000e+00 : f32
    %65 = vector.broadcast %cst_38 : f32 to vector<32x1xf32>
    %66 = arith.select %64, %58, %65 : vector<32x1xi1>, vector<32x1xf32>
    %c0_39 = arith.constant 0 : index
    %c0_40 = arith.constant 0 : index
    %67 = vector.load %arg12[%c0_39, %c0_40] : memref<1x1xf32, #tpu.memory_space<vmem>>, vector<1x1xf32>
    %cst_41 = arith.constant dense<0.000000e+00> : vector<1xf32>
    %68 = vector.multi_reduction <add>, %66, %cst_41 [0] : vector<32x1xf32> to vector<1xf32>
    %69 = vector.shape_cast %68 : vector<1xf32> to vector<1x1xf32>
    %cst_42 = arith.constant 1.250000e-01 : f32
    %70 = vector.broadcast %cst_42 : f32 to vector<1x1xf32>
    %71 = arith.mulf %69, %70 : vector<1x1xf32>
    %72 = arith.addf %67, %71 : vector<1x1xf32>
    %c0_43 = arith.constant 0 : index
    %c0_44 = arith.constant 0 : index
    %73 = vector.load %arg12[%c0_43, %c0_44] : memref<1x1xf32, #tpu.memory_space<vmem>>, vector<1x1xf32>
    tpu.vector_store %arg12[%c0_43, %c0_44], %72 {strides = array<i32>} : memref<1x1xf32, #tpu.memory_space<vmem>>, vector<1x1xf32>,
    return
  }
  func.func @transform_0(%arg0: i32) -> (i32, i32) {
    %c0_i32 = arith.constant 0 : i32
    %c0_i32_0 = arith.constant 0 : i32
    return %arg0, %c0_i32 : i32, i32
  }
  func.func @transform_1(%arg0: i32) -> (i32, i32) {
    %c0_i32 = arith.constant 0 : i32
    %c0_i32_0 = arith.constant 0 : i32
    return %arg0, %c0_i32 : i32, i32
  }
  func.func @transform_2(%arg0: i32) -> (i32, i32) {
    %c0_i32 = arith.constant 0 : i32
    %c0_i32_0 = arith.constant 0 : i32
    %c0_i32_1 = arith.constant 0 : i32
    return %c0_i32, %c0_i32_0 : i32, i32
  }
  func.func @transform_3(%arg0: i32) -> (i32, i32) {
    %c0_i32 = arith.constant 0 : i32
    %c0_i32_0 = arith.constant 0 : i32
    %c0_i32_1 = arith.constant 0 : i32
    return %c0_i32, %c0_i32_0 : i32, i32
  }
  func.func @transform_4(%arg0: i32) -> (i32, i32) {
    %c0_i32 = arith.constant 0 : i32
    %c0_i32_0 = arith.constant 0 : i32
    %c0_i32_1 = arith.constant 0 : i32
    return %c0_i32, %c0_i32_0 : i32, i32
  }
  func.func @transform_5(%arg0: i32) -> (i32, i32) {
    %c0_i32 = arith.constant 0 : i32
    %c0_i32_0 = arith.constant 0 : i32
    %c0_i32_1 = arith.constant 0 : i32
    return %c0_i32, %c0_i32_0 : i32, i32
  }
  func.func @transform_6(%arg0: i32) -> (i32, i32) {
    %c0_i32 = arith.constant 0 : i32
    %c0_i32_0 = arith.constant 0 : i32
    %c0_i32_1 = arith.constant 0 : i32
    return %c0_i32, %c0_i32_0 : i32, i32
  }
  func.func @transform_7(%arg0: i32) -> (i32, i32) {
    %c0_i32 = arith.constant 0 : i32
    %c0_i32_0 = arith.constant 0 : i32
    %c0_i32_1 = arith.constant 0 : i32
    return %c0_i32, %c0_i32_0 : i32, i32
  }
  func.func @transform_8(%arg0: i32) -> (i32, i32) {
    %c0_i32 = arith.constant 0 : i32
    %c0_i32_0 = arith.constant 0 : i32
    %c0_i32_1 = arith.constant 0 : i32
    return %c0_i32, %c0_i32_0 : i32, i32
  }
  func.func @transform_9(%arg0: i32) -> (i32, i32) {
    %c0_i32 = arith.constant 0 : i32
    %c0_i32_0 = arith.constant 0 : i32
    %c0_i32_1 = arith.constant 0 : i32
    return %c0_i32, %c0_i32_0 : i32, i32
  }
  func.func @transform_10(%arg0: i32) -> (i32, i32) {
    %c0_i32 = arith.constant 0 : i32
    %c0_i32_0 = arith.constant 0 : i32
    %c0_i32_1 = arith.constant 0 : i32
    return %c0_i32, %c0_i32_0 : i32, i32
  }
  func.func @transform_11(%arg0: i32) -> (i32, i32) {
    %c0_i32 = arith.constant 0 : i32
    %c0_i32_0 = arith.constant 0 : i32
    %c0_i32_1 = arith.constant 0 : i32
    return %c0_i32, %c0_i32_0 : i32, i32
  }
}

module attributes {stable_mosaic.version = 11 : i64} {
  func.func @_gat_pre_blend_kernel(%arg0: i32, %arg1: memref<32x16xf32, #tpu.memory_space<vmem>>, %arg2: memref<32x16xf32, #tpu.memory_space<vmem>>, %arg3: memref<1x1xf32, #tpu.memory_space<vmem>>, %arg4: memref<16x8xbf16, #tpu.memory_space<vmem>>, %arg5: memref<8x2xf32, #tpu.memory_space<vmem>>, %arg6: memref<32x8xbf16, #tpu.memory_space<vmem>>, %arg7: memref<32x2xf32, #tpu.memory_space<vmem>>) attributes {dimension_semantics = [#tpu.dimension_semantics<parallel>], iteration_bounds = array<i64: 1>, scalar_prefetch = 0 : i64, scratch_operands = 0 : i64, tpu.core_type = #tpu.core_type<tc>, window_params = [{transform_indices = @transform_0, window_bounds = array<i64: 32, 16>}, {transform_indices = @transform_1, window_bounds = array<i64: 32, 16>}, {pipeline_mode = #tpu.pipeline_mode<synchronous>, transform_indices = @transform_2, window_bounds = array<i64: 1, 1>}, {pipeline_mode = #tpu.pipeline_mode<synchronous>, transform_indices = @transform_3, window_bounds = array<i64: 16, 8>}, {pipeline_mode = #tpu.pipeline_mode<synchronous>, transform_indices = @transform_4, window_bounds = array<i64: 8, 2>}, {transform_indices = @transform_5, window_bounds = array<i64: 32, 8>}, {transform_indices = @transform_6, window_bounds = array<i64: 32, 2>}]} {
    %c0 = arith.constant 0 : index
    %c0_0 = arith.constant 0 : index
    %0 = vector.load %arg3[%c0, %c0_0] : memref<1x1xf32, #tpu.memory_space<vmem>>, vector<1x1xf32>
    %c0_1 = arith.constant 0 : index
    %c0_2 = arith.constant 0 : index
    %1 = vector.load %arg1[%c0_1, %c0_2] : memref<32x16xf32, #tpu.memory_space<vmem>>, vector<32x16xf32>
    %2 = vector.broadcast %0 : vector<1x1xf32> to vector<32x16xf32>
    %3 = arith.mulf %2, %1 : vector<32x16xf32>
    %cst = arith.constant 1.000000e+00 : f32
    %4 = vector.broadcast %cst : f32 to vector<1x1xf32>
    %5 = arith.subf %4, %0 : vector<1x1xf32>
    %c0_3 = arith.constant 0 : index
    %c0_4 = arith.constant 0 : index
    %6 = vector.load %arg2[%c0_3, %c0_4] : memref<32x16xf32, #tpu.memory_space<vmem>>, vector<32x16xf32>
    %7 = vector.broadcast %5 : vector<1x1xf32> to vector<32x16xf32>
    %8 = arith.mulf %7, %6 : vector<32x16xf32>
    %9 = arith.addf %3, %8 : vector<32x16xf32>
    %10 = arith.truncf %9 : vector<32x16xf32> to vector<32x16xbf16>
    %c0_5 = arith.constant 0 : index
    %c0_6 = arith.constant 0 : index
    %11 = vector.load %arg4[%c0_5, %c0_6] : memref<16x8xbf16, #tpu.memory_space<vmem>>, vector<16x8xbf16>
    %cst_7 = arith.constant dense<0.000000e+00> : vector<32x8xf32>
    %12 = tpu.matmul %10, %11, %cst_7 {dimension_numbers = #tpu.dot_dimension_numbers<[1], [0], [0], [1], [0, 0, 1, 1], [], []>} : vector<32x16xbf16>, vector<16x8xbf16>, vector<32x8xf32> -> vector<32x8xf32>
    %13 = arith.truncf %12 : vector<32x8xf32> to vector<32x8xbf16>
    %c0_8 = arith.constant 0 : index
    %c0_9 = arith.constant 0 : index
    %14 = vector.load %arg6[%c0_8, %c0_9] : memref<32x8xbf16, #tpu.memory_space<vmem>>, vector<32x8xbf16>
    tpu.vector_store %arg6[%c0_8, %c0_9], %13 {strides = array<i32>} : memref<32x8xbf16, #tpu.memory_space<vmem>>, vector<32x8xbf16>,
    %c0_10 = arith.constant 0 : index
    %c0_11 = arith.constant 0 : index
    %15 = vector.load %arg5[%c0_10, %c0_11] : memref<8x2xf32, #tpu.memory_space<vmem>>, vector<8x2xf32>
    %cst_12 = arith.constant dense<0.000000e+00> : vector<32x2xf32>
    %16 = tpu.matmul %12, %15, %cst_12 {dimension_numbers = #tpu.dot_dimension_numbers<[1], [0], [0], [1], [0, 0, 1, 1], [], []>} : vector<32x8xf32>, vector<8x2xf32>, vector<32x2xf32> -> vector<32x2xf32>
    %c0_13 = arith.constant 0 : index
    %c0_14 = arith.constant 0 : index
    %17 = vector.load %arg7[%c0_13, %c0_14] : memref<32x2xf32, #tpu.memory_space<vmem>>, vector<32x2xf32>
    tpu.vector_store %arg7[%c0_13, %c0_14], %16 {strides = array<i32>} : memref<32x2xf32, #tpu.memory_space<vmem>>, vector<32x2xf32>,
    return
  }
  func.func @transform_0(%arg0: i32) -> (i32, i32) {
    %c0_i32 = arith.constant 0 : i32
    %c0_i32_0 = arith.constant 0 : i32
    return %arg0, %c0_i32 : i32, i32
  }
  func.func @transform_1(%arg0: i32) -> (i32, i32) {
    %c0_i32 = arith.constant 0 : i32
    %c0_i32_0 = arith.constant 0 : i32
    return %arg0, %c0_i32 : i32, i32
  }
  func.func @transform_2(%arg0: i32) -> (i32, i32) {
    %c0_i32 = arith.constant 0 : i32
    %c0_i32_0 = arith.constant 0 : i32
    %c0_i32_1 = arith.constant 0 : i32
    return %c0_i32, %c0_i32_0 : i32, i32
  }
  func.func @transform_3(%arg0: i32) -> (i32, i32) {
    %c0_i32 = arith.constant 0 : i32
    %c0_i32_0 = arith.constant 0 : i32
    %c0_i32_1 = arith.constant 0 : i32
    return %c0_i32, %c0_i32_0 : i32, i32
  }
  func.func @transform_4(%arg0: i32) -> (i32, i32) {
    %c0_i32 = arith.constant 0 : i32
    %c0_i32_0 = arith.constant 0 : i32
    %c0_i32_1 = arith.constant 0 : i32
    return %c0_i32, %c0_i32_0 : i32, i32
  }
  func.func @transform_5(%arg0: i32) -> (i32, i32) {
    %c0_i32 = arith.constant 0 : i32
    %c0_i32_0 = arith.constant 0 : i32
    return %arg0, %c0_i32 : i32, i32
  }
  func.func @transform_6(%arg0: i32) -> (i32, i32) {
    %c0_i32 = arith.constant 0 : i32
    %c0_i32_0 = arith.constant 0 : i32
    return %arg0, %c0_i32 : i32, i32
  }
}

module attributes {stable_mosaic.version = 11 : i64} {
  func.func @_gat_flash_kernel(%arg0: i32, %arg1: i32, %arg2: memref<1x1xi32, #tpu.memory_space<smem>>, %arg3: memref<1xi32, #tpu.memory_space<smem>>, %arg4: memref<32x1xf32, #tpu.memory_space<vmem>>, %arg5: memref<1x32xf32, #tpu.memory_space<vmem>>, %arg6: memref<32x8xbf16, #tpu.memory_space<vmem>>, %arg7: memref<32x32xi8, #tpu.memory_space<vmem>>, %arg8: memref<32x8xf32, #tpu.memory_space<vmem>>, %arg9: memref<32x1xf32, #tpu.memory_space<vmem>>, %arg10: memref<32x1xf32, #tpu.memory_space<vmem>>, %arg11: memref<32x8xf32, #tpu.memory_space<vmem>>) attributes {dimension_semantics = [#tpu.dimension_semantics<parallel>, #tpu.dimension_semantics<arbitrary>], iteration_bounds = array<i64: 1, 1>, scalar_prefetch = 2 : i64, scratch_operands = 3 : i64, tpu.core_type = #tpu.core_type<tc>, window_params = [{transform_indices = @transform_0, window_bounds = array<i64: 32, 1>}, {transform_indices = @transform_1, window_bounds = array<i64: 1, 32>}, {transform_indices = @transform_2, window_bounds = array<i64: 32, 8>}, {transform_indices = @transform_3, window_bounds = array<i64: 32, 32>}, {transform_indices = @transform_4, window_bounds = array<i64: 32, 8>}]} {
    %c0_i32 = arith.constant 0 : i32
    %0 = arith.cmpi eq, %arg1, %c0_i32 : i32
    %1 = arith.extui %0 : i1 to i32
    %c0_i32_0 = arith.constant 0 : i32
    %2 = arith.cmpi ne, %1, %c0_i32_0 : i32
    scf.if %2 {
      %cst = arith.constant -9.000000e+15 : f32
      %11 = vector.broadcast %cst : f32 to vector<32x1xf32>
      %c0 = arith.constant 0 : index
      %c0_4 = arith.constant 0 : index
      %12 = vector.load %arg9[%c0, %c0_4] : memref<32x1xf32, #tpu.memory_space<vmem>>, vector<32x1xf32>
      tpu.vector_store %arg9[%c0, %c0_4], %11 {strides = array<i32>} : memref<32x1xf32, #tpu.memory_space<vmem>>, vector<32x1xf32>,
      %cst_5 = arith.constant 0.000000e+00 : f32
      %13 = vector.broadcast %cst_5 : f32 to vector<32x1xf32>
      %c0_6 = arith.constant 0 : index
      %c0_7 = arith.constant 0 : index
      %14 = vector.load %arg10[%c0_6, %c0_7] : memref<32x1xf32, #tpu.memory_space<vmem>>, vector<32x1xf32>
      tpu.vector_store %arg10[%c0_6, %c0_7], %13 {strides = array<i32>} : memref<32x1xf32, #tpu.memory_space<vmem>>, vector<32x1xf32>,
      %cst_8 = arith.constant 0.000000e+00 : f32
      %15 = vector.broadcast %cst_8 : f32 to vector<32x8xf32>
      %c0_9 = arith.constant 0 : index
      %c0_10 = arith.constant 0 : index
      %16 = vector.load %arg11[%c0_9, %c0_10] : memref<32x8xf32, #tpu.memory_space<vmem>>, vector<32x8xf32>
      tpu.vector_store %arg11[%c0_9, %c0_10], %15 {strides = array<i32>} : memref<32x8xf32, #tpu.memory_space<vmem>>, vector<32x8xf32>,
    } else {
    }
    %3 = arith.index_cast %arg0 : i32 to index
    %4 = memref.load %arg3[%3] : memref<1xi32, #tpu.memory_space<smem>>
    %5 = arith.cmpi slt, %arg1, %4 : i32
    %6 = arith.extui %5 : i1 to i32
    %c0_i32_1 = arith.constant 0 : i32
    %7 = arith.cmpi ne, %6, %c0_i32_1 : i32
    scf.if %7 {
      %c0 = arith.constant 0 : index
      %c0_4 = arith.constant 0 : index
      %11 = vector.load %arg7[%c0, %c0_4] : memref<32x32xi8, #tpu.memory_space<vmem>>, vector<32x32xi8>
      %12 = arith.sitofp %11 : vector<32x32xi8> to vector<32x32xf32>
      %cst = arith.constant 0.000000e+00 : f32
      %13 = vector.broadcast %cst : f32 to vector<32x32xf32>
      %14 = arith.cmpf ogt, %12, %13 : vector<32x32xf32>
      %c0_5 = arith.constant 0 : index
      %c0_6 = arith.constant 0 : index
      %15 = vector.load %arg4[%c0_5, %c0_6] : memref<32x1xf32, #tpu.memory_space<vmem>>, vector<32x1xf32>
      %c0_7 = arith.constant 0 : index
      %c0_8 = arith.constant 0 : index
      %16 = vector.load %arg5[%c0_7, %c0_8] : memref<1x32xf32, #tpu.memory_space<vmem>>, vector<1x32xf32>
      %17 = vector.broadcast %15 : vector<32x1xf32> to vector<32x32xf32>
      %18 = vector.broadcast %16 : vector<1x32xf32> to vector<32x32xf32>
      %19 = arith.addf %17, %18 : vector<32x32xf32>
      %cst_9 = arith.constant 0.000000e+00 : f32
      %20 = vector.broadcast %cst_9 : f32 to vector<32x32xf32>
      %21 = arith.cmpf ogt, %19, %20 : vector<32x32xf32>
      %cst_10 = arith.constant 2.000000e-01 : f32
      %22 = vector.broadcast %cst_10 : f32 to vector<32x32xf32>
      %23 = arith.mulf %22, %19 : vector<32x32xf32>
      %24 = arith.select %21, %19, %23 : vector<32x32xi1>, vector<32x32xf32>
      %cst_11 = arith.constant -9.000000e+15 : f32
      %25 = vector.broadcast %cst_11 : f32 to vector<32x32xf32>
      %26 = arith.select %14, %24, %25 : vector<32x32xi1>, vector<32x32xf32>
      %c0_12 = arith.constant 0 : index
      %c0_13 = arith.constant 0 : index
      %27 = vector.load %arg9[%c0_12, %c0_13] : memref<32x1xf32, #tpu.memory_space<vmem>>, vector<32x1xf32>
      %cst_14 = arith.constant dense<0xFF800000> : vector<32xf32>
      %28 = vector.multi_reduction <maximumf>, %26, %cst_14 [1] : vector<32x32xf32> to vector<32xf32>
      %29 = vector.shape_cast %28 : vector<32xf32> to vector<32x1xf32>
      %30 = arith.maximumf %27, %29 : vector<32x1xf32>
      %31 = arith.subf %27, %30 : vector<32x1xf32>
      %32 = math.exp %31 : vector<32x1xf32>
      %33 = vector.broadcast %30 : vector<32x1xf32> to vector<32x32xf32>
      %34 = arith.subf %24, %33 : vector<32x32xf32>
      %35 = math.exp %34 : vector<32x32xf32>
      %cst_15 = arith.constant 0.000000e+00 : f32
      %36 = vector.broadcast %cst_15 : f32 to vector<32x32xf32>
      %37 = arith.select %14, %35, %36 : vector<32x32xi1>, vector<32x32xf32>
      %c0_16 = arith.constant 0 : index
      %c0_17 = arith.constant 0 : index
      %38 = vector.load %arg10[%c0_16, %c0_17] : memref<32x1xf32, #tpu.memory_space<vmem>>, vector<32x1xf32>
      %39 = arith.mulf %32, %38 : vector<32x1xf32>
      %cst_18 = arith.constant dense<0.000000e+00> : vector<32xf32>
      %40 = vector.multi_reduction <add>, %37, %cst_18 [1] : vector<32x32xf32> to vector<32xf32>
      %41 = vector.shape_cast %40 : vector<32xf32> to vector<32x1xf32>
      %42 = arith.addf %39, %41 : vector<32x1xf32>
      %c0_19 = arith.constant 0 : index
      %c0_20 = arith.constant 0 : index
      %43 = vector.load %arg10[%c0_19, %c0_20] : memref<32x1xf32, #tpu.memory_space<vmem>>, vector<32x1xf32>
      tpu.vector_store %arg10[%c0_19, %c0_20], %42 {strides = array<i32>} : memref<32x1xf32, #tpu.memory_space<vmem>>, vector<32x1xf32>,
      %c0_21 = arith.constant 0 : index
      %c0_22 = arith.constant 0 : index
      %44 = vector.load %arg11[%c0_21, %c0_22] : memref<32x8xf32, #tpu.memory_space<vmem>>, vector<32x8xf32>
      %45 = vector.broadcast %32 : vector<32x1xf32> to vector<32x8xf32>
      %46 = arith.mulf %45, %44 : vector<32x8xf32>
      %47 = arith.truncf %37 : vector<32x32xf32> to vector<32x32xbf16>
      %c0_23 = arith.constant 0 : index
      %c0_24 = arith.constant 0 : index
      %48 = vector.load %arg6[%c0_23, %c0_24] : memref<32x8xbf16, #tpu.memory_space<vmem>>, vector<32x8xbf16>
      %cst_25 = arith.constant dense<0.000000e+00> : vector<32x8xf32>
      %49 = tpu.matmul %47, %48, %cst_25 {dimension_numbers = #tpu.dot_dimension_numbers<[1], [0], [0], [1], [0, 0, 1, 1], [], []>} : vector<32x32xbf16>, vector<32x8xbf16>, vector<32x8xf32> -> vector<32x8xf32>
      %50 = arith.addf %46, %49 : vector<32x8xf32>
      %c0_26 = arith.constant 0 : index
      %c0_27 = arith.constant 0 : index
      %51 = vector.load %arg11[%c0_26, %c0_27] : memref<32x8xf32, #tpu.memory_space<vmem>>, vector<32x8xf32>
      tpu.vector_store %arg11[%c0_26, %c0_27], %50 {strides = array<i32>} : memref<32x8xf32, #tpu.memory_space<vmem>>, vector<32x8xf32>,
      %c0_28 = arith.constant 0 : index
      %c0_29 = arith.constant 0 : index
      %52 = vector.load %arg9[%c0_28, %c0_29] : memref<32x1xf32, #tpu.memory_space<vmem>>, vector<32x1xf32>
      tpu.vector_store %arg9[%c0_28, %c0_29], %30 {strides = array<i32>} : memref<32x1xf32, #tpu.memory_space<vmem>>, vector<32x1xf32>,
    } else {
    }
    %c0_i32_2 = arith.constant 0 : i32
    %8 = arith.cmpi eq, %arg1, %c0_i32_2 : i32
    %9 = arith.extui %8 : i1 to i32
    %c0_i32_3 = arith.constant 0 : i32
    %10 = arith.cmpi ne, %9, %c0_i32_3 : i32
    scf.if %10 {
      %c0 = arith.constant 0 : index
      %c0_4 = arith.constant 0 : index
      %11 = vector.load %arg10[%c0, %c0_4] : memref<32x1xf32, #tpu.memory_space<vmem>>, vector<32x1xf32>
      %cst = arith.constant 0.000000e+00 : f32
      %12 = vector.broadcast %cst : f32 to vector<32x1xf32>
      %13 = arith.cmpf ogt, %11, %12 : vector<32x1xf32>
      %cst_5 = arith.constant 1.000000e+00 : f32
      %14 = vector.broadcast %cst_5 : f32 to vector<32x1xf32>
      %15 = arith.select %13, %11, %14 : vector<32x1xi1>, vector<32x1xf32>
      %16 = tpu.reciprocal %15 {approx = true} : vector<32x1xf32> -> vector<32x1xf32>
      %c0_6 = arith.constant 0 : index
      %c0_7 = arith.constant 0 : index
      %17 = vector.load %arg11[%c0_6, %c0_7] : memref<32x8xf32, #tpu.memory_space<vmem>>, vector<32x8xf32>
      %18 = vector.broadcast %16 : vector<32x1xf32> to vector<32x8xf32>
      %19 = arith.mulf %17, %18 : vector<32x8xf32>
      %cst_8 = arith.constant 0.000000e+00 : f32
      %20 = vector.broadcast %cst_8 : f32 to vector<32x8xf32>
      %21 = arith.cmpf ogt, %19, %20 : vector<32x8xf32>
      %cst_9 = arith.constant 0.000000e+00 : f32
      %22 = vector.broadcast %cst_9 : f32 to vector<32x8xf32>
      %23 = arith.minimumf %19, %22 : vector<32x8xf32>
      %24 = math.exp %23 : vector<32x8xf32>
      %cst_10 = arith.constant 1.000000e+00 : f32
      %25 = vector.broadcast %cst_10 : f32 to vector<32x8xf32>
      %26 = arith.subf %24, %25 : vector<32x8xf32>
      %27 = arith.select %21, %19, %26 : vector<32x8xi1>, vector<32x8xf32>
      %c0_11 = arith.constant 0 : index
      %c0_12 = arith.constant 0 : index
      %28 = vector.load %arg8[%c0_11, %c0_12] : memref<32x8xf32, #tpu.memory_space<vmem>>, vector<32x8xf32>
      tpu.vector_store %arg8[%c0_11, %c0_12], %27 {strides = array<i32>} : memref<32x8xf32, #tpu.memory_space<vmem>>, vector<32x8xf32>,
    } else {
    }
    return
  }
  func.func @transform_0(%arg0: i32, %arg1: i32, %arg2: memref<1x1xi32, #tpu.memory_space<smem>>, %arg3: memref<1xi32, #tpu.memory_space<smem>>) -> (i32, i32) {
    %c0_i32 = arith.constant 0 : i32
    %c0_i32_0 = arith.constant 0 : i32
    return %arg0, %c0_i32 : i32, i32
  }
  func.func @transform_1(%arg0: i32, %arg1: i32, %arg2: memref<1x1xi32, #tpu.memory_space<smem>>, %arg3: memref<1xi32, #tpu.memory_space<smem>>) -> (i32, i32) {
    %0 = arith.index_cast %arg0 : i32 to index
    %1 = arith.index_cast %arg1 : i32 to index
    %2 = memref.load %arg2[%0, %1] : memref<1x1xi32, #tpu.memory_space<smem>>
    %c0_i32 = arith.constant 0 : i32
    %c0_i32_0 = arith.constant 0 : i32
    return %c0_i32, %2 : i32, i32
  }
  func.func @transform_2(%arg0: i32, %arg1: i32, %arg2: memref<1x1xi32, #tpu.memory_space<smem>>, %arg3: memref<1xi32, #tpu.memory_space<smem>>) -> (i32, i32) {
    %0 = arith.index_cast %arg0 : i32 to index
    %1 = arith.index_cast %arg1 : i32 to index
    %2 = memref.load %arg2[%0, %1] : memref<1x1xi32, #tpu.memory_space<smem>>
    %c0_i32 = arith.constant 0 : i32
    %c0_i32_0 = arith.constant 0 : i32
    return %2, %c0_i32 : i32, i32
  }
  func.func @transform_3(%arg0: i32, %arg1: i32, %arg2: memref<1x1xi32, #tpu.memory_space<smem>>, %arg3: memref<1xi32, #tpu.memory_space<smem>>) -> (i32, i32) {
    %0 = arith.index_cast %arg0 : i32 to index
    %1 = arith.index_cast %arg1 : i32 to index
    %2 = memref.load %arg2[%0, %1] : memref<1x1xi32, #tpu.memory_space<smem>>
    %c0_i32 = arith.constant 0 : i32
    return %arg0, %2 : i32, i32
  }
  func.func @transform_4(%arg0: i32, %arg1: i32, %arg2: memref<1x1xi32, #tpu.memory_space<smem>>, %arg3: memref<1xi32, #tpu.memory_space<smem>>) -> (i32, i32) {
    %c0_i32 = arith.constant 0 : i32
    %c0_i32_0 = arith.constant 0 : i32
    return %arg0, %c0_i32 : i32, i32
  }
}

module attributes {stable_mosaic.version = 11 : i64} {
  func.func @_gat_pre_blend_kernel(%arg0: i32, %arg1: memref<32x16xf32, #tpu.memory_space<vmem>>, %arg2: memref<32x16xf32, #tpu.memory_space<vmem>>, %arg3: memref<1x1xf32, #tpu.memory_space<vmem>>, %arg4: memref<16x16xbf16, #tpu.memory_space<vmem>>, %arg5: memref<16x2xf32, #tpu.memory_space<vmem>>, %arg6: memref<32x16xbf16, #tpu.memory_space<vmem>>, %arg7: memref<32x2xf32, #tpu.memory_space<vmem>>) attributes {dimension_semantics = [#tpu.dimension_semantics<parallel>], iteration_bounds = array<i64: 1>, scalar_prefetch = 0 : i64, scratch_operands = 0 : i64, tpu.core_type = #tpu.core_type<tc>, window_params = [{transform_indices = @transform_0, window_bounds = array<i64: 32, 16>}, {transform_indices = @transform_1, window_bounds = array<i64: 32, 16>}, {pipeline_mode = #tpu.pipeline_mode<synchronous>, transform_indices = @transform_2, window_bounds = array<i64: 1, 1>}, {pipeline_mode = #tpu.pipeline_mode<synchronous>, transform_indices = @transform_3, window_bounds = array<i64: 16, 16>}, {pipeline_mode = #tpu.pipeline_mode<synchronous>, transform_indices = @transform_4, window_bounds = array<i64: 16, 2>}, {transform_indices = @transform_5, window_bounds = array<i64: 32, 16>}, {transform_indices = @transform_6, window_bounds = array<i64: 32, 2>}]} {
    %c0 = arith.constant 0 : index
    %c0_0 = arith.constant 0 : index
    %0 = vector.load %arg3[%c0, %c0_0] : memref<1x1xf32, #tpu.memory_space<vmem>>, vector<1x1xf32>
    %c0_1 = arith.constant 0 : index
    %c0_2 = arith.constant 0 : index
    %1 = vector.load %arg1[%c0_1, %c0_2] : memref<32x16xf32, #tpu.memory_space<vmem>>, vector<32x16xf32>
    %2 = vector.broadcast %0 : vector<1x1xf32> to vector<32x16xf32>
    %3 = arith.mulf %2, %1 : vector<32x16xf32>
    %cst = arith.constant 1.000000e+00 : f32
    %4 = vector.broadcast %cst : f32 to vector<1x1xf32>
    %5 = arith.subf %4, %0 : vector<1x1xf32>
    %c0_3 = arith.constant 0 : index
    %c0_4 = arith.constant 0 : index
    %6 = vector.load %arg2[%c0_3, %c0_4] : memref<32x16xf32, #tpu.memory_space<vmem>>, vector<32x16xf32>
    %7 = vector.broadcast %5 : vector<1x1xf32> to vector<32x16xf32>
    %8 = arith.mulf %7, %6 : vector<32x16xf32>
    %9 = arith.addf %3, %8 : vector<32x16xf32>
    %10 = arith.truncf %9 : vector<32x16xf32> to vector<32x16xbf16>
    %c0_5 = arith.constant 0 : index
    %c0_6 = arith.constant 0 : index
    %11 = vector.load %arg4[%c0_5, %c0_6] : memref<16x16xbf16, #tpu.memory_space<vmem>>, vector<16x16xbf16>
    %cst_7 = arith.constant dense<0.000000e+00> : vector<32x16xf32>
    %12 = tpu.matmul %10, %11, %cst_7 {dimension_numbers = #tpu.dot_dimension_numbers<[1], [0], [0], [1], [0, 0, 1, 1], [], []>} : vector<32x16xbf16>, vector<16x16xbf16>, vector<32x16xf32> -> vector<32x16xf32>
    %13 = arith.truncf %12 : vector<32x16xf32> to vector<32x16xbf16>
    %c0_8 = arith.constant 0 : index
    %c0_9 = arith.constant 0 : index
    %14 = vector.load %arg6[%c0_8, %c0_9] : memref<32x16xbf16, #tpu.memory_space<vmem>>, vector<32x16xbf16>
    tpu.vector_store %arg6[%c0_8, %c0_9], %13 {strides = array<i32>} : memref<32x16xbf16, #tpu.memory_space<vmem>>, vector<32x16xbf16>,
    %c0_10 = arith.constant 0 : index
    %c0_11 = arith.constant 0 : index
    %15 = vector.load %arg5[%c0_10, %c0_11] : memref<16x2xf32, #tpu.memory_space<vmem>>, vector<16x2xf32>
    %cst_12 = arith.constant dense<0.000000e+00> : vector<32x2xf32>
    %16 = tpu.matmul %12, %15, %cst_12 {dimension_numbers = #tpu.dot_dimension_numbers<[1], [0], [0], [1], [0, 0, 1, 1], [], []>} : vector<32x16xf32>, vector<16x2xf32>, vector<32x2xf32> -> vector<32x2xf32>
    %c0_13 = arith.constant 0 : index
    %c0_14 = arith.constant 0 : index
    %17 = vector.load %arg7[%c0_13, %c0_14] : memref<32x2xf32, #tpu.memory_space<vmem>>, vector<32x2xf32>
    tpu.vector_store %arg7[%c0_13, %c0_14], %16 {strides = array<i32>} : memref<32x2xf32, #tpu.memory_space<vmem>>, vector<32x2xf32>,
    return
  }
  func.func @transform_0(%arg0: i32) -> (i32, i32) {
    %c0_i32 = arith.constant 0 : i32
    %c0_i32_0 = arith.constant 0 : i32
    return %arg0, %c0_i32 : i32, i32
  }
  func.func @transform_1(%arg0: i32) -> (i32, i32) {
    %c0_i32 = arith.constant 0 : i32
    %c0_i32_0 = arith.constant 0 : i32
    return %arg0, %c0_i32 : i32, i32
  }
  func.func @transform_2(%arg0: i32) -> (i32, i32) {
    %c0_i32 = arith.constant 0 : i32
    %c0_i32_0 = arith.constant 0 : i32
    %c0_i32_1 = arith.constant 0 : i32
    return %c0_i32, %c0_i32_0 : i32, i32
  }
  func.func @transform_3(%arg0: i32) -> (i32, i32) {
    %c0_i32 = arith.constant 0 : i32
    %c0_i32_0 = arith.constant 0 : i32
    %c0_i32_1 = arith.constant 0 : i32
    return %c0_i32, %c0_i32_0 : i32, i32
  }
  func.func @transform_4(%arg0: i32) -> (i32, i32) {
    %c0_i32 = arith.constant 0 : i32
    %c0_i32_0 = arith.constant 0 : i32
    %c0_i32_1 = arith.constant 0 : i32
    return %c0_i32, %c0_i32_0 : i32, i32
  }
  func.func @transform_5(%arg0: i32) -> (i32, i32) {
    %c0_i32 = arith.constant 0 : i32
    %c0_i32_0 = arith.constant 0 : i32
    return %arg0, %c0_i32 : i32, i32
  }
  func.func @transform_6(%arg0: i32) -> (i32, i32) {
    %c0_i32 = arith.constant 0 : i32
    %c0_i32_0 = arith.constant 0 : i32
    return %arg0, %c0_i32 : i32, i32
  }
}

module attributes {stable_mosaic.version = 11 : i64} {
  func.func @_head_kernel(%arg0: i32, %arg1: memref<32x8xf32, #tpu.memory_space<vmem>>, %arg2: memref<32x8xf32, #tpu.memory_space<vmem>>, %arg3: memref<1x1xf32, #tpu.memory_space<vmem>>, %arg4: memref<8x4xf32, #tpu.memory_space<vmem>>, %arg5: memref<1x4xf32, #tpu.memory_space<vmem>>, %arg6: memref<8x4xf32, #tpu.memory_space<vmem>>, %arg7: memref<1x4xf32, #tpu.memory_space<vmem>>, %arg8: memref<32x4xf32, #tpu.memory_space<vmem>>, %arg9: memref<32x4xf32, #tpu.memory_space<vmem>>) attributes {dimension_semantics = [#tpu.dimension_semantics<parallel>], iteration_bounds = array<i64: 1>, scalar_prefetch = 0 : i64, scratch_operands = 0 : i64, tpu.core_type = #tpu.core_type<tc>, window_params = [{transform_indices = @transform_0, window_bounds = array<i64: 32, 8>}, {transform_indices = @transform_1, window_bounds = array<i64: 32, 8>}, {pipeline_mode = #tpu.pipeline_mode<synchronous>, transform_indices = @transform_2, window_bounds = array<i64: 1, 1>}, {pipeline_mode = #tpu.pipeline_mode<synchronous>, transform_indices = @transform_3, window_bounds = array<i64: 8, 4>}, {pipeline_mode = #tpu.pipeline_mode<synchronous>, transform_indices = @transform_4, window_bounds = array<i64: 1, 4>}, {pipeline_mode = #tpu.pipeline_mode<synchronous>, transform_indices = @transform_5, window_bounds = array<i64: 8, 4>}, {pipeline_mode = #tpu.pipeline_mode<synchronous>, transform_indices = @transform_6, window_bounds = array<i64: 1, 4>}, {transform_indices = @transform_7, window_bounds = array<i64: 32, 4>}, {transform_indices = @transform_8, window_bounds = array<i64: 32, 4>}]} {
    %c0 = arith.constant 0 : index
    %c0_0 = arith.constant 0 : index
    %0 = vector.load %arg3[%c0, %c0_0] : memref<1x1xf32, #tpu.memory_space<vmem>>, vector<1x1xf32>
    %c0_1 = arith.constant 0 : index
    %c0_2 = arith.constant 0 : index
    %1 = vector.load %arg2[%c0_1, %c0_2] : memref<32x8xf32, #tpu.memory_space<vmem>>, vector<32x8xf32>
    %c0_3 = arith.constant 0 : index
    %c0_4 = arith.constant 0 : index
    %2 = vector.load %arg1[%c0_3, %c0_4] : memref<32x8xf32, #tpu.memory_space<vmem>>, vector<32x8xf32>
    %3 = vector.broadcast %0 : vector<1x1xf32> to vector<32x8xf32>
    %4 = arith.mulf %3, %2 : vector<32x8xf32>
    %cst = arith.constant 1.000000e+00 : f32
    %5 = vector.broadcast %cst : f32 to vector<1x1xf32>
    %6 = arith.subf %5, %0 : vector<1x1xf32>
    %7 = vector.broadcast %6 : vector<1x1xf32> to vector<32x8xf32>
    %8 = arith.mulf %7, %1 : vector<32x8xf32>
    %9 = arith.addf %4, %8 : vector<32x8xf32>
    %c0_5 = arith.constant 0 : index
    %c0_6 = arith.constant 0 : index
    %10 = vector.load %arg4[%c0_5, %c0_6] : memref<8x4xf32, #tpu.memory_space<vmem>>, vector<8x4xf32>
    %cst_7 = arith.constant dense<0.000000e+00> : vector<32x4xf32>
    %11 = tpu.matmul %9, %10, %cst_7 {dimension_numbers = #tpu.dot_dimension_numbers<[1], [0], [0], [1], [0, 0, 1, 1], [], []>} : vector<32x8xf32>, vector<8x4xf32>, vector<32x4xf32> -> vector<32x4xf32>
    %c0_8 = arith.constant 0 : index
    %c0_9 = arith.constant 0 : index
    %12 = vector.load %arg5[%c0_8, %c0_9] : memref<1x4xf32, #tpu.memory_space<vmem>>, vector<1x4xf32>
    %13 = vector.broadcast %12 : vector<1x4xf32> to vector<32x4xf32>
    %14 = arith.addf %11, %13 : vector<32x4xf32>
    %cst_10 = arith.constant dense<0xFF800000> : vector<32xf32>
    %15 = vector.multi_reduction <maximumf>, %14, %cst_10 [1] : vector<32x4xf32> to vector<32xf32>
    %16 = vector.shape_cast %15 : vector<32xf32> to vector<32x1xf32>
    %17 = vector.broadcast %16 : vector<32x1xf32> to vector<32x4xf32>
    %18 = arith.subf %14, %17 : vector<32x4xf32>
    %19 = math.exp %18 : vector<32x4xf32>
    %cst_11 = arith.constant dense<0.000000e+00> : vector<32xf32>
    %20 = vector.multi_reduction <add>, %19, %cst_11 [1] : vector<32x4xf32> to vector<32xf32>
    %21 = vector.shape_cast %20 : vector<32xf32> to vector<32x1xf32>
    %22 = vector.broadcast %21 : vector<32x1xf32> to vector<32x4xf32>
    %23 = arith.divf %19, %22 : vector<32x4xf32>
    %c0_12 = arith.constant 0 : index
    %c0_13 = arith.constant 0 : index
    %24 = vector.load %arg8[%c0_12, %c0_13] : memref<32x4xf32, #tpu.memory_space<vmem>>, vector<32x4xf32>
    tpu.vector_store %arg8[%c0_12, %c0_13], %23 {strides = array<i32>} : memref<32x4xf32, #tpu.memory_space<vmem>>, vector<32x4xf32>,
    %25 = arith.mulf %1, %1 : vector<32x8xf32>
    %cst_14 = arith.constant dense<0.000000e+00> : vector<32xf32>
    %26 = vector.multi_reduction <add>, %25, %cst_14 [1] : vector<32x8xf32> to vector<32xf32>
    %27 = vector.shape_cast %26 : vector<32xf32> to vector<32x1xf32>
    %c0_15 = arith.constant 0 : index
    %c0_16 = arith.constant 0 : index
    %28 = vector.load %arg6[%c0_15, %c0_16] : memref<8x4xf32, #tpu.memory_space<vmem>>, vector<8x4xf32>
    %cst_17 = arith.constant dense<0.000000e+00> : vector<32x4xf32>
    %29 = tpu.matmul %1, %28, %cst_17 {dimension_numbers = #tpu.dot_dimension_numbers<[1], [0], [0], [1], [0, 0, 1, 1], [], []>} : vector<32x8xf32>, vector<8x4xf32>, vector<32x4xf32> -> vector<32x4xf32>
    %c0_18 = arith.constant 0 : index
    %c0_19 = arith.constant 0 : index
    %30 = vector.load %arg7[%c0_18, %c0_19] : memref<1x4xf32, #tpu.memory_space<vmem>>, vector<1x4xf32>
    %31 = vector.broadcast %27 : vector<32x1xf32> to vector<32x4xf32>
    %32 = vector.broadcast %30 : vector<1x4xf32> to vector<32x4xf32>
    %33 = arith.addf %31, %32 : vector<32x4xf32>
    %cst_20 = arith.constant 2.000000e+00 : f32
    %34 = vector.broadcast %cst_20 : f32 to vector<32x4xf32>
    %35 = arith.mulf %34, %29 : vector<32x4xf32>
    %36 = arith.subf %33, %35 : vector<32x4xf32>
    %cst_21 = arith.constant 0.000000e+00 : f32
    %37 = vector.broadcast %cst_21 : f32 to vector<32x4xf32>
    %38 = arith.maximumf %36, %37 : vector<32x4xf32>
    %cst_22 = arith.constant 1.000000e+00 : f32
    %39 = vector.broadcast %cst_22 : f32 to vector<32x4xf32>
    %40 = arith.divf %38, %39 : vector<32x4xf32>
    %cst_23 = arith.constant 1.000000e+00 : f32
    %41 = vector.broadcast %cst_23 : f32 to vector<32x4xf32>
    %42 = arith.addf %41, %40 : vector<32x4xf32>
    %cst_24 = arith.constant 1.000000e+00 : f32
    %43 = vector.broadcast %cst_24 : f32 to vector<32x4xf32>
    %44 = arith.divf %43, %42 : vector<32x4xf32>
    %cst_25 = arith.constant dense<0.000000e+00> : vector<32xf32>
    %45 = vector.multi_reduction <add>, %44, %cst_25 [1] : vector<32x4xf32> to vector<32xf32>
    %46 = vector.shape_cast %45 : vector<32xf32> to vector<32x1xf32>
    %47 = vector.broadcast %46 : vector<32x1xf32> to vector<32x4xf32>
    %48 = arith.divf %44, %47 : vector<32x4xf32>
    %c0_26 = arith.constant 0 : index
    %c0_27 = arith.constant 0 : index
    %49 = vector.load %arg9[%c0_26, %c0_27] : memref<32x4xf32, #tpu.memory_space<vmem>>, vector<32x4xf32>
    tpu.vector_store %arg9[%c0_26, %c0_27], %48 {strides = array<i32>} : memref<32x4xf32, #tpu.memory_space<vmem>>, vector<32x4xf32>,
    return
  }
  func.func @transform_0(%arg0: i32) -> (i32, i32) {
    %c0_i32 = arith.constant 0 : i32
    %c0_i32_0 = arith.constant 0 : i32
    return %arg0, %c0_i32 : i32, i32
  }
  func.func @transform_1(%arg0: i32) -> (i32, i32) {
    %c0_i32 = arith.constant 0 : i32
    %c0_i32_0 = arith.constant 0 : i32
    return %arg0, %c0_i32 : i32, i32
  }
  func.func @transform_2(%arg0: i32) -> (i32, i32) {
    %c0_i32 = arith.constant 0 : i32
    %c0_i32_0 = arith.constant 0 : i32
    %c0_i32_1 = arith.constant 0 : i32
    return %c0_i32, %c0_i32_0 : i32, i32
  }
  func.func @transform_3(%arg0: i32) -> (i32, i32) {
    %c0_i32 = arith.constant 0 : i32
    %c0_i32_0 = arith.constant 0 : i32
    %c0_i32_1 = arith.constant 0 : i32
    return %c0_i32, %c0_i32_0 : i32, i32
  }
  func.func @transform_4(%arg0: i32) -> (i32, i32) {
    %c0_i32 = arith.constant 0 : i32
    %c0_i32_0 = arith.constant 0 : i32
    %c0_i32_1 = arith.constant 0 : i32
    return %c0_i32, %c0_i32_0 : i32, i32
  }
  func.func @transform_5(%arg0: i32) -> (i32, i32) {
    %c0_i32 = arith.constant 0 : i32
    %c0_i32_0 = arith.constant 0 : i32
    %c0_i32_1 = arith.constant 0 : i32
    return %c0_i32, %c0_i32_0 : i32, i32
  }
  func.func @transform_6(%arg0: i32) -> (i32, i32) {
    %c0_i32 = arith.constant 0 : i32
    %c0_i32_0 = arith.constant 0 : i32
    %c0_i32_1 = arith.constant 0 : i32
    return %c0_i32, %c0_i32_0 : i32, i32
  }
  func.func @transform_7(%arg0: i32) -> (i32, i32) {
    %c0_i32 = arith.constant 0 : i32
    %c0_i32_0 = arith.constant 0 : i32
    return %arg0, %c0_i32 : i32, i32
  }
  func.func @transform_8(%arg0: i32) -> (i32, i32) {
    %c0_i32 = arith.constant 0 : i32
    %c0_i32_0 = arith.constant 0 : i32
    return %arg0, %c0_i32 : i32, i32
  }
}

module attributes {stable_mosaic.version = 11 : i64} {
  func.func @_fusion_reduce_kernel(%arg0: i32, %arg1: memref<32x8xf32, #tpu.memory_space<vmem>>, %arg2: memref<32x8xf32, #tpu.memory_space<vmem>>, %arg3: memref<8x500xbf16, #tpu.memory_space<vmem>>, %arg4: memref<8x500xbf16, #tpu.memory_space<vmem>>, %arg5: memref<1x500xf32, #tpu.memory_space<vmem>>, %arg6: memref<500x100xbf16, #tpu.memory_space<vmem>>, %arg7: memref<1x100xf32, #tpu.memory_space<vmem>>, %arg8: memref<100x1xf32, #tpu.memory_space<vmem>>, %arg9: memref<100x1xf32, #tpu.memory_space<vmem>>, %arg10: memref<1x1xf32, #tpu.memory_space<vmem>>, %arg11: memref<1x1xf32, #tpu.memory_space<vmem>>, %arg12: memref<1x1xf32, #tpu.memory_space<vmem>>) attributes {dimension_semantics = [#tpu.dimension_semantics<arbitrary>], iteration_bounds = array<i64: 1>, scalar_prefetch = 0 : i64, scratch_operands = 0 : i64, tpu.core_type = #tpu.core_type<tc>, window_params = [{transform_indices = @transform_0, window_bounds = array<i64: 32, 8>}, {transform_indices = @transform_1, window_bounds = array<i64: 32, 8>}, {pipeline_mode = #tpu.pipeline_mode<synchronous>, transform_indices = @transform_2, window_bounds = array<i64: 8, 500>}, {pipeline_mode = #tpu.pipeline_mode<synchronous>, transform_indices = @transform_3, window_bounds = array<i64: 8, 500>}, {pipeline_mode = #tpu.pipeline_mode<synchronous>, transform_indices = @transform_4, window_bounds = array<i64: 1, 500>}, {pipeline_mode = #tpu.pipeline_mode<synchronous>, transform_indices = @transform_5, window_bounds = array<i64: 500, 100>}, {pipeline_mode = #tpu.pipeline_mode<synchronous>, transform_indices = @transform_6, window_bounds = array<i64: 1, 100>}, {pipeline_mode = #tpu.pipeline_mode<synchronous>, transform_indices = @transform_7, window_bounds = array<i64: 100, 1>}, {pipeline_mode = #tpu.pipeline_mode<synchronous>, transform_indices = @transform_8, window_bounds = array<i64: 100, 1>}, {pipeline_mode = #tpu.pipeline_mode<synchronous>, transform_indices = @transform_9, window_bounds = array<i64: 1, 1>}, {pipeline_mode = #tpu.pipeline_mode<synchronous>, transform_indices = @transform_10, window_bounds = array<i64: 1, 1>}, {pipeline_mode = #tpu.pipeline_mode<synchronous>, transform_indices = @transform_11, window_bounds = array<i64: 1, 1>}]} {
    %c0_i32 = arith.constant 0 : i32
    %0 = arith.cmpi eq, %arg0, %c0_i32 : i32
    %1 = arith.extui %0 : i1 to i32
    %c0_i32_0 = arith.constant 0 : i32
    %2 = arith.cmpi ne, %1, %c0_i32_0 : i32
    scf.if %2 {
      %cst_45 = arith.constant 0.000000e+00 : f32
      %74 = vector.broadcast %cst_45 : f32 to vector<1x1xf32>
      %c0_46 = arith.constant 0 : index
      %c0_47 = arith.constant 0 : index
      %75 = vector.load %arg12[%c0_46, %c0_47] : memref<1x1xf32, #tpu.memory_space<vmem>>, vector<1x1xf32>
      tpu.vector_store %arg12[%c0_46, %c0_47], %74 {strides = array<i32>} : memref<1x1xf32, #tpu.memory_space<vmem>>, vector<1x1xf32>,
    } else {
    }
    %c0 = arith.constant 0 : index
    %c0_1 = arith.constant 0 : index
    %3 = vector.load %arg1[%c0, %c0_1] : memref<32x8xf32, #tpu.memory_space<vmem>>, vector<32x8xf32>
    %4 = arith.truncf %3 : vector<32x8xf32> to vector<32x8xbf16>
    %c0_2 = arith.constant 0 : index
    %c0_3 = arith.constant 0 : index
    %5 = vector.load %arg2[%c0_2, %c0_3] : memref<32x8xf32, #tpu.memory_space<vmem>>, vector<32x8xf32>
    %6 = arith.truncf %5 : vector<32x8xf32> to vector<32x8xbf16>
    %c0_4 = arith.constant 0 : index
    %c0_5 = arith.constant 0 : index
    %7 = vector.load %arg3[%c0_4, %c0_5] : memref<8x500xbf16, #tpu.memory_space<vmem>>, vector<8x500xbf16>
    %cst = arith.constant dense<0.000000e+00> : vector<32x500xf32>
    %8 = tpu.matmul %4, %7, %cst {dimension_numbers = #tpu.dot_dimension_numbers<[1], [0], [0], [1], [0, 0, 1, 1], [], []>} : vector<32x8xbf16>, vector<8x500xbf16>, vector<32x500xf32> -> vector<32x500xf32>
    %c0_6 = arith.constant 0 : index
    %c0_7 = arith.constant 0 : index
    %9 = vector.load %arg4[%c0_6, %c0_7] : memref<8x500xbf16, #tpu.memory_space<vmem>>, vector<8x500xbf16>
    %cst_8 = arith.constant dense<0.000000e+00> : vector<32x500xf32>
    %10 = tpu.matmul %6, %9, %cst_8 {dimension_numbers = #tpu.dot_dimension_numbers<[1], [0], [0], [1], [0, 0, 1, 1], [], []>} : vector<32x8xbf16>, vector<8x500xbf16>, vector<32x500xf32> -> vector<32x500xf32>
    %11 = arith.addf %8, %10 : vector<32x500xf32>
    %c0_9 = arith.constant 0 : index
    %c0_10 = arith.constant 0 : index
    %12 = vector.load %arg5[%c0_9, %c0_10] : memref<1x500xf32, #tpu.memory_space<vmem>>, vector<1x500xf32>
    %13 = vector.broadcast %12 : vector<1x500xf32> to vector<32x500xf32>
    %14 = arith.addf %11, %13 : vector<32x500xf32>
    %cst_11 = arith.constant 0.000000e+00 : f32
    %15 = vector.broadcast %cst_11 : f32 to vector<32x500xf32>
    %16 = arith.maximumf %14, %15 : vector<32x500xf32>
    %17 = arith.truncf %16 : vector<32x500xf32> to vector<32x500xbf16>
    %c0_12 = arith.constant 0 : index
    %c0_13 = arith.constant 0 : index
    %18 = vector.load %arg6[%c0_12, %c0_13] : memref<500x100xbf16, #tpu.memory_space<vmem>>, vector<500x100xbf16>
    %cst_14 = arith.constant dense<0.000000e+00> : vector<32x100xf32>
    %19 = tpu.matmul %17, %18, %cst_14 {dimension_numbers = #tpu.dot_dimension_numbers<[1], [0], [0], [1], [0, 0, 1, 1], [], []>} : vector<32x500xbf16>, vector<500x100xbf16>, vector<32x100xf32> -> vector<32x100xf32>
    %c0_15 = arith.constant 0 : index
    %c0_16 = arith.constant 0 : index
    %20 = vector.load %arg7[%c0_15, %c0_16] : memref<1x100xf32, #tpu.memory_space<vmem>>, vector<1x100xf32>
    %21 = vector.broadcast %20 : vector<1x100xf32> to vector<32x100xf32>
    %22 = arith.addf %19, %21 : vector<32x100xf32>
    %cst_17 = arith.constant 0.000000e+00 : f32
    %23 = vector.broadcast %cst_17 : f32 to vector<32x100xf32>
    %24 = arith.maximumf %22, %23 : vector<32x100xf32>
    %c0_18 = arith.constant 0 : index
    %c0_19 = arith.constant 0 : index
    %25 = vector.load %arg8[%c0_18, %c0_19] : memref<100x1xf32, #tpu.memory_space<vmem>>, vector<100x1xf32>
    %cst_20 = arith.constant dense<0.000000e+00> : vector<32x1xf32>
    %26 = tpu.matmul %24, %25, %cst_20 {dimension_numbers = #tpu.dot_dimension_numbers<[1], [0], [0], [1], [0, 0, 1, 1], [], []>} : vector<32x100xf32>, vector<100x1xf32>, vector<32x1xf32> -> vector<32x1xf32>
    %c0_21 = arith.constant 0 : index
    %c0_22 = arith.constant 0 : index
    %27 = vector.load %arg10[%c0_21, %c0_22] : memref<1x1xf32, #tpu.memory_space<vmem>>, vector<1x1xf32>
    %28 = vector.broadcast %27 : vector<1x1xf32> to vector<32x1xf32>
    %29 = arith.addf %26, %28 : vector<32x1xf32>
    %c0_23 = arith.constant 0 : index
    %c0_24 = arith.constant 0 : index
    %30 = vector.load %arg9[%c0_23, %c0_24] : memref<100x1xf32, #tpu.memory_space<vmem>>, vector<100x1xf32>
    %cst_25 = arith.constant dense<0.000000e+00> : vector<32x1xf32>
    %31 = tpu.matmul %24, %30, %cst_25 {dimension_numbers = #tpu.dot_dimension_numbers<[1], [0], [0], [1], [0, 0, 1, 1], [], []>} : vector<32x100xf32>, vector<100x1xf32>, vector<32x1xf32> -> vector<32x1xf32>
    %c0_26 = arith.constant 0 : index
    %c0_27 = arith.constant 0 : index
    %32 = vector.load %arg11[%c0_26, %c0_27] : memref<1x1xf32, #tpu.memory_space<vmem>>, vector<1x1xf32>
    %33 = vector.broadcast %32 : vector<1x1xf32> to vector<32x1xf32>
    %34 = arith.addf %31, %33 : vector<32x1xf32>
    %cst_28 = arith.constant 0.000000e+00 : f32
    %35 = vector.broadcast %cst_28 : f32 to vector<32x1xf32>
    %36 = arith.subf %35, %29 : vector<32x1xf32>
    %37 = math.exp %36 : vector<32x1xf32>
    %cst_29 = arith.constant 1.000000e+00 : f32
    %38 = vector.broadcast %cst_29 : f32 to vector<32x1xf32>
    %39 = arith.addf %38, %37 : vector<32x1xf32>
    %cst_30 = arith.constant 1.000000e+00 : f32
    %40 = vector.broadcast %cst_30 : f32 to vector<32x1xf32>
    %41 = arith.divf %40, %39 : vector<32x1xf32>
    %cst_31 = arith.constant 0.000000e+00 : f32
    %42 = vector.broadcast %cst_31 : f32 to vector<32x1xf32>
    %43 = arith.subf %42, %34 : vector<32x1xf32>
    %44 = math.exp %43 : vector<32x1xf32>
    %cst_32 = arith.constant 1.000000e+00 : f32
    %45 = vector.broadcast %cst_32 : f32 to vector<32x1xf32>
    %46 = arith.addf %45, %44 : vector<32x1xf32>
    %cst_33 = arith.constant 1.000000e+00 : f32
    %47 = vector.broadcast %cst_33 : f32 to vector<32x1xf32>
    %48 = arith.divf %47, %46 : vector<32x1xf32>
    %49 = arith.subf %41, %48 : vector<32x1xf32>
    %cst_34 = arith.constant 0.000000e+00 : f32
    %50 = vector.broadcast %cst_34 : f32 to vector<32x1xf32>
    %51 = arith.subf %50, %49 : vector<32x1xf32>
    %cst_35 = arith.constant 1.000000e-01 : f32
    %52 = vector.broadcast %cst_35 : f32 to vector<32x1xf32>
    %53 = arith.mulf %51, %52 : vector<32x1xf32>
    %54 = math.exp %53 : vector<32x1xf32>
    %cst_36 = arith.constant 1.000000e+00 : f32
    %55 = vector.broadcast %cst_36 : f32 to vector<32x1xf32>
    %56 = arith.addf %55, %54 : vector<32x1xf32>
    %cst_37 = arith.constant 1.000000e+00 : f32
    %57 = vector.broadcast %cst_37 : f32 to vector<32x1xf32>
    %58 = arith.divf %57, %56 : vector<32x1xf32>
    %c32_i32 = arith.constant 32 : i32
    %59 = arith.muli %arg0, %c32_i32 : i32
    %60 = tpu.iota {dimensions = array<i32: 0>} : vector<32x1xi32>
    %61 = vector.broadcast %59 : i32 to vector<32x1xi32>
    %62 = arith.addi %61, %60 : vector<32x1xi32>
    %c8_i32 = arith.constant 8 : i32
    %63 = vector.broadcast %c8_i32 : i32 to vector<32x1xi32>
    %64 = arith.cmpi slt, %62, %63 : vector<32x1xi32>
    %cst_38 = arith.constant 0.000000e+00 : f32
    %65 = vector.broadcast %cst_38 : f32 to vector<32x1xf32>
    %66 = arith.select %64, %58, %65 : vector<32x1xi1>, vector<32x1xf32>
    %c0_39 = arith.constant 0 : index
    %c0_40 = arith.constant 0 : index
    %67 = vector.load %arg12[%c0_39, %c0_40] : memref<1x1xf32, #tpu.memory_space<vmem>>, vector<1x1xf32>
    %cst_41 = arith.constant dense<0.000000e+00> : vector<1xf32>
    %68 = vector.multi_reduction <add>, %66, %cst_41 [0] : vector<32x1xf32> to vector<1xf32>
    %69 = vector.shape_cast %68 : vector<1xf32> to vector<1x1xf32>
    %cst_42 = arith.constant 1.250000e-01 : f32
    %70 = vector.broadcast %cst_42 : f32 to vector<1x1xf32>
    %71 = arith.mulf %69, %70 : vector<1x1xf32>
    %72 = arith.addf %67, %71 : vector<1x1xf32>
    %c0_43 = arith.constant 0 : index
    %c0_44 = arith.constant 0 : index
    %73 = vector.load %arg12[%c0_43, %c0_44] : memref<1x1xf32, #tpu.memory_space<vmem>>, vector<1x1xf32>
    tpu.vector_store %arg12[%c0_43, %c0_44], %72 {strides = array<i32>} : memref<1x1xf32, #tpu.memory_space<vmem>>, vector<1x1xf32>,
    return
  }
  func.func @transform_0(%arg0: i32) -> (i32, i32) {
    %c0_i32 = arith.constant 0 : i32
    %c0_i32_0 = arith.constant 0 : i32
    return %arg0, %c0_i32 : i32, i32
  }
  func.func @transform_1(%arg0: i32) -> (i32, i32) {
    %c0_i32 = arith.constant 0 : i32
    %c0_i32_0 = arith.constant 0 : i32
    return %arg0, %c0_i32 : i32, i32
  }
  func.func @transform_2(%arg0: i32) -> (i32, i32) {
    %c0_i32 = arith.constant 0 : i32
    %c0_i32_0 = arith.constant 0 : i32
    %c0_i32_1 = arith.constant 0 : i32
    return %c0_i32, %c0_i32_0 : i32, i32
  }
  func.func @transform_3(%arg0: i32) -> (i32, i32) {
    %c0_i32 = arith.constant 0 : i32
    %c0_i32_0 = arith.constant 0 : i32
    %c0_i32_1 = arith.constant 0 : i32
    return %c0_i32, %c0_i32_0 : i32, i32
  }
  func.func @transform_4(%arg0: i32) -> (i32, i32) {
    %c0_i32 = arith.constant 0 : i32
    %c0_i32_0 = arith.constant 0 : i32
    %c0_i32_1 = arith.constant 0 : i32
    return %c0_i32, %c0_i32_0 : i32, i32
  }
  func.func @transform_5(%arg0: i32) -> (i32, i32) {
    %c0_i32 = arith.constant 0 : i32
    %c0_i32_0 = arith.constant 0 : i32
    %c0_i32_1 = arith.constant 0 : i32
    return %c0_i32, %c0_i32_0 : i32, i32
  }
  func.func @transform_6(%arg0: i32) -> (i32, i32) {
    %c0_i32 = arith.constant 0 : i32
    %c0_i32_0 = arith.constant 0 : i32
    %c0_i32_1 = arith.constant 0 : i32
    return %c0_i32, %c0_i32_0 : i32, i32
  }
  func.func @transform_7(%arg0: i32) -> (i32, i32) {
    %c0_i32 = arith.constant 0 : i32
    %c0_i32_0 = arith.constant 0 : i32
    %c0_i32_1 = arith.constant 0 : i32
    return %c0_i32, %c0_i32_0 : i32, i32
  }
  func.func @transform_8(%arg0: i32) -> (i32, i32) {
    %c0_i32 = arith.constant 0 : i32
    %c0_i32_0 = arith.constant 0 : i32
    %c0_i32_1 = arith.constant 0 : i32
    return %c0_i32, %c0_i32_0 : i32, i32
  }
  func.func @transform_9(%arg0: i32) -> (i32, i32) {
    %c0_i32 = arith.constant 0 : i32
    %c0_i32_0 = arith.constant 0 : i32
    %c0_i32_1 = arith.constant 0 : i32
    return %c0_i32, %c0_i32_0 : i32, i32
  }
  func.func @transform_10(%arg0: i32) -> (i32, i32) {
    %c0_i32 = arith.constant 0 : i32
    %c0_i32_0 = arith.constant 0 : i32
    %c0_i32_1 = arith.constant 0 : i32
    return %c0_i32, %c0_i32_0 : i32, i32
  }
  func.func @transform_11(%arg0: i32) -> (i32, i32) {
    %c0_i32 = arith.constant 0 : i32
    %c0_i32_0 = arith.constant 0 : i32
    %c0_i32_1 = arith.constant 0 : i32
    return %c0_i32, %c0_i32_0 : i32, i32
  }
}

</mosaic_0001>

<bundles_post_ra>
// kernel: afc_forward.11
= control target key start
LH: loop header
LB: loop body
LE: loop exit
PB: predicated region body
PF: predicated region fallthrough
CT: control target
= control target key end

     0   :  { %vm67_vm0 = vcmask 261120   ;;  %vm127_vm1 = vcmask 130048   ;;  %vm370_vm2 = vcmask 125952   ;;  %vm284_vm3 = vcmask 64512   ;;  %s787_s1 = inlined_call_operand.vmem [shape: bf16[32,16], index: 1, kind: input, shape index: {}]   ;;  %s788_s0 = inlined_call_operand.vmem [shape: f32[32,32], index: 0, kind: input, shape index: {}]   ;;  %s789_s3 = inlined_call_operand.vmem [shape: bf16[16,16], index: 3, kind: input, shape index: {}]   ;;  %s790_s7 = inlined_call_operand.vmem [shape: bf16[32,16], index: 7, kind: input, shape index: {}]   ;;  %s791_s2 = inlined_call_operand.vmem [shape: f32[1,16], index: 2, kind: input, shape index: {}]   ;;  %s792_s9 = inlined_call_operand.vmem [shape: f32[32,16], index: 9, kind: output, shape index: {0}]   ;;  %s793_s5 = inlined_call_operand.vmem [shape: bf16[16,8], index: 5, kind: input, shape index: {}]   ;;  %s794_s12 = inlined_call_operand.vmem [shape: bf16[32,16], index: 12, kind: output, shape index: {3}]   ;;  %s795_s8 = inlined_call_operand.vmem [shape: f32[16,2], index: 8, kind: input, shape index: {}]   ;;  %s796_s4 = inlined_call_operand.vmem [shape: f32[1,16], index: 4, kind: input, shape index: {}]   ;;  %s797_s10 = inlined_call_operand.vmem [shape: f32[32,16], index: 10, kind: output, shape index: {1}]   ;;  %s798_s6 = inlined_call_operand.vmem [shape: f32[1,8], index: 6, kind: input, shape index: {}]   ;;  %s799_s11 = inlined_call_operand.vmem [shape: f32[32,8], index: 11, kind: output, shape index: {2}]   ;;  %s800_s13 = inlined_call_operand.vmem [shape: f32[32,2], index: 13, kind: output, shape index: {4}]  }
   0x1   :  { %v586_v0 = vld [vmem:[%s787_s1 + $0x8] sm:$0xff]   ;;  %v587_v1 = vld [vmem:[%s787_s1] sm:$0xff]   ;;  %v40_v5 = vld [vmem:[%s788_s0 + $0x10] sm:$0xff]  ;;  %vm474_vm4 = vcmask 15360  }
   0x2   :  { %548 = vmatprep.subr.bf16.mxu0 %v586_v0  ;;  %v38_v2 = vld [vmem:[%s788_s0] sm:$0xff]  ;;  %v39_v3 = vld [vmem:[%s788_s0 + $0x8] sm:$0xff]  ;;  %v41_v6 = vld [vmem:[%s788_s0 + $0x18] sm:$0xff] }
   0x3   :  { %549 = vmatpush3.bf16.msra.mxu0 %v586_v0  ;;  %v42_v4 = vpack.c.bf16 %v39_v3, %v38_v2  ;;  %v43_v7 = vpack.c.bf16 %v41_v6, %v40_v5  ;;  %v588_v8 = vld [vmem:[%s789_s3] sm:$0xff]   ;;  %v589_v9 = vld [vmem:[%s790_s7 + $0x8] sm:$0xff]  }
   0x4   :  { %550 = vmatprep.subr.bf16.mxu0 %v587_v1  ;;  %556 = vmatprep.subr.bf16.mxu1 %v588_v8  ;;  %v590_v10 = vld [vmem:[%s790_s7] sm:$0xff]   ;;  %v376_v33 = vld [vmem:[%s795_s8 + $0x8] sm:$0xff] }
   0x5   :  { %552 = vmatprep.mubr.msk.bf16.mxu0 %vm67_vm0, %v42_v4  ;;  %557 = vmatpush3.bf16.msra.mxu1 %v588_v8  ;;  %v499_v11 = vld [vmem:[%s791_s2] ss:$0 sm:$0xff] }
   0x6   :  { %v591_v26 = vld [vmem:[%s793_s5] sm:$0xff]  }
   0x7   :  { %551 = vmatpush3.bf16.msra.mxu0 %v587_v1  ;;  %562 = vmatprep.subr.bf16.mxu1 %v591_v26  ;;  %v504_v36 = vld [vmem:[%s796_s4] ss:$0 sm:$0xff] }
   0x8   :  { %568 = vmatprep.subr.bf16.mxu0 %v589_v9  ;;  %v375_v51 = vld [vmem:[%s795_s8] sm:$0xff] }
   0x9   :  { %v508_v52 = vld [vmem:[%s798_s6] ss:$0 sm:$0xff] }
   0xa   :  { %553 = vmatmul.mubr.msk.bf16.vlgmr.msra.gmra.mxu0 %vm67_vm0, %v43_v7 }
   0xb   :  { %572 = vmatprep.mubr.msk.bf16.mxu0 %vm67_vm0, %v42_v4  ;;  %569 = vmatpush3.bf16.msra.mxu0 %v589_v9 }
   0xc   :  { %570 = vmatprep.subr.bf16.mxu0 %v590_v10 }
   0xf   :  { %571 = vmatpush3.bf16.msra.mxu0 %v590_v10 }
  0x12   :  { %573 = vmatmul.mubr.msk.bf16.vlgmr.msra.gmra.mxu0 %vm67_vm0, %v43_v7 }
  0xca   :  { %v554_v12 = vpop.f32.mrf.mxu0 }
  0xcb   :  { %v117_v13 = vadd.f32 %v554_v12, %v499_v11 }
  0xcc   :  { %v108_v14 = vpop.f32.mrf.mxu0 }
  0xcd   :  { %v125_v15 = vmax.f32 %v117_v13, 0.0  ;;  %v109_v16 = vadd.f32 %v499_v11, %v108_v14 }
  0xce   :  { %v555_v17 = vpop.f32.mrf.mxu0 }
  0xcf   :  { %130 = vst.msk [vmem:[%s792_s9 + $0x10] sm:$0xff] %vm127_vm1, %v125_v15  ;;  %v123_v18 = vmax.f32 %v109_v16, 0.0  ;;  %v120_v19 = vadd.f32 %v555_v17, %v499_v11 }
  0xd0   :  { %v111_v20 = vpop.f32.mrf.mxu0 }
  0xd1   :  { %128 = vst.msk [vmem:[%s792_s9] sm:$0xff] %vm127_vm1, %v123_v18  ;;  %v126_v21 = vmax.f32 %v120_v19, 0.0  ;;  %v112_v22 = vadd.f32 %v499_v11, %v111_v20 }
  0xd2   :  { %v574_v27 = vpop.f32.mrf.mxu0 }
  0xd3   :  { %131 = vst.msk [vmem:[%s792_s9 + $0x18] sm:$0xff] %vm127_vm1, %v126_v21  ;;  %v124_v23 = vmax.f32 %v112_v22, 0.0  ;;  %v133_v25 = vpack.c.bf16 %v126_v21, %v125_v15  ;;  %v526_v28 = vpack.c.bf16 %v574_v27, %v574_v27 }
  0xd4   :  { %v339_v29 = vpop.f32.mrf.mxu0 }
  0xd5   :  { %129 = vst.msk [vmem:[%s792_s9 + $0x8] sm:$0xff] %vm127_vm1, %v124_v23  ;;  %v132_v24 = vpack.c.bf16 %v124_v23, %v123_v18  ;;  %v524_v30 = vpack.c.bf16 %v339_v29, %v339_v29 }
  0xd6   :  { %373 = vst.msk [vmem:[%s794_s12 + $0x8] sm:$0xf] %vm370_vm2, %v526_v28  ;;  %v575_v31 = vpop.f32.mrf.mxu0 }
  0xd7   :  { %558 = vmatprep.mubr.msk.bf16.mxu1 %vm127_vm1, %v132_v24  ;;  %371 = vst.msk [vmem:[%s794_s12] sm:$0xf] %vm370_vm2, %v524_v30  ;;  %v527_v32 = vpack.c.bf16 %v575_v31, %v575_v31 }
  0xd8   :  { %559 = vmatmul.mubr.msk.bf16.vlgmr.msra.gmra.mxu1 %vm127_vm1, %v133_v25  ;;  %v342_v34 = vpop.f32.mrf.mxu0 }
  0xd9   :  { %563 = vmatpush3.bf16.msra.mxu1 %v591_v26  ;;  %374 = vst.msk [vmem:[%s794_s12 + $0xc] sm:$0xf] %vm370_vm2, %v527_v32  ;;  %v525_v35 = vpack.c.bf16 %v342_v34, %v342_v34 }
  0xda   :  { %576 = vmatprep.subr.mxu1 %v376_v33 }
  0xdb   :  { %372 = vst.msk [vmem:[%s794_s12 + $0x4] sm:$0xf] %vm370_vm2, %v525_v35 }
 0x198   :  { %v560_v37 = vpop.f32.mrf.mxu1 }
 0x199   :  { %v198_v38 = vadd.f32 %v560_v37, %v504_v36 }
 0x19a   :  { %v189_v39 = vpop.f32.mrf.mxu1 }
 0x19b   :  { %v206_v40 = vmax.f32 %v198_v38, 0.0  ;;  %v190_v41 = vadd.f32 %v504_v36, %v189_v39 }
 0x19c   :  { %v561_v42 = vpop.f32.mrf.mxu1 }
 0x19d   :  { %210 = vst.msk [vmem:[%s797_s10 + $0x10] sm:$0xff] %vm127_vm1, %v206_v40  ;;  %v204_v43 = vmax.f32 %v190_v41, 0.0  ;;  %v201_v44 = vadd.f32 %v561_v42, %v504_v36 }
 0x19e   :  { %v192_v45 = vpop.f32.mrf.mxu1 }
 0x19f   :  { %208 = vst.msk [vmem:[%s797_s10] sm:$0xff] %vm127_vm1, %v204_v43  ;;  %v207_v46 = vmax.f32 %v201_v44, 0.0  ;;  %v193_v47 = vadd.f32 %v504_v36, %v192_v45 }
 0x1a1   :  { %211 = vst.msk [vmem:[%s797_s10 + $0x18] sm:$0xff] %vm127_vm1, %v207_v46  ;;  %v205_v48 = vmax.f32 %v193_v47, 0.0  ;;  %v213_v50 = vpack.c.bf16 %v207_v46, %v206_v40 }
 0x1a3   :  { %209 = vst.msk [vmem:[%s797_s10 + $0x8] sm:$0xff] %vm127_vm1, %v205_v48  ;;  %v212_v49 = vpack.c.bf16 %v205_v48, %v204_v43 }
 0x1a5   :  { %564 = vmatprep.mubr.msk.bf16.mxu1 %vm127_vm1, %v212_v49 }
 0x1a6   :  { %565 = vmatmul.mubr.msk.bf16.vlgmr.msra.gmra.mxu1 %vm127_vm1, %v213_v50 }
 0x1a7   :  { %577 = vmatpush3.msra.mxu1 %v376_v33  ;;  %580 = vmatprep.mubr.msk.f32.mxu1 %vm127_vm1, %v339_v29 }
 0x1a8   :  { %578 = vmatprep.subr.mxu1 %v375_v51 }
 0x1a9   :  { %579 = vmatpush3.msra.mxu1 %v375_v51 }
 0x1ae   :  { %581 = vmatmul.mubr.msk.f32.vlgmr.msra.gmra.mxu1 %vm127_vm1, %v342_v34 }
 0x1af   :  { %583 = vmatprep.mubr.msk.f32.mxu1 %vm127_vm1, %v574_v27 }
 0x1b2   :  { %584 = vmatmul.mubr.msk.f32.gmra.mxu1 %vm127_vm1, %v575_v31 }
 0x266   :  { %v566_v53 = vpop.f32.mrf.mxu1 }
 0x267   :  { %v278_v54 = vadd.f32 %v566_v53, %v508_v52 }
 0x268   :  { %v269_v55 = vpop.f32.mrf.mxu1 }
 0x269   :  { %287 = vst.msk [vmem:[%s799_s11 + $0x10] sm:$0xff] %vm284_vm3, %v278_v54  ;;  %v270_v56 = vadd.f32 %v508_v52, %v269_v55 }
 0x26a   :  { %v567_v57 = vpop.f32.mrf.mxu1 }
 0x26b   :  { %285 = vst.msk [vmem:[%s799_s11] sm:$0xff] %vm284_vm3, %v270_v56  ;;  %v281_v58 = vadd.f32 %v567_v57, %v508_v52 }
 0x26c   :  { %v272_v59 = vpop.f32.mrf.mxu1 }
 0x26d   :  { %288 = vst.msk [vmem:[%s799_s11 + $0x18] sm:$0xff] %vm284_vm3, %v281_v58  ;;  %v273_v60 = vadd.f32 %v508_v52, %v272_v59 }
 0x26e   :  { %v582_v61 = vpop.f32.mrf.mxu1 }
 0x26f   :  { %286 = vst.msk [vmem:[%s799_s11 + $0x8] sm:$0xff] %vm284_vm3, %v273_v60 }
 0x270   :  { %476 = vst.msk [vmem:[%s800_s13 + $0x8] sm:$0xff] %vm474_vm4, %v582_v61  ;;  %v455_v62 = vpop.f32.mrf.mxu1 }
 0x271   :  { %475 = vst.msk [vmem:[%s800_s13] sm:$0xff] %vm474_vm4, %v455_v62 }
 0x272   :  { %v585_v63 = vpop.f32.mrf.mxu1 }
 0x273   :  { %478 = vst.msk [vmem:[%s800_s13 + $0x18] sm:$0xff] %vm474_vm4, %v585_v63 }
 0x274   :  { %v465_v0 = vpop.f32.mrf.mxu1 }
 0x275   :  { %477 = vst.msk [vmem:[%s800_s13 + $0x10] sm:$0xff] %vm474_vm4, %v465_v0 }

// kernel: afc_forward.12
= control target key start
LH: loop header
LB: loop body
LE: loop exit
PB: predicated region body
PF: predicated region fallthrough
CT: control target
= control target key end

     0   :  { %vm48_vm0 = vcmask 1043456   ;;  %vm41_vm1 = vcmask 64512   ;;  %vm122_vm2 = vcmask 130048   ;;  %vm254_vm3 = vcmask 261120   ;;  %s390_s1 = inlined_call_operand.vmem [shape: bf16[8,16], index: 1, kind: input, shape index: {}]   ;;  %s391_s0 = inlined_call_operand.vmem [shape: f32[32,8], index: 0, kind: input, shape index: {}]   ;;  %s392_s3 = inlined_call_operand.vmem [shape: bf16[16,16], index: 3, kind: input, shape index: {}]   ;;  %s393_s2 = inlined_call_operand.vmem [shape: f32[1,16], index: 2, kind: input, shape index: {}]   ;;  %s394_s5 = inlined_call_operand.vmem [shape: bf16[16,32], index: 5, kind: input, shape index: {}]   ;;  %s395_s4 = inlined_call_operand.vmem [shape: f32[1,16], index: 4, kind: input, shape index: {}]   ;;  %s396_s6 = inlined_call_operand.vmem [shape: f32[1,32], index: 6, kind: input, shape index: {}]   ;;  %s397_s7 = inlined_call_operand.vmem [shape: f32[32,32], index: 7, kind: output, shape index: {}]  }
   0x1   :  { %v33_v0 = vld [vmem:[%s390_s1] sm:$0xf]  ;;  %v28_v2 = vld [vmem:[%s391_s0 + $0x8] sm:$0xff]  ;;  %v29_v5 = vld [vmem:[%s391_s0 + $0x10] sm:$0xff] }
   0x2   :  { %v27_v1 = vld [vmem:[%s391_s0] sm:$0xff]  ;;  %301 = vmatprep.subr.msk.bf16.mxu0 %vm48_vm0, %v33_v0  ;;  %v50_v3 = vsel %vm48_vm0, %v33_v0, 0  ;;  %v30_v6 = vld [vmem:[%s391_s0 + $0x18] sm:$0xff] }
   0x3   :  { %v31_v4 = vpack.c.bf16 %v28_v2, %v27_v1  ;;  %284 = vmatpush3.bf16.msra.mxu0 %v50_v3  ;;  %v32_v7 = vpack.c.bf16 %v30_v6, %v29_v5  ;;  %v302_v8 = vld [vmem:[%s392_s3] sm:$0xff]  }
   0x4   :  { %289 = vmatprep.subr.bf16.mxu1 %v302_v8  ;;  %v263_v11 = vld [vmem:[%s393_s2] ss:$0 sm:$0xff] }
   0x5   :  { %285 = vmatprep.mubr.msk.bf16.mxu0 %vm41_vm1, %v31_v4  ;;  %290 = vmatpush3.bf16.msra.mxu1 %v302_v8  ;;  %v303_v24 = vld [vmem:[%s394_s5] sm:$0xff]  }
   0x6   :  { %286 = vmatmul.mubr.msk.bf16.vlgmr.msra.gmra.mxu0 %vm41_vm1, %v32_v7  ;;  %295 = vmatprep.subr.bf16.mxu0 %v303_v24  ;;  %v266_v27 = vld [vmem:[%s395_s4] ss:$0 sm:$0xff] }
   0x7   :  { %296 = vmatpush3.bf16.msra.mxu0 %v303_v24  ;;  %v270_v40 = vld [vmem:[%s396_s6] ss:$0 sm:$0xff] }
  0xc6   :  { %v287_v9 = vpop.f32.mrf.mxu0 }
  0xc7   :  { %v95_v15 = vadd.f32 %v287_v9, %v263_v11 }
  0xc8   :  { %v86_v10 = vpop.f32.mrf.mxu0 }
  0xc9   :  { %v87_v13 = vadd.f32 %v263_v11, %v86_v10  ;;  %v103_v21 = vmax.f32 %v95_v15, 0.0 }
  0xca   :  { %v288_v12 = vpop.f32.mrf.mxu0 }
  0xcb   :  { %v98_v14 = vadd.f32 %v288_v12, %v263_v11  ;;  %v101_v19 = vmax.f32 %v87_v13, 0.0 }
  0xcc   :  { %v89_v16 = vpop.f32.mrf.mxu0 }
  0xcd   :  { %v90_v17 = vadd.f32 %v263_v11, %v89_v16  ;;  %v104_v18 = vmax.f32 %v98_v14, 0.0 }
  0xcf   :  { %v102_v20 = vmax.f32 %v90_v17, 0.0  ;;  %v106_v23 = vpack.c.bf16 %v104_v18, %v103_v21 }
  0xd1   :  { %v105_v22 = vpack.c.bf16 %v102_v20, %v101_v19 }
  0xd3   :  { %291 = vmatprep.mubr.msk.bf16.mxu1 %vm122_vm2, %v105_v22 }
  0xd4   :  { %292 = vmatmul.mubr.msk.bf16.vlgmr.msra.gmra.mxu1 %vm122_vm2, %v106_v23 }
 0x194   :  { %v293_v25 = vpop.f32.mrf.mxu1 }
 0x195   :  { %v172_v31 = vadd.f32 %v293_v25, %v266_v27 }
 0x196   :  { %v163_v26 = vpop.f32.mrf.mxu1 }
 0x197   :  { %v164_v29 = vadd.f32 %v266_v27, %v163_v26  ;;  %v180_v37 = vmax.f32 %v172_v31, 0.0 }
 0x198   :  { %v294_v28 = vpop.f32.mrf.mxu1 }
 0x199   :  { %v175_v30 = vadd.f32 %v294_v28, %v266_v27  ;;  %v178_v35 = vmax.f32 %v164_v29, 0.0 }
 0x19a   :  { %v166_v32 = vpop.f32.mrf.mxu1 }
 0x19b   :  { %v167_v33 = vadd.f32 %v266_v27, %v166_v32  ;;  %v181_v34 = vmax.f32 %v175_v30, 0.0 }
 0x19d   :  { %v179_v36 = vmax.f32 %v167_v33, 0.0  ;;  %v183_v39 = vpack.c.bf16 %v181_v34, %v180_v37 }
 0x19f   :  { %v182_v38 = vpack.c.bf16 %v179_v36, %v178_v35 }
 0x1a1   :  { %297 = vmatprep.mubr.msk.bf16.mxu0 %vm122_vm2, %v182_v38 }
 0x1a2   :  { %298 = vmatmul.mubr.msk.bf16.vlgmr.msra.gmra.mxu0 %vm122_vm2, %v183_v39 }
 0x262   :  { %v299_v41 = vpop.f32.mrf.mxu0 }
 0x263   :  { %v248_v42 = vadd.f32 %v299_v41, %v270_v40 }
 0x264   :  { %v239_v43 = vpop.f32.mrf.mxu0 }
 0x265   :  { %257 = vst.msk [vmem:[%s397_s7 + $0x10] sm:$0xff] %vm254_vm3, %v248_v42  ;;  %v240_v44 = vadd.f32 %v270_v40, %v239_v43 }
 0x266   :  { %v300_v45 = vpop.f32.mrf.mxu0 }
 0x267   :  { %255 = vst.msk [vmem:[%s397_s7] sm:$0xff] %vm254_vm3, %v240_v44  ;;  %v251_v46 = vadd.f32 %v300_v45, %v270_v40 }
 0x268   :  { %v242_v47 = vpop.f32.mrf.mxu0 }
 0x269   :  { %258 = vst.msk [vmem:[%s397_s7 + $0x18] sm:$0xff] %vm254_vm3, %v251_v46  ;;  %v243_v48 = vadd.f32 %v270_v40, %v242_v47 }
 0x26b   :  { %256 = vst.msk [vmem:[%s397_s7 + $0x8] sm:$0xff] %vm254_vm3, %v243_v48 }

// kernel: afc_forward.13
= control target key start
LH: loop header
LB: loop body
LE: loop exit
PB: predicated region body
PF: predicated region fallthrough
CT: control target
= control target key end

     0   :  { %vm124_vm0 = vcmask 7168   ;;  %vm133_vm1 = vcmask 130048   ;;  %v582_v0 = vmov -9e+15   ;;  %v583_v1 = vmov 0.0   ;;  %s748_s0 = inlined_call_operand.<no memory space> [shape: s32[1,1], index: 0, kind: input, shape index: {}]   ;;  %s749_s1 = inlined_call_operand.<no memory space> [shape: s32[1], index: 1, kind: input, shape index: {}]   ;;  %s750_s2 = inlined_call_operand.vmem [shape: f32[32,1], index: 2, kind: input, shape index: {}]   ;;  %s751_s6 = inlined_call_operand.vmem [shape: f32[32,16], index: 6, kind: output, shape index: {}]   ;;  %s752_s3 = inlined_call_operand.vmem [shape: f32[1,32], index: 3, kind: input, shape index: {}]   ;;  %s753_s5 = inlined_call_operand.vmem [shape: s8[32,32], index: 5, kind: input, shape index: {}]   ;;  %s754_s4 = inlined_call_operand.vmem [shape: bf16[32,16], index: 4, kind: input, shape index: {}]  }
   0x1   :  { %p86_p0 = scmp.lt.s32.totalorder %s748_s0, 0  ;;  %s514_s25 = sshll.u32 %s748_s0, 2  ;;  %125 = vst.msk [vmem:[#allocation2] sm:$0xff] %vm124_vm0, %v582_v0  ;;  %126 = vst.msk [vmem:[#allocation2 + $0x8] sm:$0xff] %vm124_vm0, %v582_v0 }
   0x2   :  { %127 = vst.msk [vmem:[#allocation2 + $0x10] sm:$0xff] %vm124_vm0, %v582_v0  ;;  %128 = vst.msk [vmem:[#allocation2 + $0x18] sm:$0xff] %vm124_vm0, %v582_v0  ;;  %p98_p1 = scmp.lt.s32.totalorder %s514_s25, 3  ;;  %p518_p2 = scmp.le.s32.totalorder %s749_s1, 0 }
   0x3   :  { %129 = vst.msk [vmem:[#allocation3] sm:$0xff] %vm124_vm0, %v583_v1  ;;  %130 = vst.msk [vmem:[#allocation3 + $0x8] sm:$0xff] %vm124_vm0, %v583_v1  ;;  %s756_s0 = smov (!%p86_p0, %s748_s0), 0 }
   0x4   :  { %131 = vst.msk [vmem:[#allocation3 + $0x10] sm:$0xff] %vm124_vm0, %v583_v1  ;;  %132 = vst.msk [vmem:[#allocation3 + $0x18] sm:$0xff] %vm124_vm0, %v583_v1  ;;  %s758_s25 = smov (!%p98_p1, %s514_s25), 3  ;;  %s88_s8 = scalar_lea.vmem %s752_s3, %s756_s0 }
   0x5   :  { %134 = vst.msk [vmem:[#allocation4] sm:$0xff] %vm133_vm1, %v583_v1  ;;  %135 = vst.msk [vmem:[#allocation4 + $0x8] sm:$0xff] %vm133_vm1, %v583_v1  ;;  %s516_s9 = sshll.u32 %s756_s0, 3  ;;  %s515_s10 = sshll.u32 %s758_s25, 2 }
   0x6   :  { %136 = vst.msk [vmem:[#allocation4 + $0x10] sm:$0xff] %vm133_vm1, %v583_v1  ;;  %137 = vst.msk [vmem:[#allocation4 + $0x18] sm:$0xff] %vm133_vm1, %v583_v1  ;;  %s114_s13 = scalar_lea.vmem %s753_s5, %s516_s9  ;;  %s655_s16 = scalar_lea.vmem %s754_s4, %s515_s10 }
   0x7   :  { %142 = sbr.rel (%p518_p2) target bundleno = 640 (0x280), region = 25 }
   0xc   :  { %v158_v2 = vld [vmem:[%s750_s2 + $0x10] sm:$0xff]  ;;  %v156_v3 = vld [vmem:[%s750_s2] sm:$0xff]  ;;  %v584_v4 = vmov 0   ;;  %v159_v5 = vld [vmem:[%s750_s2 + $0x18] sm:$0xff]  ;;  %vm211_vm5 = vcmask 261120  }
   0xd   :  { %545 = vset.pattern.permute.xlu1 %v584_v4  ;;  %544 = vset.pattern.permute.xlu0 %v584_v4  ;;  %v157_v6 = vld [vmem:[%s750_s2 + $0x8] sm:$0xff]  ;;  %v143_v7 = vld [vmem:[%s114_s13] sm:$0xff]  ;;  %v209_v45 = vld [vmem:[#allocation2 + $0x10] sm:$0xff] }
   0xe   :  { %173 = vperm.xlu1 %545, %v158_v2   ;;  %163 = vperm.xlu0 %544, %v156_v3   ;;  %v144_v8 = vunpack.c.0.s8 %v143_v7  ;;  %v146_v9 = vunpack.c.2.s8 %v143_v7  ;;  %v519_v10 = vld [vmem:[%s88_s8] ss:$0 sm:$0xff]  ;;  %v145_v12 = vunpack.c.1.s8 %v143_v7  ;;  %v147_v16 = vunpack.c.3.s8 %v143_v7  ;;  %v699_v44 = vld [vmem:[#allocation2 + $0x8] sm:$0xff]  ;;  %v210_v52 = vld [vmem:[#allocation2 + $0x18] sm:$0xff] }
   0xf   :  { %v207_v41 = vld [vmem:[#allocation2] sm:$0xff]  ;;  %v546_v58 = vld [vmem:[%s655_s16 + $0x8] sm:$0xff]  }
  0x10   :  { %v672_v11 = vcvt.s32.f32 %v144_v8  ;;  %v674_v15 = vcvt.s32.f32 %v146_v9  ;;  %v677_v19 = vcvt.s32.f32 %v145_v12  ;;  %v680_v24 = vcvt.s32.f32 %v147_v16  ;;  %532 = vmatprep.subr.bf16.mxu0 %v546_v58  ;;  %v547_v60 = vld [vmem:[%s655_s16] sm:$0xff]  }
  0x11   :  { %533 = vmatpush3.bf16.msra.mxu0 %v546_v58 }
  0x12   :  { %178 = vperm.xlu1 %545, %v159_v5   ;;  %168 = vperm.xlu0 %544, %v157_v6   ;;  %vm152_vm2 = vcmp.gt.f32.partialorder %v672_v11, 0.0  ;;  %vm154_vm6 = vcmp.gt.f32.partialorder %v674_v15, 0.0  ;;  %vm153_vm7 = vcmp.gt.f32.partialorder %v677_v19, 0.0  ;;  %vm155_vm10 = vcmp.gt.f32.partialorder %v680_v24, 0.0 }
  0x13   :  { %534 = vmatprep.subr.bf16.mxu0 %v547_v60 }
  0x15   :  { %535 = vmatpush3.bf16.msra.mxu0 %v547_v60 }
  0x89   :  { %v174_v13 = vpop.permute.xlu1 %173  ;;  %v164_v14 = vpop.permute.xlu0 %163 }
  0x8a   :  { %v189_v17 = vadd.f32 %v519_v10, %v174_v13  ;;  %v187_v18 = vadd.f32 %v519_v10, %v164_v14 }
  0x8c   :  { %v197_v20 = vmul.f32 0.2, %v189_v17  ;;  %v195_v21 = vmul.f32 0.2, %v187_v18  ;;  %vm191_vm3 = vcmp.gt.f32.partialorder %v187_v18, 0.0  ;;  %vm193_vm4 = vcmp.gt.f32.partialorder %v189_v17, 0.0 }
  0x8d   :  { %v179_v22 = vpop.permute.xlu1 %178  ;;  %v169_v23 = vpop.permute.xlu0 %168 }
  0x8e   :  { %v190_v25 = vadd.f32 %v519_v10, %v179_v22  ;;  %v188_v26 = vadd.f32 %v519_v10, %v169_v23  ;;  %v199_v27 = vsel %vm191_vm3, %v187_v18, %v195_v21  ;;  %v682_v28 = vsel %vm193_vm4, %v189_v17, %v197_v20 }
  0x8f   :  { %v203_v29 = vsel %vm152_vm2, %v199_v27, -9e+15  ;;  %v205_v33 = vsel %vm154_vm6, %v682_v28, -9e+15 }
  0x90   :  { %v198_v30 = vmul.f32 0.2, %v190_v25  ;;  %v196_v31 = vmul.f32 0.2, %v188_v26  ;;  %v212_v32 = vsel %vm211_vm5, %v203_v29, -inf  ;;  %vm192_vm8 = vcmp.gt.f32.partialorder %v188_v26, 0.0 }
  0x91   :  { %213 = vmax.xlane.f32.xlu0 %v212_v32  ;;  %vm194_vm9 = vcmp.gt.f32.partialorder %v190_v25, 0.0  ;;  %v218_v38 = vsel %vm211_vm5, %v205_v33, -inf  ;;  %v278_v32 = vld [vmem:[#allocation3 + $0x10] sm:$0xff] }
  0x92   :  { %v200_v34 = vsel %vm192_vm8, %v188_v26, %v196_v31  ;;  %v202_v35 = vsel %vm194_vm9, %v190_v25, %v198_v30  ;;  %v276_v30 = vld [vmem:[#allocation3] sm:$0xff] }
  0x93   :  { %v204_v36 = vsel %vm153_vm7, %v200_v34, -9e+15  ;;  %v206_v39 = vsel %vm155_vm10, %v202_v35, -9e+15 }
  0x94   :  { %v215_v37 = vsel %vm211_vm5, %v204_v36, -inf  ;;  %v221_v40 = vsel %vm211_vm5, %v206_v39, -inf  ;;  %v279_v39 = vld [vmem:[#allocation3 + $0x18] sm:$0xff] }
  0x95   :  { %216 = vmax.xlane.f32.xlu1 %v215_v37  ;;  %219 = vmax.xlane.f32.xlu0 %v218_v38 }
  0x99   :  { %222 = vmax.xlane.f32.xlu0 %v221_v40 }
 0x11a   :  { %v214_v42 = vpop.xlane.xlu0 %213 }
 0x11b   :  { %v224_v43 = vmax.f32 %v207_v41, %v214_v42 }
 0x11d   :  { %v228_v46 = vsub.f32 %v207_v41, %v224_v43  ;;  %415 = vst.msk [vmem:[#allocation2] sm:$0xff] %vm124_vm0, %v224_v43  ;;  %242 = vperm.xlu1 %545, %v224_v43  }
 0x11e   :  { %v217_v47 = vpop.xlane.xlu1 %216  ;;  %v220_v48 = vpop.xlane.xlu0 %219 }
 0x11f   :  { %v232_v49 = vmul.f32 1.442695, %v228_v46  ;;  %v225_v50 = vmax.f32 %v699_v44, %v217_v47  ;;  %v226_v51 = vmax.f32 %v209_v45, %v220_v48  ;;  %v307_v47 = vld [vmem:[#allocation4 + $0x10] sm:$0xff]  ;;  %v305_v48 = vld [vmem:[#allocation4] sm:$0xff] }
 0x121   :  { %548 = vpow2.f32 %v232_v49  ;;  %v229_v53 = vsub.f32 %v699_v44, %v225_v50  ;;  %416 = vst.msk [vmem:[#allocation2 + $0x8] sm:$0xff] %vm124_vm0, %v225_v50  ;;  %v230_v54 = vsub.f32 %v209_v45, %v226_v51  ;;  %417 = vst.msk [vmem:[#allocation2 + $0x10] sm:$0xff] %vm124_vm0, %v226_v51  ;;  %247 = vperm.xlu0 %544, %v225_v50   ;;  %252 = vperm.xlu1 %545, %v226_v51   ;;  %v308_v50 = vld [vmem:[#allocation4 + $0x18] sm:$0xff] }
 0x122   :  { %v223_v55 = vpop.xlane.xlu0 %222 }
 0x123   :  { %v227_v56 = vmax.f32 %v210_v52, %v223_v55  ;;  %v236_v20 = vmul.f32 1.442695, %v230_v54  ;;  %v234_v19 = vmul.f32 1.442695, %v229_v53  ;;  %v306_v55 = vld [vmem:[#allocation4 + $0x8] sm:$0xff] }
 0x125   :  { %v231_v57 = vsub.f32 %v210_v52, %v227_v56  ;;  %418 = vst.msk [vmem:[#allocation2 + $0x18] sm:$0xff] %vm124_vm0, %v227_v56  ;;  %257 = vperm.xlu1 %545, %v227_v56  }
 0x127   :  { %v238_v26 = vmul.f32 1.442695, %v231_v57 }
 0x12e   :  { %v549_v59 = vpop.eup %548 }
 0x12f   :  { %311 = vperm.xlu1 %545, %v549_v59   ;;  %v280_v24 = vmul.f32 %v549_v59, %v276_v30 }
 0x198   :  { %v243_v61 = vpop.permute.xlu1 %242 }
 0x199   :  { %v260_v62 = vsub.f32 %v199_v27, %v243_v61 }
 0x19b   :  { %v264_v63 = vmul.f32 1.442695, %v260_v62 }
 0x19c   :  { %v253_v0 = vpop.permute.xlu1 %252  ;;  %v248_v1 = vpop.permute.xlu0 %247 }
 0x19d   :  { %550 = vpow2.f32 %v264_v63  ;;  %v262_v2 = vsub.f32 %v682_v28, %v253_v0  ;;  %v261_v3 = vsub.f32 %v200_v34, %v248_v1 }
 0x19f   :  { %v268_v4 = vmul.f32 1.442695, %v262_v2  ;;  %v266_v5 = vmul.f32 1.442695, %v261_v3 }
 0x1a0   :  { %v258_v6 = vpop.permute.xlu1 %257 }
 0x1a1   :  { %552 = vpow2.f32 %v268_v4  ;;  %v263_v7 = vsub.f32 %v202_v35, %v258_v6  ;;  %v277_v35 = vld [vmem:[#allocation3 + $0x8] sm:$0xff] }
 0x1a2   :  { %554 = vpow2.f32 %v266_v5 }
 0x1a3   :  { %v270_v8 = vmul.f32 1.442695, %v263_v7 }
 0x1a5   :  { %556 = vpow2.f32 %v270_v8 }
 0x1a6   :  { %558 = vpow2.f32 %v236_v20 }
 0x1a7   :  { %560 = vpow2.f32 %v238_v26 }
 0x1a8   :  { %562 = vpow2.f32 %v234_v19 }
 0x1aa   :  { %v551_v9 = vpop.eup %550  ;;  %v312_v33 = vpop.permute.xlu1 %311 }
 0x1ab   :  { %v272_v10 = vsel %vm152_vm2, %v551_v9, 0.0  ;;  %v329_v53 = vmul.f32 %v312_v33, %v305_v48 }
 0x1ac   :  { %v284_v12 = vsel %vm211_vm5, %v272_v10, 0.0 }
 0x1ad   :  { %285 = vadd.xlane.f32.xlu0 %v284_v12 }
 0x1ae   :  { %v553_v13 = vpop.eup %552 }
 0x1af   :  { %v555_v14 = vpop.eup %554  ;;  %v274_v16 = vsel %vm154_vm6, %v553_v13, 0.0 }
 0x1b0   :  { %v290_v17 = vsel %vm211_vm5, %v274_v16, 0.0  ;;  %v273_v18 = vsel %vm153_vm7, %v555_v14, 0.0 }
 0x1b1   :  { %291 = vadd.xlane.f32.xlu0 %v290_v17  ;;  %v287_v21 = vsel %vm211_vm5, %v273_v18, 0.0  ;;  %v333_v22 = vpack.c.bf16 %v273_v18, %v272_v10 }
 0x1b2   :  { %v557_v11 = vpop.eup %556  ;;  %288 = vadd.xlane.f32.xlu1 %v287_v21 }
 0x1b3   :  { %536 = vmatprep.mubr.msk.bf16.mxu0 %vm211_vm5, %v333_v22  ;;  %v275_v23 = vsel %vm155_vm10, %v557_v11, 0.0  ;;  %v559_v27 = vpop.eup %558 }
 0x1b4   :  { %v293_v15 = vsel %vm211_vm5, %v275_v23, 0.0  ;;  %v334_v25 = vpack.c.bf16 %v275_v23, %v274_v16  ;;  %v561_v28 = vpop.eup %560  ;;  %v282_v36 = vmul.f32 %v559_v27, %v278_v32 }
 0x1b5   :  { %294 = vadd.xlane.f32.xlu0 %v293_v15  ;;  %v563_v29 = vpop.eup %562  ;;  %v283_v43 = vmul.f32 %v561_v28, %v279_v39 }
 0x1b6   :  { %537 = vmatmul.mubr.msk.bf16.vlgmr.msra.gmra.mxu0 %vm211_vm5, %v334_v25  ;;  %v281_v37 = vmul.f32 %v563_v29, %v277_v35 }
 0x1c3   :  { %321 = vperm.xlu1 %545, %v559_v27  }
 0x1c7   :  { %326 = vperm.xlu1 %545, %v561_v28  }
 0x1cb   :  { %316 = vperm.xlu0 %544, %v563_v29  }
 0x236   :  { %v286_v31 = vpop.xlane.xlu0 %285 }
 0x237   :  { %v296_v34 = vadd.f32 %v286_v31, %v280_v24 }
 0x239   :  { %301 = vst.msk [vmem:[#allocation3] sm:$0xff] %vm124_vm0, %v296_v34 }
 0x23a   :  { %v292_v38 = vpop.xlane.xlu0 %291 }
 0x23b   :  { %v289_v40 = vpop.xlane.xlu1 %288  ;;  %v298_v41 = vadd.f32 %v292_v38, %v282_v36 }
 0x23c   :  { %v297_v42 = vadd.f32 %v289_v40, %v281_v37 }
 0x23d   :  { %303 = vst.msk [vmem:[#allocation3 + $0x10] sm:$0xff] %vm124_vm0, %v298_v41 }
 0x23e   :  { %302 = vst.msk [vmem:[#allocation3 + $0x8] sm:$0xff] %vm124_vm0, %v297_v42  ;;  %v295_v44 = vpop.xlane.xlu0 %294 }
 0x23f   :  { %v299_v45 = vadd.f32 %v295_v44, %v283_v43  ;;  %v322_v46 = vpop.permute.xlu1 %321 }
 0x240   :  { %v331_v49 = vmul.f32 %v322_v46, %v307_v47 }
 0x241   :  { %304 = vst.msk [vmem:[#allocation3 + $0x18] sm:$0xff] %vm124_vm0, %v299_v45 }
 0x243   :  { %v327_v51 = vpop.permute.xlu1 %326 }
 0x244   :  { %v332_v58 = vmul.f32 %v327_v51, %v308_v50 }
 0x246   :  { %v317_v56 = vpop.permute.xlu0 %316 }
 0x247   :  { %v330_v61 = vmul.f32 %v317_v56, %v306_v55 }
 0x276   :  { %v538_v52 = vpop.f32.mrf.mxu0 }
 0x277   :  { %v408_v54 = vadd.f32 %v538_v52, %v331_v49 }
 0x278   :  { %v391_v57 = vpop.f32.mrf.mxu0 }
 0x279   :  { %413 = vst.msk [vmem:[#allocation4 + $0x10] sm:$0xff] %vm133_vm1, %v408_v54  ;;  %v406_v59 = vadd.f32 %v391_v57, %v329_v53 }
 0x27a   :  { %v539_v60 = vpop.f32.mrf.mxu0 }
 0x27b   :  { %411 = vst.msk [vmem:[#allocation4] sm:$0xff] %vm133_vm1, %v406_v59  ;;  %v409_v62 = vadd.f32 %v539_v60, %v332_v58 }
 0x27c   :  { %v394_v63 = vpop.f32.mrf.mxu0 }
 0x27d   :  { %414 = vst.msk [vmem:[#allocation4 + $0x18] sm:$0xff] %vm133_vm1, %v409_v62  ;;  %v407_v0 = vadd.f32 %v394_v63, %v330_v61 }
 0x27f   :  { %412 = vst.msk [vmem:[#allocation4 + $0x8] sm:$0xff] %vm133_vm1, %v407_v0 }
 0x280 PF:  { %v424_v1 = vld [vmem:[#allocation3 + $0x10] sm:$0xff]  ;;  %v422_v2 = vld [vmem:[#allocation3] sm:$0xff]  ;;  %v425_v3 = vld [vmem:[#allocation3 + $0x18] sm:$0xff]  ;;  %v585_v4 = vmov 0  }
 0x281   :  { %565 = vset.pattern.permute.xlu1 %v585_v4  ;;  %564 = vset.pattern.permute.xlu0 %v585_v4  ;;  %vm428_vm11 = vcmp.gt.f32.partialorder %v424_v1, 0.0  ;;  %vm426_vm12 = vcmp.gt.f32.partialorder %v422_v2, 0.0  ;;  %vm429_vm13 = vcmp.gt.f32.partialorder %v425_v3, 0.0  ;;  %v423_v5 = vld [vmem:[#allocation3 + $0x8] sm:$0xff]  ;;  %v440_v16 = vld [vmem:[#allocation4 + $0x10] sm:$0xff] }
 0x282   :  { %v432_v6 = vsel %vm428_vm11, %v424_v1, 1.0  ;;  %v430_v7 = vsel %vm426_vm12, %v422_v2, 1.0  ;;  %v433_v8 = vsel %vm429_vm13, %v425_v3, 1.0  ;;  %vm427_vm14 = vcmp.gt.f32.partialorder %v423_v5, 0.0  ;;  %v438_v17 = vld [vmem:[#allocation4] sm:$0xff] }
 0x283   :  { %566 = vrcp.f32 %v432_v6  ;;  %v431_v9 = vsel %vm427_vm14, %v423_v5, 1.0 }
 0x284   :  { %568 = vrcp.f32 %v430_v7  ;;  %v441_v11 = vld [vmem:[#allocation4 + $0x18] sm:$0xff] }
 0x285   :  { %570 = vrcp.f32 %v433_v8 }
 0x286   :  { %572 = vrcp.f32 %v431_v9  ;;  %v439_v15 = vld [vmem:[#allocation4 + $0x8] sm:$0xff] }
 0x290   :  { %v567_v10 = vpop.eup %566 }
 0x291   :  { %v569_v12 = vpop.eup %568  ;;  %454 = vperm.xlu1 %565, %v567_v10  }
 0x292   :  { %v571_v13 = vpop.eup %570  ;;  %444 = vperm.xlu0 %564, %v569_v12  }
 0x293   :  { %v573_v14 = vpop.eup %572 }
 0x295   :  { %459 = vperm.xlu1 %565, %v571_v13  }
 0x296   :  { %449 = vperm.xlu0 %564, %v573_v14  }
 0x30c   :  { %v455_v18 = vpop.permute.xlu1 %454 }
 0x30d   :  { %v464_v20 = vmul.f32 %v455_v18, %v440_v16  ;;  %v445_v21 = vpop.permute.xlu0 %444 }
 0x30e   :  { %v462_v22 = vmul.f32 %v445_v21, %v438_v17 }
 0x30f   :  { %v472_v23 = vmin.f32 %v464_v20, 0.0  ;;  %vm468_vm15 = vcmp.gt.f32.partialorder %v464_v20, 0.0 }
 0x310   :  { %v470_v25 = vmin.f32 %v462_v22, 0.0  ;;  %v460_v26 = vpop.permute.xlu1 %459  ;;  %vm466_vm0 = vcmp.gt.f32.partialorder %v462_v22, 0.0 }
 0x311   :  { %v478_v19 = vmul.f32 1.442695, %v472_v23  ;;  %v465_v27 = vmul.f32 %v460_v26, %v441_v11  ;;  %v450_v28 = vpop.permute.xlu0 %449 }
 0x312   :  { %v474_v29 = vmul.f32 1.442695, %v470_v25  ;;  %v463_v30 = vmul.f32 %v450_v28, %v439_v15 }
 0x313   :  { %574 = vpow2.f32 %v478_v19  ;;  %v473_v24 = vmin.f32 %v465_v27, 0.0  ;;  %vm469_vm2 = vcmp.gt.f32.partialorder %v465_v27, 0.0 }
 0x314   :  { %576 = vpow2.f32 %v474_v29  ;;  %v471_v31 = vmin.f32 %v463_v30, 0.0  ;;  %vm467_vm3 = vcmp.gt.f32.partialorder %v463_v30, 0.0 }
 0x315   :  { %v480_v32 = vmul.f32 1.442695, %v473_v24 }
 0x316   :  { %v476_v33 = vmul.f32 1.442695, %v471_v31 }
 0x317   :  { %578 = vpow2.f32 %v480_v32 }
 0x318   :  { %580 = vpow2.f32 %v476_v33 }
 0x320   :  { %v575_v34 = vpop.eup %574 }
 0x321   :  { %v577_v35 = vpop.eup %576  ;;  %v526_v36 = vadd.f32 -1.0, %v575_v34 }
 0x322   :  { %v524_v37 = vadd.f32 -1.0, %v577_v35 }
 0x323   :  { %v488_v38 = vsel %vm468_vm15, %v464_v20, %v526_v36 }
 0x324   :  { %v579_v39 = vpop.eup %578  ;;  %493 = vst.msk [vmem:[%s751_s6 + $0x10] sm:$0xff] %vm133_vm1, %v488_v38  ;;  %v486_v40 = vsel %vm466_vm0, %v462_v22, %v524_v37 }
 0x325   :  { %v581_v41 = vpop.eup %580  ;;  %491 = vst.msk [vmem:[%s751_s6] sm:$0xff] %vm133_vm1, %v486_v40  ;;  %v527_v42 = vadd.f32 -1.0, %v579_v39 }
 0x326   :  { %v525_v43 = vadd.f32 -1.0, %v581_v41 }
 0x327   :  { %v489_v44 = vsel %vm469_vm2, %v465_v27, %v527_v42 }
 0x328   :  { %494 = vst.msk [vmem:[%s751_s6 + $0x18] sm:$0xff] %vm133_vm1, %v489_v44  ;;  %v487_v45 = vsel %vm467_vm3, %v463_v30, %v525_v43 }
 0x329   :  { %492 = vst.msk [vmem:[%s751_s6 + $0x8] sm:$0xff] %vm133_vm1, %v487_v45 }

// kernel: afc_forward.14
= control target key start
LH: loop header
LB: loop body
LE: loop exit
PB: predicated region body
PF: predicated region fallthrough
CT: control target
= control target key end

     0   :  { %s1774_s0 = inlined_call_operand.vmem [shape: f32[32,16], index: 0, kind: input, shape index: {}]   ;;  %s1775_s1 = inlined_call_operand.vmem [shape: f32[32,16], index: 1, kind: input, shape index: {}]   ;;  %s1776_s2 = inlined_call_operand.vmem [shape: bf16[16,500], index: 2, kind: input, shape index: {}]   ;;  %s1777_s3 = inlined_call_operand.vmem [shape: bf16[16,500], index: 3, kind: input, shape index: {}]   ;;  %s1778_s4 = inlined_call_operand.vmem [shape: f32[1,500], index: 4, kind: input, shape index: {}]   ;;  %s1779_s5 = inlined_call_operand.vmem [shape: bf16[500,100], index: 5, kind: input, shape index: {}]   ;;  %s1780_s6 = inlined_call_operand.vmem [shape: f32[1,100], index: 6, kind: input, shape index: {}]   ;;  %s1781_s7 = inlined_call_operand.vmem [shape: f32[100,1], index: 7, kind: input, shape index: {}]   ;;  %s1782_s8 = inlined_call_operand.vmem [shape: f32[100,1], index: 8, kind: input, shape index: {}]   ;;  %s1783_s9 = inlined_call_operand.<no memory space> [shape: f32[1,1], index: 9, kind: input, shape index: {}]   ;;  %s1784_s11 = inlined_call_operand.hbm [shape: f32[1,1], index: 11, kind: output, shape index: {}]   ;;  %s1785_s10 = inlined_call_operand.<no memory space> [shape: f32[1,1], index: 10, kind: input, shape index: {}]  }
   0x1   :  { %v16_v0 = vstv %s1783_s9  ;;  %v18_v1 = vstv %s1785_s10 }
   0x2   :  { %17 = vst [vmem:[#allocation2] sm:$0x1] %v16_v0  ;;  %19 = vst [vmem:[#allocation3] sm:$0x1] %v18_v1 }
   0x3   :  { %v1352_v2 = vld [vmem:[%s1777_s3 + $0x4] ss:$16 sps:$4 sm:$0xff]   ;;  %v1354_v3 = vld [vmem:[%s1777_s3 + $0xc] ss:$16 sps:$4 sm:$0xff]   ;;  %v1430_v4 = vmov 0   ;;  %vm90_vm0 = vcmask 130048  }
   0x4   :  { %129 = vmatprep.mubr.bf16.mxu0 %v1430_v4  ;;  %182 = vmatprep.mubr.bf16.mxu1 %v1430_v4  ;;  %v1356_v5 = vld [vmem:[%s1777_s3] ss:$16 sps:$4 sm:$0xff]   ;;  %v1357_v6 = vld [vmem:[%s1777_s3 + $0x8] ss:$16 sps:$4 sm:$0xff]   ;;  %v1360_v11 = vld [vmem:[%s1776_s2 + $0x4] ss:$16 sps:$4 sm:$0xff]  }
   0x5   :  { %111 = vmatprep.subr.bf16.mxu0 %v1352_v2  ;;  %v56_v7 = vld [vmem:[%s1775_s1] sm:$0xff]  ;;  %164 = vmatprep.subr.bf16.mxu1 %v1354_v3  ;;  %v57_v8 = vld [vmem:[%s1775_s1 + $0x8] sm:$0xff]  ;;  %v58_v14 = vld [vmem:[%s1775_s1 + $0x10] sm:$0xff] }
   0x6   :  { %112 = vmatpush1.bf16.msra.mxu0 %v1356_v5  ;;  %165 = vmatpush1.bf16.msra.mxu1 %v1357_v6  ;;  %v60_v9 = vpack.c.bf16 %v57_v8, %v56_v7  ;;  %v1358_v10 = vld [vmem:[%s1776_s2] ss:$16 sps:$4 sm:$0xff]   ;;  %v1361_v12 = vld [vmem:[%s1776_s2 + $0x8] ss:$16 sps:$4 sm:$0xff]   ;;  %v1363_v13 = vld [vmem:[%s1776_s2 + $0xc] ss:$16 sps:$4 sm:$0xff]  }
   0x7   :  { %243 = vmatprep.subr.bf16.mxu0 %v1360_v11  ;;  %v59_v15 = vld [vmem:[%s1775_s1 + $0x18] sm:$0xff]  ;;  %296 = vmatprep.subr.bf16.mxu1 %v1363_v13  ;;  %v50_v17 = vld [vmem:[%s1774_s0] sm:$0xff]  ;;  %v51_v18 = vld [vmem:[%s1774_s0 + $0x8] sm:$0xff] }
   0x8   :  { %v61_v16 = vpack.c.bf16 %v59_v15, %v58_v14  ;;  %v54_v19 = vpack.c.bf16 %v51_v18, %v50_v17  ;;  %v52_v20 = vld [vmem:[%s1774_s0 + $0x10] sm:$0xff]  ;;  %v53_v21 = vld [vmem:[%s1774_s0 + $0x18] sm:$0xff] }
   0x9   :  { %1135 = vmatmul.mubr.msk.bf16.vlgmr.msra.gmra.mxu0 %vm90_vm0, %v60_v9  ;;  %1137 = vmatmul.mubr.msk.bf16.vlgmr.msra.gmra.mxu1 %vm90_vm0, %v60_v9  ;;  %v55_v22 = vpack.c.bf16 %v53_v21, %v52_v20 }
   0xa   :  { %244 = vmatpush1.bf16.msra.mxu0 %v1358_v10  ;;  %297 = vmatpush1.bf16.msra.mxu1 %v1361_v12 }
   0xb   :  { %139 = vmatprep.mubr.bf16.mxu0 %v1430_v4  ;;  %192 = vmatprep.mubr.bf16.mxu1 %v1430_v4 }
  0x11   :  { %1136 = vmatmul.mubr.msk.bf16.gmra.mxu0 %vm90_vm0, %v61_v16  ;;  %1138 = vmatmul.mubr.msk.bf16.gmra.mxu1 %vm90_vm0, %v61_v16 }
  0x12   :  { %261 = vmatprep.mubr.bf16.mxu0 %v1430_v4  ;;  %314 = vmatprep.mubr.bf16.mxu1 %v1430_v4 }
  0x19   :  { %1143 = vmatmul.mubr.msk.bf16.vlgmr.msra.gmra.mxu0 %vm90_vm0, %v54_v19  ;;  %1145 = vmatmul.mubr.msk.bf16.vlgmr.msra.gmra.mxu1 %vm90_vm0, %v54_v19 }
  0x1a   :  { %271 = vmatprep.mubr.bf16.mxu0 %v1430_v4  ;;  %324 = vmatprep.mubr.bf16.mxu1 %v1430_v4 }
  0x1b   :  { %20 = vsyncpa [#allocation5], 0  ;;  %v1364_v23 = vld [vmem:[%s1779_s5 + $0x78] sm:$0xff]   ;;  %vm663_vm1 = vcmask 1041408   ;;  %v1368_v27 = vld [vmem:[%s1779_s5 + $0x70] sm:$0xff]   ;;  %vm802_vm2 = vcmask 1043456   ;;  %v337_v1 = vlaneseq }
  0x1c   :  { %v1365_v24 = vld [vmem:[%s1779_s5 + $0xf8] ss:$0 sps:$4 sm:$0x33]   ;;  %1194 = vmatprep.subr.bf16.mxu0 %v1364_v23  ;;  %v1369_v28 = vld [vmem:[%s1779_s5 + $0xf0] sm:$0xff]   ;;  %v1372_v31 = vld [vmem:[%s1779_s5 + $0x68] sm:$0xff]   ;;  %vm656_vm3 = vcmask 949248  }
  0x1d   :  { %v1366_v25 = vld [vmem:[%s1779_s5 + $0x38] sm:$0xff]   ;;  %1348 = vmatprep.subr.msk.bf16.mxu1 %vm663_vm1, %v1365_v24  ;;  %v1370_v29 = vld [vmem:[%s1779_s5 + $0x30] sm:$0xff]   ;;  %v1373_v32 = vld [vmem:[%s1779_s5 + $0xe8] sm:$0xff]   ;;  %v338_v6 = vshrl.u32 %v337_v1, 7  ;;  %vm789_vm4 = vcmask 818176   ;;  %vm48_vm5 = vcmask 0  }
  0x1e   :  { %v1367_v26 = vld [vmem:[%s1779_s5 + $0xb8] sm:$0xff]   ;;  %1195 = vmatpush3.bf16.msra.mxu0 %v1366_v25  ;;  %v1371_v30 = vld [vmem:[%s1779_s5 + $0xb0] sm:$0xff]   ;;  %v1374_v33 = vld [vmem:[%s1779_s5 + $0x28] sm:$0xff]   ;;  %vm1099_vm6 = vcmask 7168  }
  0x1f   :  { %1223 = vmatpush3.bf16.msra.mxu1 %v1367_v26  ;;  %1196 = vmatprep.subr.bf16.mxu0 %v1368_v27  ;;  %v1375_v34 = vld [vmem:[%s1779_s5 + $0xa8] sm:$0xff]   ;;  %v1376_v35 = vld [vmem:[%s1779_s5 + $0x60] sm:$0xff]   ;;  %v1380_v39 = vld [vmem:[%s1779_s5 + $0x58] sm:$0xff]   ;;  %v339_v11 = vsub.s32 0, %v338_v6  ;;  %v347_v13 = vsub.s32 2, %v338_v6  ;;  %v351_v14 = vsub.s32 3, %v338_v6 }
  0x20   :  { %1224 = vmatprep.subr.bf16.mxu1 %v1369_v28  ;;  %v1377_v36 = vld [vmem:[%s1779_s5 + $0xe0] sm:$0xff]   ;;  %v1381_v40 = vld [vmem:[%s1779_s5 + $0xd8] sm:$0xff]   ;;  %v1384_v43 = vld [vmem:[%s1779_s5 + $0x50] sm:$0xff]   ;;  %v343_v17 = vsub.s32 1, %v338_v6 }
  0x21   :  { %1144 = vmatmul.mubr.msk.bf16.gmra.mxu0 %vm90_vm0, %v55_v22  ;;  %1146 = vmatmul.mubr.msk.bf16.gmra.mxu1 %vm90_vm0, %v55_v22  ;;  %v1378_v37 = vld [vmem:[%s1779_s5 + $0x20] sm:$0xff]   ;;  %v1382_v41 = vld [vmem:[%s1779_s5 + $0x18] sm:$0xff]   ;;  %v1385_v44 = vld [vmem:[%s1779_s5 + $0xd0] sm:$0xff]  }
  0x22   :  { %1197 = vmatpush3.bf16.msra.mxu0 %v1370_v29  ;;  %v1379_v38 = vld [vmem:[%s1779_s5 + $0xa0] sm:$0xff]   ;;  %v1383_v42 = vld [vmem:[%s1779_s5 + $0x98] sm:$0xff]   ;;  %v1386_v45 = vld [vmem:[%s1779_s5 + $0x10] sm:$0xff]  }
  0x23   :  { %1225 = vmatpush3.bf16.msra.mxu1 %v1371_v30  ;;  %1198 = vmatprep.subr.bf16.mxu0 %v1372_v31  ;;  %v1387_v46 = vld [vmem:[%s1779_s5 + $0x90] sm:$0xff]   ;;  %v1388_v47 = vld [vmem:[%s1779_s5 + $0x48] sm:$0xff]   ;;  %v1392_v51 = vld [vmem:[%s1779_s5 + $0x40] sm:$0xff]  }
  0x24   :  { %1226 = vmatprep.subr.bf16.mxu1 %v1373_v32  ;;  %v1389_v48 = vld [vmem:[%s1779_s5 + $0xc8] sm:$0xff]   ;;  %v1393_v52 = vld [vmem:[%s1779_s5 + $0xc0] sm:$0xff]  }
  0x25   :  { %v1390_v49 = vld [vmem:[%s1779_s5 + $0x8] sm:$0xff]   ;;  %v1394_v53 = vld [vmem:[%s1779_s5] sm:$0xff]  }
  0x26   :  { %1199 = vmatpush3.bf16.msra.mxu0 %v1374_v33  ;;  %v1391_v50 = vld [vmem:[%s1779_s5 + $0x88] sm:$0xff]   ;;  %v1395_v54 = vld [vmem:[%s1779_s5 + $0x80] sm:$0xff]  }
  0x27   :  { %1227 = vmatpush3.bf16.msra.mxu1 %v1375_v34  ;;  %1200 = vmatprep.subr.bf16.mxu0 %v1376_v35  ;;  %v1654_v55 = vld [vmem:[%s1781_s7 + $0x60] sm:$0xf] }
  0x28   :  { %1228 = vmatprep.subr.bf16.mxu1 %v1377_v36  ;;  %v1659_v56 = vld [vmem:[%s1782_s8 + $0x60] sm:$0xf] }
  0x29   :  { %v335_v12 = vld [vmem:[%s1778_s4] sm:$0xf] }
  0x2a   :  { %1201 = vmatpush3.bf16.msra.mxu0 %v1378_v37  ;;  %v1672_v19 = vrot.slane %v335_v12, %v339_v11  ;;  %v348_v23 = vrot.slane %v335_v12, %v347_v13  ;;  %v352_v25 = vrot.slane %v335_v12, %v351_v14  ;;  %v344_v27 = vrot.slane %v335_v12, %v343_v17 }
  0x2b   :  { %1229 = vmatpush3.bf16.msra.mxu1 %v1379_v38  ;;  %1202 = vmatprep.subr.bf16.mxu0 %v1380_v39 }
  0x2c   :  { %1230 = vmatprep.subr.bf16.mxu1 %v1381_v40 }
  0x2e   :  { %1203 = vmatpush3.bf16.msra.mxu0 %v1382_v41 }
  0x2f   :  { %1231 = vmatpush3.bf16.msra.mxu1 %v1383_v42  ;;  %1204 = vmatprep.subr.bf16.mxu0 %v1384_v43 }
  0x30   :  { %1232 = vmatprep.subr.bf16.mxu1 %v1385_v44 }
  0x32   :  { %1205 = vmatpush3.bf16.msra.mxu0 %v1386_v45 }
  0x33   :  { %1233 = vmatpush3.bf16.msra.mxu1 %v1387_v46  ;;  %1206 = vmatprep.subr.bf16.mxu0 %v1388_v47 }
  0x34   :  { %1234 = vmatprep.subr.bf16.mxu1 %v1389_v48 }
  0x36   :  { %1207 = vmatpush3.bf16.msra.mxu0 %v1390_v49 }
  0x37   :  { %1235 = vmatpush3.bf16.msra.mxu1 %v1391_v50  ;;  %1208 = vmatprep.subr.bf16.mxu0 %v1392_v51 }
  0x38   :  { %1236 = vmatprep.subr.bf16.mxu1 %v1393_v52 }
  0x3a   :  { %1209 = vmatpush3.bf16.msra.mxu0 %v1394_v53 }
  0x3b   :  { %1237 = vmatpush3.bf16.msra.mxu1 %v1395_v54  ;;  %1284 = vmatprep.subr.msk.mxu0 %vm802_vm2, %v1654_v55 }
  0x3c   :  { %1316 = vmatprep.subr.msk.mxu1 %vm802_vm2, %v1659_v56 }
  0xc9   :  { %v131_v57 = vpop.f32.mrf.mxu0  ;;  %v184_v58 = vpop.f32.mrf.mxu1 }
  0xcb   :  { %v133_v59 = vpop.f32.mrf.mxu0  ;;  %v186_v60 = vpop.f32.mrf.mxu1 }
  0xcd   :  { %v135_v61 = vpop.f32.mrf.mxu0  ;;  %v188_v62 = vpop.f32.mrf.mxu1 }
  0xcf   :  { %v137_v63 = vpop.f32.mrf.mxu0  ;;  %v190_v0 = vpop.f32.mrf.mxu1 }
  0xd1   :  { %v141_v2 = vpop.f32.mrf.mxu0  ;;  %v194_v3 = vpop.f32.mrf.mxu1 }
  0xd3   :  { %v143_v4 = vpop.f32.mrf.mxu0  ;;  %v196_v5 = vpop.f32.mrf.mxu1 }
  0xd5   :  { %v145_v7 = vpop.f32.mrf.mxu0  ;;  %v198_v8 = vpop.f32.mrf.mxu1 }
  0xd7   :  { %v1665_v9 = vpop.f32.mrf.mxu0  ;;  %v1667_v10 = vpop.f32.mrf.mxu1 }
  0xd9   :  { %v263_v15 = vpop.f32.mrf.mxu0  ;;  %v316_v16 = vpop.f32.mrf.mxu1 }
  0xda   :  { %v264_v18 = vadd.f32 %v263_v15, %v131_v57  ;;  %v317_v22 = vadd.f32 %v316_v16, %v184_v58 }
  0xdb   :  { %v265_v20 = vpop.f32.mrf.mxu0  ;;  %v318_v21 = vpop.f32.mrf.mxu1 }
  0xdc   :  { %v319_v24 = vadd.f32 %v318_v21, %v186_v60  ;;  %v266_v26 = vadd.f32 %v265_v20, %v133_v59  ;;  %v357_v30 = vadd.f32 %v1672_v19, %v264_v18  ;;  %v359_v35 = vadd.f32 %v348_v23, %v317_v22 }
  0xdd   :  { %v267_v28 = vpop.f32.mrf.mxu0  ;;  %v320_v29 = vpop.f32.mrf.mxu1 }
  0xde   :  { %v268_v31 = vadd.f32 %v267_v28, %v135_v61  ;;  %v321_v32 = vadd.f32 %v320_v29, %v188_v62  ;;  %v360_v36 = vadd.f32 %v352_v25, %v319_v24  ;;  %v358_v39 = vadd.f32 %v344_v27, %v266_v26 }
  0xdf   :  { %v269_v33 = vpop.f32.mrf.mxu0  ;;  %v322_v34 = vpop.f32.mrf.mxu1  ;;  %v373_v46 = vmax.f32 %v357_v30, 0.0  ;;  %v375_v51 = vmax.f32 %v359_v35, 0.0  ;;  %v777_v35 = vld [vmem:[%s1781_s7 + $0x40] sm:$0xff] }
  0xe0   :  { %v270_v37 = vadd.f32 %v269_v33, %v137_v63  ;;  %v323_v38 = vadd.f32 %v322_v34, %v190_v0  ;;  %v361_v40 = vadd.f32 %v1672_v19, %v268_v31  ;;  %v363_v41 = vadd.f32 %v348_v23, %v321_v32  ;;  %v778_v31 = vld [vmem:[%s1781_s7 + $0x48] sm:$0xff]  ;;  %v899_v34 = vld [vmem:[%s1782_s8 + $0x40] sm:$0xff] }
  0xe1   :  { %v273_v42 = vpop.f32.mrf.mxu0  ;;  %v326_v43 = vpop.f32.mrf.mxu1  ;;  %v376_v52 = vmax.f32 %v360_v36, 0.0  ;;  %v374_v57 = vmax.f32 %v358_v39, 0.0  ;;  %v898_v36 = vld [vmem:[%s1782_s8 + $0x38] sm:$0xff]  ;;  %v897_v39 = vld [vmem:[%s1782_s8 + $0x30] sm:$0xff] }
  0xe2   :  { %v362_v44 = vadd.f32 %v344_v27, %v270_v37  ;;  %v364_v45 = vadd.f32 %v352_v25, %v323_v38  ;;  %v377_v47 = vmax.f32 %v361_v40, 0.0  ;;  %v379_v48 = vmax.f32 %v363_v41, 0.0  ;;  %v776_v37 = vld [vmem:[%s1781_s7 + $0x38] sm:$0xff]  ;;  %v775_v38 = vld [vmem:[%s1781_s7 + $0x30] sm:$0xff]  ;;  %v774_v40 = vld [vmem:[%s1781_s7 + $0x28] sm:$0xff] }
  0xe3   :  { %v275_v49 = vpop.f32.mrf.mxu0  ;;  %v328_v50 = vpop.f32.mrf.mxu1  ;;  %v327_v58 = vadd.f32 %v326_v43, %v194_v3  ;;  %v274_v1 = vadd.f32 %v273_v42, %v141_v2  ;;  %v902_v2 = vld [vmem:[%s1782_s8 + $0x58] sm:$0xff]  ;;  %v896_v41 = vld [vmem:[%s1782_s8 + $0x28] sm:$0xff]  ;;  %v773_v42 = vld [vmem:[%s1781_s7 + $0x20] sm:$0xff] }
  0xe4   :  { %v378_v53 = vmax.f32 %v362_v44, 0.0  ;;  %v380_v54 = vmax.f32 %v364_v45, 0.0  ;;  %v276_v59 = vadd.f32 %v275_v49, %v143_v4  ;;  %v329_v60 = vadd.f32 %v328_v50, %v196_v5  ;;  %v895_v43 = vld [vmem:[%s1782_s8 + $0x20] sm:$0xff]  ;;  %v772_v44 = vld [vmem:[%s1781_s7 + $0x18] sm:$0xff]  ;;  %v892_v49 = vld [vmem:[%s1782_s8 + $0x8] sm:$0xff] }
  0xe5   :  { %v277_v61 = vpop.f32.mrf.mxu0  ;;  %v330_v62 = vpop.f32.mrf.mxu1  ;;  %v389_v63 = vpack.c.bf16 %v377_v47, %v373_v46  ;;  %v391_v11 = vpack.c.bf16 %v379_v48, %v375_v51  ;;  %v367_v4 = vadd.f32 %v348_v23, %v327_v58  ;;  %v894_v45 = vld [vmem:[%s1782_s8 + $0x18] sm:$0xff]  ;;  %v771_v46 = vld [vmem:[%s1781_s7 + $0x10] sm:$0xff]  ;;  %v770_v48 = vld [vmem:[%s1781_s7 + $0x8] sm:$0xff] }
  0xe6   :  { %v392_v0 = vpack.c.bf16 %v380_v54, %v376_v52  ;;  %v278_v6 = vadd.f32 %v277_v61, %v145_v7  ;;  %v366_v12 = vadd.f32 %v344_v27, %v276_v59  ;;  %v331_v13 = vadd.f32 %v330_v62, %v198_v8  ;;  %v780_v7 = vld [vmem:[%s1781_s7 + $0x58] sm:$0xff]  ;;  %v893_v47 = vld [vmem:[%s1782_s8 + $0x10] sm:$0xff]  ;;  %v769_v50 = vld [vmem:[%s1781_s7] sm:$0xff] }
  0xe7   :  { %v279_v14 = vpop.f32.mrf.mxu0  ;;  %v332_v15 = vpop.f32.mrf.mxu1  ;;  %v390_v16 = vpack.c.bf16 %v378_v53, %v374_v57  ;;  %v368_v17 = vadd.f32 %v352_v25, %v329_v60  ;;  %v365_v8 = vadd.f32 %v1672_v19, %v274_v1  ;;  %v383_v28 = vmax.f32 %v367_v4, 0.0  ;;  %v891_v51 = vld [vmem:[%s1782_s8] sm:$0xff] }
  0xe8   :  { %v369_v18 = vadd.f32 %v1672_v19, %v278_v6  ;;  %v280_v20 = vadd.f32 %v279_v14, %v1665_v9  ;;  %v333_v3 = vadd.f32 %v332_v15, %v1667_v10  ;;  %1180 = vmatprep.mubr.msk.bf16.mxu1 %vm656_vm3, %v392_v0  ;;  %v371_v5 = vadd.f32 %v348_v23, %v331_v13  ;;  %v901_v10 = vld [vmem:[%s1782_s8 + $0x50] sm:$0xff]  ;;  %v1147_v57 = vld [vmem:[%s1780_s6] ss:$0 sm:$0xff]  ;;  %s1432_s6 = smov [#allocation4]  }
  0xe9   :  { %699 = vmatprep.mubr.bf16.mxu0 %v390_v16  ;;  %749 = vmatmul.mubr.bf16.vlgmr.msra.gmra.mxu1 %v391_v11  ;;  %v382_v22 = vmax.f32 %v366_v12, 0.0  ;;  %v779_v19 = vld [vmem:[%s1781_s7 + $0x50] sm:$0xff]  ;;  %v384_v24 = vmax.f32 %v368_v17, 0.0  ;;  %v381_v29 = vmax.f32 %v365_v8, 0.0  ;;  %s1123_s7 = sshll.u32 %s1432_s6, 4  ;;  %s1124_s7 = int_to_ptr.vmem [resolvable:$true] %s1123_s7 }
  0xea   :  { %v370_v21 = vadd.f32 %v344_v27, %v280_v20  ;;  %v372_v9 = vadd.f32 %v352_v25, %v333_v3  ;;  %700 = vmatmul.mubr.bf16.vlgmr.msra.gmra.mxu0 %v389_v63  ;;  %1317 = vmatpush3.msk.msra.mxu1 %vm802_vm2, %v1659_v56  ;;  %v387_v23 = vmax.f32 %v371_v5, 0.0  ;;  %v385_v25 = vmax.f32 %v369_v18, 0.0  ;;  %v900_v56 = vld [vmem:[%s1782_s8 + $0x48] sm:$0xff]  ;;  %s1408_s8 = scalar_lea.vmem %s1124_s7, 16  ;;  %s1412_s22 = scalar_lea.vmem %s1124_s7, 32 }
  0xeb   :  { %1285 = vmatpush3.msk.msra.mxu0 %vm802_vm2, %v1654_v55  ;;  %1318 = vmatprep.subr.mxu1 %v902_v2  ;;  %p1409_p0 = scmp.ne.s32.totalorder %s1124_s7, %s1408_s8  ;;  %p1413_p1 = scmp.lt.s32.totalorder %s1124_s7, %s1124_s7 }
  0xec   :  { %v386_v26 = vmax.f32 %v370_v21, 0.0  ;;  %v388_v27 = vmax.f32 %v372_v9, 0.0  ;;  %1286 = vmatprep.subr.mxu0 %v780_v7  ;;  %1319 = vmatpush3.msra.mxu1 %v902_v2  ;;  %v395_v32 = vpack.c.bf16 %v387_v23, %v383_v28  ;;  %v393_v33 = vpack.c.bf16 %v385_v25, %v381_v29  ;;  %v1182_v29 = vld [vmem:[#allocation2] ss:$0 sm:$0xff]  ;;  %p1414_p2 = scmp.lt.s32.totalorder %s1412_s22, %s1408_s8 }
  0xed   :  { %1287 = vmatpush3.msra.mxu0 %v780_v7  ;;  %1320 = vmatprep.subr.mxu1 %v901_v10 }
  0xee   :  { %v396_v55 = vpack.c.bf16 %v388_v27, %v384_v24  ;;  %v394_v30 = vpack.c.bf16 %v386_v26, %v382_v22  ;;  %1288 = vmatprep.subr.mxu0 %v779_v19  ;;  %1321 = vmatpush3.msra.mxu1 %v901_v10  ;;  %v1431_v27 = vmov 0.0   ;;  %p1415_p3 = por %p1414_p2, %p1413_p1 }
  0xef   :  { %1289 = vmatpush3.msra.mxu0 %v779_v19  ;;  %1322 = vmatprep.subr.mxu1 %v900_v56  ;;  %49 = vst.msk [vmem:[#allocation4] sm:$0x1] %vm48_vm5, %v1431_v27 }
  0xf0   :  { %707 = vmatprep.mubr.bf16.mxu0 %v394_v30  ;;  %1181 = vmatprep.mubr.msk.bf16.mxu1 %vm656_vm3, %v396_v55  ;;  %v1188_v55 = vld [vmem:[#allocation3] ss:$0 sm:$0xff]  ;;  %p1416_p4 = pnand %p1415_p3, %p1409_p0 }
  0xf1   :  { %757 = vmatmul.mubr.bf16.gmra.mxu1 %v395_v32  ;;  %1290 = vmatprep.subr.mxu0 %v778_v31 }
  0xf2   :  { %708 = vmatmul.mubr.bf16.gmra.mxu0 %v393_v33  ;;  %1323 = vmatpush3.msra.mxu1 %v900_v56 }
  0xf3   :  { %1291 = vmatpush3.msra.mxu0 %v778_v31  ;;  %1324 = vmatprep.subr.mxu1 %v899_v34 }
  0xf4   :  { %1292 = vmatprep.subr.mxu0 %v777_v35  ;;  %1325 = vmatpush3.msra.mxu1 %v899_v34 }
  0xf5   :  { %1293 = vmatpush3.msra.mxu0 %v777_v35  ;;  %1326 = vmatprep.subr.mxu1 %v898_v36 }
  0xf6   :  { %1294 = vmatprep.subr.mxu0 %v776_v37  ;;  %1327 = vmatpush3.msra.mxu1 %v898_v36 }
  0xf7   :  { %1295 = vmatpush3.msra.mxu0 %v776_v37  ;;  %1328 = vmatprep.subr.mxu1 %v897_v39 }
  0xf8   :  { %1296 = vmatprep.subr.mxu0 %v775_v38  ;;  %1329 = vmatpush3.msra.mxu1 %v897_v39 }
  0xf9   :  { %1297 = vmatpush3.msra.mxu0 %v775_v38  ;;  %1330 = vmatprep.subr.mxu1 %v896_v41 }
  0xfa   :  { %1298 = vmatprep.subr.mxu0 %v774_v40  ;;  %1331 = vmatpush3.msra.mxu1 %v896_v41 }
  0xfb   :  { %1299 = vmatpush3.msra.mxu0 %v774_v40  ;;  %1332 = vmatprep.subr.mxu1 %v895_v43 }
  0xfc   :  { %1300 = vmatprep.subr.mxu0 %v773_v42  ;;  %1333 = vmatpush3.msra.mxu1 %v895_v43 }
  0xfd   :  { %1301 = vmatpush3.msra.mxu0 %v773_v42  ;;  %1334 = vmatprep.subr.mxu1 %v894_v45 }
  0xfe   :  { %1302 = vmatprep.subr.mxu0 %v772_v44  ;;  %1335 = vmatpush3.msra.mxu1 %v894_v45 }
  0xff   :  { %1303 = vmatpush3.msra.mxu0 %v772_v44  ;;  %1336 = vmatprep.subr.mxu1 %v893_v47 }
 0x100   :  { %1304 = vmatprep.subr.mxu0 %v771_v46  ;;  %1337 = vmatpush3.msra.mxu1 %v893_v47 }
 0x101   :  { %1305 = vmatpush3.msra.mxu0 %v771_v46  ;;  %1338 = vmatprep.subr.mxu1 %v892_v49 }
 0x102   :  { %1306 = vmatprep.subr.mxu0 %v770_v48  ;;  %1339 = vmatpush3.msra.mxu1 %v892_v49 }
 0x103   :  { %1307 = vmatpush3.msra.mxu0 %v770_v48  ;;  %1340 = vmatprep.subr.mxu1 %v891_v51 }
 0x104   :  { %1308 = vmatprep.subr.mxu0 %v769_v50  ;;  %1341 = vmatpush3.msra.mxu1 %v891_v51 }
 0x105   :  { %1309 = vmatpush3.msra.mxu0 %v769_v50 }
 0x1a9   :  { %v1238_v52 = vpop.f32.mrf.mxu1 }
 0x1aa   :  { %v1210_v53 = vpop.f32.mrf.mxu0 }
 0x1ab   :  { %v1239_v54 = vpop.f32.mrf.mxu1 }
 0x1ac   :  { %v1211_v58 = vpop.f32.mrf.mxu0  ;;  %v1240_v63 = vadd.f32 %v1239_v54, %v1238_v52 }
 0x1ad   :  { %v1212_v59 = vadd.f32 %v1211_v58, %v1210_v53  ;;  %v1241_v60 = vpop.f32.mrf.mxu1 }
 0x1ae   :  { %v1213_v61 = vpop.f32.mrf.mxu0 }
 0x1af   :  { %v702_v62 = vadd.f32 %v1212_v59, %v1147_v57  ;;  %v1242_v0 = vpop.f32.mrf.mxu1 }
 0x1b0   :  { %v1214_v1 = vpop.f32.mrf.mxu0  ;;  %v1243_v16 = vadd.f32 %v1242_v0, %v1241_v60  ;;  %v1098_v0 = vld [vmem:[#allocation4] sm:$0x1] }
 0x1b1   :  { %v751_v6 = vadd.f32 %v1240_v63, %v702_v62  ;;  %v1215_v11 = vadd.f32 %v1214_v1, %v1213_v61  ;;  %v1244_v12 = vpop.f32.mrf.mxu1 }
 0x1b2   :  { %v1216_v13 = vpop.f32.mrf.mxu0 }
 0x1b3   :  { %v765_v14 = vmax.f32 %v751_v6, 0.0  ;;  %v705_v15 = vadd.f32 %v1215_v11, %v1147_v57  ;;  %v1245_v17 = vpop.f32.mrf.mxu1 }
 0x1b4   :  { %v1217_v18 = vpop.f32.mrf.mxu0  ;;  %v1246_v8 = vadd.f32 %v1245_v17, %v1244_v12 }
 0x1b5   :  { %v754_v20 = vadd.f32 %v1243_v16, %v705_v15  ;;  %v1218_v3 = vadd.f32 %v1217_v18, %v1216_v13  ;;  %1310 = vmatprep.mubr.msk.f32.mxu0 %vm789_vm4, %v765_v14  ;;  %1342 = vmatprep.mubr.msk.f32.mxu1 %vm789_vm4, %v765_v14  ;;  %v1247_v2 = vpop.f32.mrf.mxu1 }
 0x1b6   :  { %v1219_v4 = vpop.f32.mrf.mxu0 }
 0x1b7   :  { %v766_v5 = vmax.f32 %v754_v20, 0.0  ;;  %v710_v7 = vadd.f32 %v1218_v3, %v1147_v57  ;;  %v1248_v9 = vpop.f32.mrf.mxu1 }
 0x1b8   :  { %v1220_v21 = vpop.f32.mrf.mxu0  ;;  %v1249_v24 = vadd.f32 %v1248_v9, %v1247_v2 }
 0x1b9   :  { %v759_v10 = vadd.f32 %v1246_v8, %v710_v7  ;;  %v1221_v22 = vadd.f32 %v1220_v21, %v1219_v4  ;;  %1311 = vmatmul.mubr.msk.f32.vlgmr.msra.gmra.mxu0 %vm789_vm4, %v766_v5  ;;  %1343 = vmatmul.mubr.msk.f32.vlgmr.msra.gmra.mxu1 %vm789_vm4, %v766_v5 }
 0x1bb   :  { %v767_v23 = vmax.f32 %v759_v10, 0.0  ;;  %v713_v19 = vadd.f32 %v1221_v22, %v1147_v57 }
 0x1bd   :  { %v762_v25 = vadd.f32 %v1249_v24, %v713_v19  ;;  %1313 = vmatprep.mubr.msk.f32.mxu0 %vm789_vm4, %v767_v23  ;;  %1345 = vmatprep.mubr.msk.f32.mxu1 %vm789_vm4, %v767_v23 }
 0x1bf   :  { %v768_v26 = vmax.f32 %v762_v25, 0.0 }
 0x1c1   :  { %1314 = vmatmul.mubr.msk.f32.gmra.mxu0 %vm789_vm4, %v768_v26  ;;  %1346 = vmatmul.mubr.msk.f32.gmra.mxu1 %vm789_vm4, %v768_v26 }
 0x279   :  { %v1312_v56 = vpop.f32.mrf.mxu0  ;;  %v1344_v28 = vpop.f32.mrf.mxu1 }
 0x27b   :  { %v872_v30 = vpop.f32.mrf.mxu0  ;;  %v980_v31 = vpop.f32.mrf.mxu1 }
 0x27c   :  { %v873_v32 = vadd.f32 %v1182_v29, %v872_v30  ;;  %v981_v33 = vadd.f32 %v1188_v55, %v980_v31 }
 0x27e   :  { %v999_v34 = vsub.f32 0.0, %v873_v32  ;;  %v1023_v35 = vsub.f32 0.0, %v981_v33 }
 0x280   :  { %v1003_v36 = vmul.f32 1.442695, %v999_v34  ;;  %v1027_v37 = vmul.f32 1.442695, %v1023_v35 }
 0x281   :  { %v1315_v38 = vpop.f32.mrf.mxu0  ;;  %v1347_v39 = vpop.f32.mrf.mxu1 }
 0x282   :  { %1396 = vpow2.f32 %v1003_v36 }
 0x283   :  { %1398 = vpow2.f32 %v1027_v37  ;;  %v882_v40 = vpop.f32.mrf.mxu0  ;;  %v990_v41 = vpop.f32.mrf.mxu1 }
 0x28f   :  { %v1397_v42 = vpop.eup %1396 }
 0x290   :  { %v1399_v43 = vpop.eup %1398  ;;  %v1011_v44 = vadd.f32 1.0, %v1397_v42 }
 0x291   :  { %v1035_v45 = vadd.f32 1.0, %v1399_v43 }
 0x292   :  { %1400 = vrcp.f32 %v1011_v44 }
 0x293   :  { %1402 = vrcp.f32 %v1035_v45 }
 0x29f   :  { %v1401_v46 = vpop.eup %1400 }
 0x2a0   :  { %v1403_v47 = vpop.eup %1402 }
 0x2a1   :  { %v1047_v48 = vsub.f32 %v1401_v46, %v1403_v47 }
 0x2a3   :  { %v1051_v49 = vsub.f32 0.0, %v1047_v48 }
 0x2a5   :  { %v1055_v50 = vmul.f32 0.1, %v1051_v49 }
 0x2a7   :  { %v1059_v51 = vmul.f32 1.442695, %v1055_v50 }
 0x2a9   :  { %1404 = vpow2.f32 %v1059_v51 }
 0x2b6   :  { %v1405_v52 = vpop.eup %1404 }
 0x2b7   :  { %v1067_v53 = vadd.f32 1.0, %v1405_v52 }
 0x2b9   :  { %1406 = vrcp.f32 %v1067_v53 }
 0x2c6   :  { %v1407_v54 = vpop.eup %1406 }
 0x2c7   :  { %v1100_v57 = vsel %vm1099_vm6, %v1407_v54, 0.0 }
 0x2c8   :  { %v1107_v58 = vrot.slane %v1100_v57, 4 }
 0x2ca   :  { %v1108_v59 = vadd.f32 %v1107_v58, %v1100_v57 }
 0x2cc   :  { %v1109_v60 = vrot.slane %v1108_v59, 2 }
 0x2ce   :  { %v1110_v61 = vadd.f32 %v1109_v60, %v1108_v59 }
 0x2d0   :  { %v1111_v62 = vrot.slane %v1110_v61, 1 }
 0x2d2   :  { %v1112_v63 = vadd.f32 %v1111_v62, %v1110_v61 }
 0x2d4   :  { %v1113_v1 = vmul.f32 0.125, %v1112_v63 }
 0x2d6   :  { %v1114_v6 = vadd.f32 %v1113_v1, %v1098_v0 }
 0x2d8   :  { %1116 = vst.msk [vmem:[#allocation4] sm:$0x1] %vm48_vm5, %v1114_v6 }
 0x2d9   :  { %1419 = shalt.err (!%p1416_p4)
}
 0x2da   :  { %1126 = dma.vmem_to_hbm [thread:$0]  %s1124_s7, 16, %s1784_s11, [#allocation5]  }
 0x2db   :  { %1428 = dma.done.wait [#allocation5], 16  }
 0x2dc   :  { %1429 = vsyncadd [#allocation5], 4294967280 }
 0x2dd   :  { %1130 = vsyncpa [#allocation5], 1 }

// kernel: afc_forward.18
= control target key start
LH: loop header
LB: loop body
LE: loop exit
PB: predicated region body
PF: predicated region fallthrough
CT: control target
= control target key end

     0   :  { %v31_v0 = vlaneseq  ;;  %v304_v1 = vmov 0   ;;  %vm75_vm0 = vcmask 130048   ;;  %vm147_vm1 = vcmask 60416   ;;  %s397_s2 = inlined_call_operand.<no memory space> [shape: f32[1,1], index: 2, kind: input, shape index: {}]   ;;  %s398_s3 = inlined_call_operand.vmem [shape: bf16[16,8], index: 3, kind: input, shape index: {}]   ;;  %s399_s0 = inlined_call_operand.vmem [shape: f32[32,16], index: 0, kind: input, shape index: {}]   ;;  %s400_s1 = inlined_call_operand.vmem [shape: f32[32,16], index: 1, kind: input, shape index: {}]   ;;  %s401_s4 = inlined_call_operand.vmem [shape: f32[8,2], index: 4, kind: input, shape index: {}]   ;;  %s402_s5 = inlined_call_operand.vmem [shape: bf16[32,8], index: 5, kind: output, shape index: {0}]   ;;  %s403_s6 = inlined_call_operand.vmem [shape: f32[32,2], index: 6, kind: output, shape index: {1}]  }
   0x1   :  { %302 = vset.pattern.permute.xlu0 %v304_v1  ;;  %v12_v2 = vstv %s397_s2  ;;  %v303_v9 = vld [vmem:[%s398_s3] sm:$0xff]   ;;  %v28_v11 = vld [vmem:[%s399_s0 + $0x10] sm:$0xff]  ;;  %v29_v12 = vld [vmem:[%s399_s0 + $0x18] sm:$0xff]  ;;  %vm153_vm2 = vcmask 64512   ;;  %vm251_vm3 = vcmask 15360  }
   0x2   :  { %13 = vst [vmem:[#allocation2] sm:$0x1] %v12_v2  ;;  %v32_v3 = vshrl.u32 %v31_v0, 7  ;;  %287 = vmatprep.subr.bf16.mxu0 %v303_v9  ;;  %v44_v13 = vld [vmem:[%s400_s1] sm:$0xff]  ;;  %v27_v15 = vld [vmem:[%s399_s0 + $0x8] sm:$0xff]  ;;  %v46_v17 = vld [vmem:[%s400_s1 + $0x10] sm:$0xff] }
   0x3   :  { %288 = vmatpush3.bf16.msra.mxu0 %v303_v9  ;;  %v26_v14 = vld [vmem:[%s399_s0] sm:$0xff]  ;;  %v45_v16 = vld [vmem:[%s400_s1 + $0x8] sm:$0xff]  ;;  %v47_v18 = vld [vmem:[%s400_s1 + $0x18] sm:$0xff] }
   0x4   :  { %v33_v4 = vsub.s32 0, %v32_v3  ;;  %v152_v34 = vld [vmem:[%s401_s4] sm:$0xff] }
   0x5   :  { %293 = vmatprep.subr.mxu1 %v152_v34 }
   0x6   :  { %294 = vmatpush3.msra.mxu1 %v152_v34 }
   0x9   :  { %v25_v5 = vld [vmem:[#allocation2] sm:$0x1] }
   0xa   :  { %v34_v6 = vrot.slane %v25_v5, %v33_v4  ;;  %v43_v7 = vsub.f32 1.0, %v25_v5 }
   0xc   :  { %36 = vperm.xlu0 %302, %v34_v6   ;;  %v52_v8 = vrot.slane %v43_v7, %v33_v4 }
  0x10   :  { %54 = vperm.xlu0 %302, %v52_v8  }
  0x87   :  { %v37_v10 = vpop.permute.xlu0 %36 }
  0x88   :  { %v41_v19 = vmul.f32 %v37_v10, %v28_v11  ;;  %v42_v20 = vmul.f32 %v37_v10, %v29_v12  ;;  %v39_v22 = vmul.f32 %v37_v10, %v26_v14  ;;  %v40_v23 = vmul.f32 %v37_v10, %v27_v15 }
  0x8b   :  { %v55_v21 = vpop.permute.xlu0 %54 }
  0x8c   :  { %v57_v24 = vmul.f32 %v55_v21, %v44_v13  ;;  %v58_v25 = vmul.f32 %v55_v21, %v45_v16  ;;  %v59_v26 = vmul.f32 %v55_v21, %v46_v17  ;;  %v60_v27 = vmul.f32 %v55_v21, %v47_v18 }
  0x8e   :  { %v63_v28 = vadd.f32 %v59_v26, %v41_v19  ;;  %v64_v29 = vadd.f32 %v60_v27, %v42_v20  ;;  %v61_v30 = vadd.f32 %v57_v24, %v39_v22  ;;  %v62_v31 = vadd.f32 %v58_v25, %v40_v23 }
  0x90   :  { %v65_v32 = vpack.c.bf16 %v62_v31, %v61_v30  ;;  %v66_v33 = vpack.c.bf16 %v64_v29, %v63_v28 }
  0x92   :  { %289 = vmatprep.mubr.msk.bf16.mxu0 %vm75_vm0, %v65_v32 }
  0x93   :  { %290 = vmatmul.mubr.msk.bf16.vlgmr.msra.gmra.mxu0 %vm75_vm0, %v66_v33 }
 0x153   :  { %v291_v35 = vpop.f32.mrf.mxu0 }
 0x154   :  { %v277_v36 = vpack.c.bf16 %v291_v35, %v291_v35 }
 0x155   :  { %v116_v37 = vpop.f32.mrf.mxu0 }
 0x156   :  { %150 = vst.msk [vmem:[%s402_s5 + $0x8] sm:$0xf] %vm147_vm1, %v277_v36  ;;  %v275_v38 = vpack.c.bf16 %v116_v37, %v116_v37  ;;  %295 = vmatprep.mubr.msk.f32.mxu1 %vm153_vm2, %v116_v37 }
 0x157   :  { %v292_v39 = vpop.f32.mrf.mxu0 }
 0x158   :  { %148 = vst.msk [vmem:[%s402_s5] sm:$0xf] %vm147_vm1, %v275_v38  ;;  %v278_v40 = vpack.c.bf16 %v292_v39, %v292_v39 }
 0x159   :  { %v119_v41 = vpop.f32.mrf.mxu0 }
 0x15a   :  { %151 = vst.msk [vmem:[%s402_s5 + $0xc] sm:$0xf] %vm147_vm1, %v278_v40  ;;  %v276_v42 = vpack.c.bf16 %v119_v41, %v119_v41  ;;  %296 = vmatmul.mubr.msk.f32.vlgmr.msra.gmra.mxu1 %vm153_vm2, %v119_v41 }
 0x15b   :  { %298 = vmatprep.mubr.msk.f32.mxu1 %vm153_vm2, %v291_v35 }
 0x15c   :  { %149 = vst.msk [vmem:[%s402_s5 + $0x4] sm:$0xf] %vm147_vm1, %v276_v42 }
 0x15e   :  { %299 = vmatmul.mubr.msk.f32.gmra.mxu1 %vm153_vm2, %v292_v39 }
 0x21a   :  { %v297_v43 = vpop.f32.mrf.mxu1 }
 0x21b   :  { %253 = vst.msk [vmem:[%s403_s6 + $0x8] sm:$0xff] %vm251_vm3, %v297_v43 }
 0x21c   :  { %v232_v44 = vpop.f32.mrf.mxu1 }
 0x21d   :  { %252 = vst.msk [vmem:[%s403_s6] sm:$0xff] %vm251_vm3, %v232_v44 }
 0x21e   :  { %v300_v45 = vpop.f32.mrf.mxu1 }
 0x21f   :  { %255 = vst.msk [vmem:[%s403_s6 + $0x18] sm:$0xff] %vm251_vm3, %v300_v45 }
 0x220   :  { %v242_v46 = vpop.f32.mrf.mxu1 }
 0x221   :  { %254 = vst.msk [vmem:[%s403_s6 + $0x10] sm:$0xff] %vm251_vm3, %v242_v46 }

// kernel: afc_forward.15
= control target key start
LH: loop header
LB: loop body
LE: loop exit
PB: predicated region body
PF: predicated region fallthrough
CT: control target
= control target key end

     0   :  { %v31_v0 = vlaneseq  ;;  %v307_v1 = vmov 0   ;;  %vm75_vm0 = vcmask 130048   ;;  %vm147_vm1 = vcmask 125952   ;;  %s409_s2 = inlined_call_operand.<no memory space> [shape: f32[1,1], index: 2, kind: input, shape index: {}]   ;;  %s410_s3 = inlined_call_operand.vmem [shape: bf16[16,16], index: 3, kind: input, shape index: {}]   ;;  %s411_s0 = inlined_call_operand.vmem [shape: f32[32,16], index: 0, kind: input, shape index: {}]   ;;  %s412_s1 = inlined_call_operand.vmem [shape: f32[32,16], index: 1, kind: input, shape index: {}]   ;;  %s413_s4 = inlined_call_operand.vmem [shape: f32[16,2], index: 4, kind: input, shape index: {}]   ;;  %s414_s5 = inlined_call_operand.vmem [shape: bf16[32,16], index: 5, kind: output, shape index: {0}]   ;;  %s415_s6 = inlined_call_operand.vmem [shape: f32[32,2], index: 6, kind: output, shape index: {1}]  }
   0x1   :  { %305 = vset.pattern.permute.xlu0 %v307_v1  ;;  %v12_v2 = vstv %s409_s2  ;;  %v306_v9 = vld [vmem:[%s410_s3] sm:$0xff]   ;;  %v28_v11 = vld [vmem:[%s411_s0 + $0x10] sm:$0xff]  ;;  %v29_v12 = vld [vmem:[%s411_s0 + $0x18] sm:$0xff]  ;;  %vm251_vm2 = vcmask 15360  }
   0x2   :  { %13 = vst [vmem:[#allocation2] sm:$0x1] %v12_v2  ;;  %v32_v3 = vshrl.u32 %v31_v0, 7  ;;  %288 = vmatprep.subr.bf16.mxu0 %v306_v9  ;;  %v44_v13 = vld [vmem:[%s412_s1] sm:$0xff]  ;;  %v27_v15 = vld [vmem:[%s411_s0 + $0x8] sm:$0xff]  ;;  %v46_v17 = vld [vmem:[%s412_s1 + $0x10] sm:$0xff] }
   0x3   :  { %289 = vmatpush3.bf16.msra.mxu0 %v306_v9  ;;  %v26_v14 = vld [vmem:[%s411_s0] sm:$0xff]  ;;  %v45_v16 = vld [vmem:[%s412_s1 + $0x8] sm:$0xff]  ;;  %v47_v18 = vld [vmem:[%s412_s1 + $0x18] sm:$0xff] }
   0x4   :  { %v33_v4 = vsub.s32 0, %v32_v3  ;;  %v153_v34 = vld [vmem:[%s413_s4 + $0x8] sm:$0xff]  ;;  %v152_v35 = vld [vmem:[%s413_s4] sm:$0xff] }
   0x5   :  { %294 = vmatprep.subr.mxu1 %v153_v34 }
   0x6   :  { %295 = vmatpush3.msra.mxu1 %v153_v34 }
   0x7   :  { %296 = vmatprep.subr.mxu1 %v152_v35 }
   0x8   :  { %297 = vmatpush3.msra.mxu1 %v152_v35 }
   0x9   :  { %v25_v5 = vld [vmem:[#allocation2] sm:$0x1] }
   0xa   :  { %v34_v6 = vrot.slane %v25_v5, %v33_v4  ;;  %v43_v7 = vsub.f32 1.0, %v25_v5 }
   0xc   :  { %36 = vperm.xlu0 %305, %v34_v6   ;;  %v52_v8 = vrot.slane %v43_v7, %v33_v4 }
  0x10   :  { %54 = vperm.xlu0 %305, %v52_v8  }
  0x87   :  { %v37_v10 = vpop.permute.xlu0 %36 }
  0x88   :  { %v41_v19 = vmul.f32 %v37_v10, %v28_v11  ;;  %v42_v20 = vmul.f32 %v37_v10, %v29_v12  ;;  %v39_v22 = vmul.f32 %v37_v10, %v26_v14  ;;  %v40_v23 = vmul.f32 %v37_v10, %v27_v15 }
  0x8b   :  { %v55_v21 = vpop.permute.xlu0 %54 }
  0x8c   :  { %v57_v24 = vmul.f32 %v55_v21, %v44_v13  ;;  %v58_v25 = vmul.f32 %v55_v21, %v45_v16  ;;  %v59_v26 = vmul.f32 %v55_v21, %v46_v17  ;;  %v60_v27 = vmul.f32 %v55_v21, %v47_v18 }
  0x8e   :  { %v63_v28 = vadd.f32 %v59_v26, %v41_v19  ;;  %v64_v29 = vadd.f32 %v60_v27, %v42_v20  ;;  %v61_v30 = vadd.f32 %v57_v24, %v39_v22  ;;  %v62_v31 = vadd.f32 %v58_v25, %v40_v23 }
  0x90   :  { %v65_v32 = vpack.c.bf16 %v62_v31, %v61_v30  ;;  %v66_v33 = vpack.c.bf16 %v64_v29, %v63_v28 }
  0x92   :  { %290 = vmatprep.mubr.msk.bf16.mxu0 %vm75_vm0, %v65_v32 }
  0x93   :  { %291 = vmatmul.mubr.msk.bf16.vlgmr.msra.gmra.mxu0 %vm75_vm0, %v66_v33 }
 0x153   :  { %v292_v36 = vpop.f32.mrf.mxu0 }
 0x154   :  { %v277_v37 = vpack.c.bf16 %v292_v36, %v292_v36 }
 0x155   :  { %v116_v38 = vpop.f32.mrf.mxu0 }
 0x156   :  { %150 = vst.msk [vmem:[%s414_s5 + $0x8] sm:$0xf] %vm147_vm1, %v277_v37  ;;  %v275_v39 = vpack.c.bf16 %v116_v38, %v116_v38  ;;  %298 = vmatprep.mubr.msk.f32.mxu1 %vm75_vm0, %v116_v38 }
 0x157   :  { %v293_v40 = vpop.f32.mrf.mxu0 }
 0x158   :  { %148 = vst.msk [vmem:[%s414_s5] sm:$0xf] %vm147_vm1, %v275_v39  ;;  %v278_v41 = vpack.c.bf16 %v293_v40, %v293_v40 }
 0x159   :  { %v119_v42 = vpop.f32.mrf.mxu0 }
 0x15a   :  { %151 = vst.msk [vmem:[%s414_s5 + $0xc] sm:$0xf] %vm147_vm1, %v278_v41  ;;  %v276_v43 = vpack.c.bf16 %v119_v42, %v119_v42  ;;  %299 = vmatmul.mubr.msk.f32.vlgmr.msra.gmra.mxu1 %vm75_vm0, %v119_v42 }
 0x15b   :  { %301 = vmatprep.mubr.msk.f32.mxu1 %vm75_vm0, %v292_v36 }
 0x15c   :  { %149 = vst.msk [vmem:[%s414_s5 + $0x4] sm:$0xf] %vm147_vm1, %v276_v43 }
 0x15e   :  { %302 = vmatmul.mubr.msk.f32.gmra.mxu1 %vm75_vm0, %v293_v40 }
 0x21a   :  { %v300_v44 = vpop.f32.mrf.mxu1 }
 0x21b   :  { %253 = vst.msk [vmem:[%s415_s6 + $0x8] sm:$0xff] %vm251_vm2, %v300_v44 }
 0x21c   :  { %v232_v45 = vpop.f32.mrf.mxu1 }
 0x21d   :  { %252 = vst.msk [vmem:[%s415_s6] sm:$0xff] %vm251_vm2, %v232_v45 }
 0x21e   :  { %v303_v46 = vpop.f32.mrf.mxu1 }
 0x21f   :  { %255 = vst.msk [vmem:[%s415_s6 + $0x18] sm:$0xff] %vm251_vm2, %v303_v46 }
 0x220   :  { %v242_v47 = vpop.f32.mrf.mxu1 }
 0x221   :  { %254 = vst.msk [vmem:[%s415_s6 + $0x10] sm:$0xff] %vm251_vm2, %v242_v47 }

// kernel: afc_forward.19
= control target key start
LH: loop header
LB: loop body
LE: loop exit
PB: predicated region body
PF: predicated region fallthrough
CT: control target
= control target key end

     0   :  { %vm124_vm0 = vcmask 7168   ;;  %vm133_vm1 = vcmask 64512   ;;  %v582_v0 = vmov -9e+15   ;;  %v583_v1 = vmov 0.0   ;;  %s748_s0 = inlined_call_operand.<no memory space> [shape: s32[1,1], index: 0, kind: input, shape index: {}]   ;;  %s749_s1 = inlined_call_operand.<no memory space> [shape: s32[1], index: 1, kind: input, shape index: {}]   ;;  %s750_s2 = inlined_call_operand.vmem [shape: f32[32,1], index: 2, kind: input, shape index: {}]   ;;  %s751_s6 = inlined_call_operand.vmem [shape: f32[32,8], index: 6, kind: output, shape index: {}]   ;;  %s752_s3 = inlined_call_operand.vmem [shape: f32[1,32], index: 3, kind: input, shape index: {}]   ;;  %s753_s5 = inlined_call_operand.vmem [shape: s8[32,32], index: 5, kind: input, shape index: {}]   ;;  %s754_s4 = inlined_call_operand.vmem [shape: bf16[32,8], index: 4, kind: input, shape index: {}]  }
   0x1   :  { %p86_p0 = scmp.lt.s32.totalorder %s748_s0, 0  ;;  %s514_s25 = sshll.u32 %s748_s0, 2  ;;  %125 = vst.msk [vmem:[#allocation2] sm:$0xff] %vm124_vm0, %v582_v0  ;;  %126 = vst.msk [vmem:[#allocation2 + $0x8] sm:$0xff] %vm124_vm0, %v582_v0 }
   0x2   :  { %127 = vst.msk [vmem:[#allocation2 + $0x10] sm:$0xff] %vm124_vm0, %v582_v0  ;;  %128 = vst.msk [vmem:[#allocation2 + $0x18] sm:$0xff] %vm124_vm0, %v582_v0  ;;  %p98_p1 = scmp.lt.s32.totalorder %s514_s25, 3  ;;  %p518_p2 = scmp.le.s32.totalorder %s749_s1, 0 }
   0x3   :  { %129 = vst.msk [vmem:[#allocation3] sm:$0xff] %vm124_vm0, %v583_v1  ;;  %130 = vst.msk [vmem:[#allocation3 + $0x8] sm:$0xff] %vm124_vm0, %v583_v1  ;;  %s756_s0 = smov (!%p86_p0, %s748_s0), 0 }
   0x4   :  { %131 = vst.msk [vmem:[#allocation3 + $0x10] sm:$0xff] %vm124_vm0, %v583_v1  ;;  %132 = vst.msk [vmem:[#allocation3 + $0x18] sm:$0xff] %vm124_vm0, %v583_v1  ;;  %s758_s25 = smov (!%p98_p1, %s514_s25), 3  ;;  %s88_s8 = scalar_lea.vmem %s752_s3, %s756_s0 }
   0x5   :  { %134 = vst.msk [vmem:[#allocation4] sm:$0xff] %vm133_vm1, %v583_v1  ;;  %135 = vst.msk [vmem:[#allocation4 + $0x8] sm:$0xff] %vm133_vm1, %v583_v1  ;;  %s516_s9 = sshll.u32 %s756_s0, 3  ;;  %s515_s10 = sshll.u32 %s758_s25, 2 }
   0x6   :  { %136 = vst.msk [vmem:[#allocation4 + $0x10] sm:$0xff] %vm133_vm1, %v583_v1  ;;  %137 = vst.msk [vmem:[#allocation4 + $0x18] sm:$0xff] %vm133_vm1, %v583_v1  ;;  %s114_s13 = scalar_lea.vmem %s753_s5, %s516_s9  ;;  %s655_s16 = scalar_lea.vmem %s754_s4, %s515_s10 }
   0x7   :  { %142 = sbr.rel (%p518_p2) target bundleno = 640 (0x280), region = 25 }
   0xc   :  { %v158_v2 = vld [vmem:[%s750_s2 + $0x10] sm:$0xff]  ;;  %v156_v3 = vld [vmem:[%s750_s2] sm:$0xff]  ;;  %v584_v4 = vmov 0   ;;  %v159_v5 = vld [vmem:[%s750_s2 + $0x18] sm:$0xff]  ;;  %vm211_vm5 = vcmask 261120  }
   0xd   :  { %545 = vset.pattern.permute.xlu1 %v584_v4  ;;  %544 = vset.pattern.permute.xlu0 %v584_v4  ;;  %v157_v6 = vld [vmem:[%s750_s2 + $0x8] sm:$0xff]  ;;  %v143_v7 = vld [vmem:[%s114_s13] sm:$0xff]  ;;  %v209_v45 = vld [vmem:[#allocation2 + $0x10] sm:$0xff] }
   0xe   :  { %173 = vperm.xlu1 %545, %v158_v2   ;;  %163 = vperm.xlu0 %544, %v156_v3   ;;  %v144_v8 = vunpack.c.0.s8 %v143_v7  ;;  %v146_v9 = vunpack.c.2.s8 %v143_v7  ;;  %v519_v10 = vld [vmem:[%s88_s8] ss:$0 sm:$0xff]  ;;  %v145_v12 = vunpack.c.1.s8 %v143_v7  ;;  %v147_v16 = vunpack.c.3.s8 %v143_v7  ;;  %v699_v44 = vld [vmem:[#allocation2 + $0x8] sm:$0xff]  ;;  %v210_v52 = vld [vmem:[#allocation2 + $0x18] sm:$0xff] }
   0xf   :  { %v207_v41 = vld [vmem:[#allocation2] sm:$0xff]  ;;  %v546_v58 = vld [vmem:[%s655_s16 + $0x8] sm:$0xff]  }
  0x10   :  { %v672_v11 = vcvt.s32.f32 %v144_v8  ;;  %v674_v15 = vcvt.s32.f32 %v146_v9  ;;  %v677_v19 = vcvt.s32.f32 %v145_v12  ;;  %v680_v24 = vcvt.s32.f32 %v147_v16  ;;  %532 = vmatprep.subr.bf16.mxu0 %v546_v58  ;;  %v547_v60 = vld [vmem:[%s655_s16] sm:$0xff]  }
  0x11   :  { %533 = vmatpush3.bf16.msra.mxu0 %v546_v58 }
  0x12   :  { %178 = vperm.xlu1 %545, %v159_v5   ;;  %168 = vperm.xlu0 %544, %v157_v6   ;;  %vm152_vm2 = vcmp.gt.f32.partialorder %v672_v11, 0.0  ;;  %vm154_vm6 = vcmp.gt.f32.partialorder %v674_v15, 0.0  ;;  %vm153_vm7 = vcmp.gt.f32.partialorder %v677_v19, 0.0  ;;  %vm155_vm10 = vcmp.gt.f32.partialorder %v680_v24, 0.0 }
  0x13   :  { %534 = vmatprep.subr.bf16.mxu0 %v547_v60 }
  0x15   :  { %535 = vmatpush3.bf16.msra.mxu0 %v547_v60 }
  0x89   :  { %v174_v13 = vpop.permute.xlu1 %173  ;;  %v164_v14 = vpop.permute.xlu0 %163 }
  0x8a   :  { %v189_v17 = vadd.f32 %v519_v10, %v174_v13  ;;  %v187_v18 = vadd.f32 %v519_v10, %v164_v14 }
  0x8c   :  { %v197_v20 = vmul.f32 0.2, %v189_v17  ;;  %v195_v21 = vmul.f32 0.2, %v187_v18  ;;  %vm191_vm3 = vcmp.gt.f32.partialorder %v187_v18, 0.0  ;;  %vm193_vm4 = vcmp.gt.f32.partialorder %v189_v17, 0.0 }
  0x8d   :  { %v179_v22 = vpop.permute.xlu1 %178  ;;  %v169_v23 = vpop.permute.xlu0 %168 }
  0x8e   :  { %v190_v25 = vadd.f32 %v519_v10, %v179_v22  ;;  %v188_v26 = vadd.f32 %v519_v10, %v169_v23  ;;  %v199_v27 = vsel %vm191_vm3, %v187_v18, %v195_v21  ;;  %v682_v28 = vsel %vm193_vm4, %v189_v17, %v197_v20 }
  0x8f   :  { %v203_v29 = vsel %vm152_vm2, %v199_v27, -9e+15  ;;  %v205_v33 = vsel %vm154_vm6, %v682_v28, -9e+15 }
  0x90   :  { %v198_v30 = vmul.f32 0.2, %v190_v25  ;;  %v196_v31 = vmul.f32 0.2, %v188_v26  ;;  %v212_v32 = vsel %vm211_vm5, %v203_v29, -inf  ;;  %vm192_vm8 = vcmp.gt.f32.partialorder %v188_v26, 0.0 }
  0x91   :  { %213 = vmax.xlane.f32.xlu0 %v212_v32  ;;  %vm194_vm9 = vcmp.gt.f32.partialorder %v190_v25, 0.0  ;;  %v218_v38 = vsel %vm211_vm5, %v205_v33, -inf  ;;  %v278_v32 = vld [vmem:[#allocation3 + $0x10] sm:$0xff] }
  0x92   :  { %v200_v34 = vsel %vm192_vm8, %v188_v26, %v196_v31  ;;  %v202_v35 = vsel %vm194_vm9, %v190_v25, %v198_v30  ;;  %v276_v30 = vld [vmem:[#allocation3] sm:$0xff] }
  0x93   :  { %v204_v36 = vsel %vm153_vm7, %v200_v34, -9e+15  ;;  %v206_v39 = vsel %vm155_vm10, %v202_v35, -9e+15 }
  0x94   :  { %v215_v37 = vsel %vm211_vm5, %v204_v36, -inf  ;;  %v221_v40 = vsel %vm211_vm5, %v206_v39, -inf  ;;  %v279_v39 = vld [vmem:[#allocation3 + $0x18] sm:$0xff] }
  0x95   :  { %216 = vmax.xlane.f32.xlu1 %v215_v37  ;;  %219 = vmax.xlane.f32.xlu0 %v218_v38 }
  0x99   :  { %222 = vmax.xlane.f32.xlu0 %v221_v40 }
 0x11a   :  { %v214_v42 = vpop.xlane.xlu0 %213 }
 0x11b   :  { %v224_v43 = vmax.f32 %v207_v41, %v214_v42 }
 0x11d   :  { %v228_v46 = vsub.f32 %v207_v41, %v224_v43  ;;  %415 = vst.msk [vmem:[#allocation2] sm:$0xff] %vm124_vm0, %v224_v43  ;;  %242 = vperm.xlu1 %545, %v224_v43  }
 0x11e   :  { %v217_v47 = vpop.xlane.xlu1 %216  ;;  %v220_v48 = vpop.xlane.xlu0 %219 }
 0x11f   :  { %v232_v49 = vmul.f32 1.442695, %v228_v46  ;;  %v225_v50 = vmax.f32 %v699_v44, %v217_v47  ;;  %v226_v51 = vmax.f32 %v209_v45, %v220_v48  ;;  %v307_v47 = vld [vmem:[#allocation4 + $0x10] sm:$0xff]  ;;  %v305_v48 = vld [vmem:[#allocation4] sm:$0xff] }
 0x121   :  { %548 = vpow2.f32 %v232_v49  ;;  %v229_v53 = vsub.f32 %v699_v44, %v225_v50  ;;  %416 = vst.msk [vmem:[#allocation2 + $0x8] sm:$0xff] %vm124_vm0, %v225_v50  ;;  %v230_v54 = vsub.f32 %v209_v45, %v226_v51  ;;  %417 = vst.msk [vmem:[#allocation2 + $0x10] sm:$0xff] %vm124_vm0, %v226_v51  ;;  %247 = vperm.xlu0 %544, %v225_v50   ;;  %252 = vperm.xlu1 %545, %v226_v51   ;;  %v308_v50 = vld [vmem:[#allocation4 + $0x18] sm:$0xff] }
 0x122   :  { %v223_v55 = vpop.xlane.xlu0 %222 }
 0x123   :  { %v227_v56 = vmax.f32 %v210_v52, %v223_v55  ;;  %v236_v20 = vmul.f32 1.442695, %v230_v54  ;;  %v234_v19 = vmul.f32 1.442695, %v229_v53  ;;  %v306_v55 = vld [vmem:[#allocation4 + $0x8] sm:$0xff] }
 0x125   :  { %v231_v57 = vsub.f32 %v210_v52, %v227_v56  ;;  %418 = vst.msk [vmem:[#allocation2 + $0x18] sm:$0xff] %vm124_vm0, %v227_v56  ;;  %257 = vperm.xlu1 %545, %v227_v56  }
 0x127   :  { %v238_v26 = vmul.f32 1.442695, %v231_v57 }
 0x12e   :  { %v549_v59 = vpop.eup %548 }
 0x12f   :  { %311 = vperm.xlu1 %545, %v549_v59   ;;  %v280_v24 = vmul.f32 %v549_v59, %v276_v30 }
 0x198   :  { %v243_v61 = vpop.permute.xlu1 %242 }
 0x199   :  { %v260_v62 = vsub.f32 %v199_v27, %v243_v61 }
 0x19b   :  { %v264_v63 = vmul.f32 1.442695, %v260_v62 }
 0x19c   :  { %v253_v0 = vpop.permute.xlu1 %252  ;;  %v248_v1 = vpop.permute.xlu0 %247 }
 0x19d   :  { %550 = vpow2.f32 %v264_v63  ;;  %v262_v2 = vsub.f32 %v682_v28, %v253_v0  ;;  %v261_v3 = vsub.f32 %v200_v34, %v248_v1 }
 0x19f   :  { %v268_v4 = vmul.f32 1.442695, %v262_v2  ;;  %v266_v5 = vmul.f32 1.442695, %v261_v3 }
 0x1a0   :  { %v258_v6 = vpop.permute.xlu1 %257 }
 0x1a1   :  { %552 = vpow2.f32 %v268_v4  ;;  %v263_v7 = vsub.f32 %v202_v35, %v258_v6  ;;  %v277_v35 = vld [vmem:[#allocation3 + $0x8] sm:$0xff] }
 0x1a2   :  { %554 = vpow2.f32 %v266_v5 }
 0x1a3   :  { %v270_v8 = vmul.f32 1.442695, %v263_v7 }
 0x1a5   :  { %556 = vpow2.f32 %v270_v8 }
 0x1a6   :  { %558 = vpow2.f32 %v236_v20 }
 0x1a7   :  { %560 = vpow2.f32 %v238_v26 }
 0x1a8   :  { %562 = vpow2.f32 %v234_v19 }
 0x1aa   :  { %v551_v9 = vpop.eup %550  ;;  %v312_v33 = vpop.permute.xlu1 %311 }
 0x1ab   :  { %v272_v10 = vsel %vm152_vm2, %v551_v9, 0.0  ;;  %v329_v53 = vmul.f32 %v312_v33, %v305_v48 }
 0x1ac   :  { %v284_v12 = vsel %vm211_vm5, %v272_v10, 0.0 }
 0x1ad   :  { %285 = vadd.xlane.f32.xlu0 %v284_v12 }
 0x1ae   :  { %v553_v13 = vpop.eup %552 }
 0x1af   :  { %v555_v14 = vpop.eup %554  ;;  %v274_v16 = vsel %vm154_vm6, %v553_v13, 0.0 }
 0x1b0   :  { %v290_v17 = vsel %vm211_vm5, %v274_v16, 0.0  ;;  %v273_v18 = vsel %vm153_vm7, %v555_v14, 0.0 }
 0x1b1   :  { %291 = vadd.xlane.f32.xlu0 %v290_v17  ;;  %v287_v21 = vsel %vm211_vm5, %v273_v18, 0.0  ;;  %v333_v22 = vpack.c.bf16 %v273_v18, %v272_v10 }
 0x1b2   :  { %v557_v11 = vpop.eup %556  ;;  %288 = vadd.xlane.f32.xlu1 %v287_v21 }
 0x1b3   :  { %536 = vmatprep.mubr.msk.bf16.mxu0 %vm211_vm5, %v333_v22  ;;  %v275_v23 = vsel %vm155_vm10, %v557_v11, 0.0  ;;  %v559_v27 = vpop.eup %558 }
 0x1b4   :  { %v293_v15 = vsel %vm211_vm5, %v275_v23, 0.0  ;;  %v334_v25 = vpack.c.bf16 %v275_v23, %v274_v16  ;;  %v561_v28 = vpop.eup %560  ;;  %v282_v36 = vmul.f32 %v559_v27, %v278_v32 }
 0x1b5   :  { %294 = vadd.xlane.f32.xlu0 %v293_v15  ;;  %v563_v29 = vpop.eup %562  ;;  %v283_v43 = vmul.f32 %v561_v28, %v279_v39 }
 0x1b6   :  { %537 = vmatmul.mubr.msk.bf16.vlgmr.msra.gmra.mxu0 %vm211_vm5, %v334_v25  ;;  %v281_v37 = vmul.f32 %v563_v29, %v277_v35 }
 0x1c3   :  { %321 = vperm.xlu1 %545, %v559_v27  }
 0x1c7   :  { %326 = vperm.xlu1 %545, %v561_v28  }
 0x1cb   :  { %316 = vperm.xlu0 %544, %v563_v29  }
 0x236   :  { %v286_v31 = vpop.xlane.xlu0 %285 }
 0x237   :  { %v296_v34 = vadd.f32 %v286_v31, %v280_v24 }
 0x239   :  { %301 = vst.msk [vmem:[#allocation3] sm:$0xff] %vm124_vm0, %v296_v34 }
 0x23a   :  { %v292_v38 = vpop.xlane.xlu0 %291 }
 0x23b   :  { %v289_v40 = vpop.xlane.xlu1 %288  ;;  %v298_v41 = vadd.f32 %v292_v38, %v282_v36 }
 0x23c   :  { %v297_v42 = vadd.f32 %v289_v40, %v281_v37 }
 0x23d   :  { %303 = vst.msk [vmem:[#allocation3 + $0x10] sm:$0xff] %vm124_vm0, %v298_v41 }
 0x23e   :  { %302 = vst.msk [vmem:[#allocation3 + $0x8] sm:$0xff] %vm124_vm0, %v297_v42  ;;  %v295_v44 = vpop.xlane.xlu0 %294 }
 0x23f   :  { %v299_v45 = vadd.f32 %v295_v44, %v283_v43  ;;  %v322_v46 = vpop.permute.xlu1 %321 }
 0x240   :  { %v331_v49 = vmul.f32 %v322_v46, %v307_v47 }
 0x241   :  { %304 = vst.msk [vmem:[#allocation3 + $0x18] sm:$0xff] %vm124_vm0, %v299_v45 }
 0x243   :  { %v327_v51 = vpop.permute.xlu1 %326 }
 0x244   :  { %v332_v58 = vmul.f32 %v327_v51, %v308_v50 }
 0x246   :  { %v317_v56 = vpop.permute.xlu0 %316 }
 0x247   :  { %v330_v61 = vmul.f32 %v317_v56, %v306_v55 }
 0x276   :  { %v538_v52 = vpop.f32.mrf.mxu0 }
 0x277   :  { %v408_v54 = vadd.f32 %v538_v52, %v331_v49 }
 0x278   :  { %v391_v57 = vpop.f32.mrf.mxu0 }
 0x279   :  { %413 = vst.msk [vmem:[#allocation4 + $0x10] sm:$0xff] %vm133_vm1, %v408_v54  ;;  %v406_v59 = vadd.f32 %v391_v57, %v329_v53 }
 0x27a   :  { %v539_v60 = vpop.f32.mrf.mxu0 }
 0x27b   :  { %411 = vst.msk [vmem:[#allocation4] sm:$0xff] %vm133_vm1, %v406_v59  ;;  %v409_v62 = vadd.f32 %v539_v60, %v332_v58 }
 0x27c   :  { %v394_v63 = vpop.f32.mrf.mxu0 }
 0x27d   :  { %414 = vst.msk [vmem:[#allocation4 + $0x18] sm:$0xff] %vm133_vm1, %v409_v62  ;;  %v407_v0 = vadd.f32 %v394_v63, %v330_v61 }
 0x27f   :  { %412 = vst.msk [vmem:[#allocation4 + $0x8] sm:$0xff] %vm133_vm1, %v407_v0 }
 0x280 PF:  { %v424_v1 = vld [vmem:[#allocation3 + $0x10] sm:$0xff]  ;;  %v422_v2 = vld [vmem:[#allocation3] sm:$0xff]  ;;  %v425_v3 = vld [vmem:[#allocation3 + $0x18] sm:$0xff]  ;;  %v585_v4 = vmov 0  }
 0x281   :  { %565 = vset.pattern.permute.xlu1 %v585_v4  ;;  %564 = vset.pattern.permute.xlu0 %v585_v4  ;;  %vm428_vm11 = vcmp.gt.f32.partialorder %v424_v1, 0.0  ;;  %vm426_vm12 = vcmp.gt.f32.partialorder %v422_v2, 0.0  ;;  %vm429_vm13 = vcmp.gt.f32.partialorder %v425_v3, 0.0  ;;  %v423_v5 = vld [vmem:[#allocation3 + $0x8] sm:$0xff]  ;;  %v440_v16 = vld [vmem:[#allocation4 + $0x10] sm:$0xff] }
 0x282   :  { %v432_v6 = vsel %vm428_vm11, %v424_v1, 1.0  ;;  %v430_v7 = vsel %vm426_vm12, %v422_v2, 1.0  ;;  %v433_v8 = vsel %vm429_vm13, %v425_v3, 1.0  ;;  %vm427_vm14 = vcmp.gt.f32.partialorder %v423_v5, 0.0  ;;  %v438_v17 = vld [vmem:[#allocation4] sm:$0xff] }
 0x283   :  { %566 = vrcp.f32 %v432_v6  ;;  %v431_v9 = vsel %vm427_vm14, %v423_v5, 1.0 }
 0x284   :  { %568 = vrcp.f32 %v430_v7  ;;  %v441_v11 = vld [vmem:[#allocation4 + $0x18] sm:$0xff] }
 0x285   :  { %570 = vrcp.f32 %v433_v8 }
 0x286   :  { %572 = vrcp.f32 %v431_v9  ;;  %v439_v15 = vld [vmem:[#allocation4 + $0x8] sm:$0xff] }
 0x290   :  { %v567_v10 = vpop.eup %566 }
 0x291   :  { %v569_v12 = vpop.eup %568  ;;  %454 = vperm.xlu1 %565, %v567_v10  }
 0x292   :  { %v571_v13 = vpop.eup %570  ;;  %444 = vperm.xlu0 %564, %v569_v12  }
 0x293   :  { %v573_v14 = vpop.eup %572 }
 0x295   :  { %459 = vperm.xlu1 %565, %v571_v13  }
 0x296   :  { %449 = vperm.xlu0 %564, %v573_v14  }
 0x30c   :  { %v455_v18 = vpop.permute.xlu1 %454 }
 0x30d   :  { %v464_v20 = vmul.f32 %v455_v18, %v440_v16  ;;  %v445_v21 = vpop.permute.xlu0 %444 }
 0x30e   :  { %v462_v22 = vmul.f32 %v445_v21, %v438_v17 }
 0x30f   :  { %v472_v23 = vmin.f32 %v464_v20, 0.0  ;;  %vm468_vm15 = vcmp.gt.f32.partialorder %v464_v20, 0.0 }
 0x310   :  { %v470_v25 = vmin.f32 %v462_v22, 0.0  ;;  %v460_v26 = vpop.permute.xlu1 %459  ;;  %vm466_vm0 = vcmp.gt.f32.partialorder %v462_v22, 0.0 }
 0x311   :  { %v478_v19 = vmul.f32 1.442695, %v472_v23  ;;  %v465_v27 = vmul.f32 %v460_v26, %v441_v11  ;;  %v450_v28 = vpop.permute.xlu0 %449 }
 0x312   :  { %v474_v29 = vmul.f32 1.442695, %v470_v25  ;;  %v463_v30 = vmul.f32 %v450_v28, %v439_v15 }
 0x313   :  { %574 = vpow2.f32 %v478_v19  ;;  %v473_v24 = vmin.f32 %v465_v27, 0.0  ;;  %vm469_vm2 = vcmp.gt.f32.partialorder %v465_v27, 0.0 }
 0x314   :  { %576 = vpow2.f32 %v474_v29  ;;  %v471_v31 = vmin.f32 %v463_v30, 0.0  ;;  %vm467_vm3 = vcmp.gt.f32.partialorder %v463_v30, 0.0 }
 0x315   :  { %v480_v32 = vmul.f32 1.442695, %v473_v24 }
 0x316   :  { %v476_v33 = vmul.f32 1.442695, %v471_v31 }
 0x317   :  { %578 = vpow2.f32 %v480_v32 }
 0x318   :  { %580 = vpow2.f32 %v476_v33 }
 0x320   :  { %v575_v34 = vpop.eup %574 }
 0x321   :  { %v577_v35 = vpop.eup %576  ;;  %v526_v36 = vadd.f32 -1.0, %v575_v34 }
 0x322   :  { %v524_v37 = vadd.f32 -1.0, %v577_v35 }
 0x323   :  { %v488_v38 = vsel %vm468_vm15, %v464_v20, %v526_v36 }
 0x324   :  { %v579_v39 = vpop.eup %578  ;;  %493 = vst.msk [vmem:[%s751_s6 + $0x10] sm:$0xff] %vm133_vm1, %v488_v38  ;;  %v486_v40 = vsel %vm466_vm0, %v462_v22, %v524_v37 }
 0x325   :  { %v581_v41 = vpop.eup %580  ;;  %491 = vst.msk [vmem:[%s751_s6] sm:$0xff] %vm133_vm1, %v486_v40  ;;  %v527_v42 = vadd.f32 -1.0, %v579_v39 }
 0x326   :  { %v525_v43 = vadd.f32 -1.0, %v581_v41 }
 0x327   :  { %v489_v44 = vsel %vm469_vm2, %v465_v27, %v527_v42 }
 0x328   :  { %494 = vst.msk [vmem:[%s751_s6 + $0x18] sm:$0xff] %vm133_vm1, %v489_v44  ;;  %v487_v45 = vsel %vm467_vm3, %v463_v30, %v525_v43 }
 0x329   :  { %492 = vst.msk [vmem:[%s751_s6 + $0x8] sm:$0xff] %vm133_vm1, %v487_v45 }

// kernel: afc_forward.21
= control target key start
LH: loop header
LB: loop body
LE: loop exit
PB: predicated region body
PF: predicated region fallthrough
CT: control target
= control target key end

     0   :  { %v40_v0 = vlaneseq  ;;  %vm78_vm0 = vcmask 64512   ;;  %v476_v1 = vmov 0   ;;  %vm176_vm1 = vcmask 31744   ;;  %s617_s2 = inlined_call_operand.<no memory space> [shape: f32[1,1], index: 2, kind: input, shape index: {}]   ;;  %s618_s5 = inlined_call_operand.vmem [shape: f32[8,4], index: 5, kind: input, shape index: {}]   ;;  %s619_s1 = inlined_call_operand.vmem [shape: f32[32,8], index: 1, kind: input, shape index: {}]   ;;  %s620_s3 = inlined_call_operand.vmem [shape: f32[8,4], index: 3, kind: input, shape index: {}]   ;;  %s621_s0 = inlined_call_operand.vmem [shape: f32[32,8], index: 0, kind: input, shape index: {}]   ;;  %s622_s6 = inlined_call_operand.vmem [shape: f32[1,4], index: 6, kind: input, shape index: {}]   ;;  %s623_s4 = inlined_call_operand.vmem [shape: f32[1,4], index: 4, kind: input, shape index: {}]   ;;  %s624_s8 = inlined_call_operand.vmem [shape: f32[32,4], index: 8, kind: output, shape index: {1}]   ;;  %s625_s7 = inlined_call_operand.vmem [shape: f32[32,4], index: 7, kind: output, shape index: {0}]  }
   0x1   :  { %443 = vset.pattern.permute.xlu0 %v476_v1  ;;  %v14_v2 = vstv %s617_s2  ;;  %v241_v3 = vld [vmem:[%s618_s5] sm:$0xff]  ;;  %v32_v5 = vld [vmem:[%s619_s1 + $0x8] sm:$0xff]  ;;  %v33_v11 = vld [vmem:[%s619_s1 + $0x10] sm:$0xff] }
   0x2   :  { %v31_v4 = vld [vmem:[%s619_s1] sm:$0xff]  ;;  %15 = vst [vmem:[#allocation2] sm:$0x1] %v14_v2  ;;  %v41_v6 = vshrl.u32 %v40_v0, 7  ;;  %434 = vmatprep.subr.mxu1 %v241_v3  ;;  %v34_v13 = vld [vmem:[%s619_s1 + $0x18] sm:$0xff]  ;;  %v226_v16 = vmul.f32 %v32_v5, %v32_v5  ;;  %v227_v19 = vmul.f32 %v33_v11, %v33_v11  ;;  %v36_v24 = vld [vmem:[%s621_s0 + $0x8] sm:$0xff] }
   0x3   :  { %436 = vmatprep.mubr.msk.f32.mxu1 %vm78_vm0, %v31_v4  ;;  %435 = vmatpush3.msra.mxu1 %v241_v3  ;;  %v70_v14 = vld [vmem:[%s620_s3] sm:$0xff]  ;;  %v225_v15 = vmul.f32 %v31_v4, %v31_v4  ;;  %v228_v20 = vmul.f32 %v34_v13, %v34_v13  ;;  %v37_v26 = vld [vmem:[%s621_s0 + $0x10] sm:$0xff]  ;;  %v38_v33 = vld [vmem:[%s621_s0 + $0x18] sm:$0xff] }
   0x4   :  { %437 = vmatmul.mubr.msk.f32.vlgmr.msra.gmra.mxu1 %vm78_vm0, %v32_v5  ;;  %v42_v7 = vsub.s32 0, %v41_v6  ;;  %426 = vmatprep.subr.mxu0 %v70_v14  ;;  %v232_v18 = vsel %vm78_vm0, %v226_v16, 0.0  ;;  %v235_v21 = vsel %vm78_vm0, %v227_v19, 0.0  ;;  %v35_v25 = vld [vmem:[%s621_s0] sm:$0xff] }
   0x5   :  { %439 = vmatprep.mubr.msk.f32.mxu1 %vm78_vm0, %v33_v11  ;;  %427 = vmatpush3.msra.mxu0 %v70_v14  ;;  %v229_v17 = vsel %vm78_vm0, %v225_v15, 0.0  ;;  %v238_v22 = vsel %vm78_vm0, %v228_v20, 0.0  ;;  %v415_v42 = vld [vmem:[%s622_s6] ss:$0 sm:$0xff] }
   0x6   :  { %230 = vadd.xlane.f32.xlu1 %v229_v17  ;;  %v406_v58 = vld [vmem:[%s623_s4] ss:$0 sm:$0xff] }
   0x8   :  { %440 = vmatmul.mubr.msk.f32.gmra.mxu1 %vm78_vm0, %v34_v13 }
   0x9   :  { %v30_v8 = vld [vmem:[#allocation2] sm:$0x1] }
   0xa   :  { %v43_v9 = vrot.slane %v30_v8, %v42_v7  ;;  %v52_v10 = vsub.f32 1.0, %v30_v8  ;;  %233 = vadd.xlane.f32.xlu1 %v232_v18 }
   0xc   :  { %45 = vperm.xlu0 %443, %v43_v9   ;;  %v57_v12 = vrot.slane %v52_v10, %v42_v7 }
   0xe   :  { %239 = vadd.xlane.f32.xlu1 %v238_v22 }
  0x10   :  { %59 = vperm.xlu0 %443, %v57_v12  }
  0x2f   :  { %236 = vadd.xlane.f32.xlu0 %v235_v21 }
  0x87   :  { %v46_v23 = vpop.permute.xlu0 %45 }
  0x88   :  { %v49_v27 = vmul.f32 %v46_v23, %v36_v24  ;;  %v48_v31 = vmul.f32 %v46_v23, %v35_v25  ;;  %v50_v34 = vmul.f32 %v46_v23, %v37_v26  ;;  %v51_v39 = vmul.f32 %v46_v23, %v38_v33 }
  0x8b   :  { %v60_v28 = vpop.permute.xlu0 %59 }
  0x8c   :  { %v63_v29 = vmul.f32 %v60_v28, %v32_v5  ;;  %v64_v30 = vmul.f32 %v60_v28, %v33_v11  ;;  %v62_v32 = vmul.f32 %v60_v28, %v31_v4  ;;  %v65_v37 = vmul.f32 %v60_v28, %v34_v13 }
  0x8e   :  { %v66_v35 = vadd.f32 %v62_v32, %v48_v31  ;;  %v67_v36 = vadd.f32 %v63_v29, %v49_v27  ;;  %v68_v38 = vadd.f32 %v64_v30, %v50_v34  ;;  %v69_v40 = vadd.f32 %v65_v37, %v51_v39 }
  0x8f   :  { %v231_v41 = vpop.xlane.xlu1 %230 }
  0x90   :  { %428 = vmatprep.mubr.msk.f32.mxu0 %vm78_vm0, %v66_v35  ;;  %v346_v53 = vadd.f32 %v415_v42, %v231_v41 }
  0x91   :  { %429 = vmatmul.mubr.msk.f32.vlgmr.msra.gmra.mxu0 %vm78_vm0, %v67_v36 }
  0x92   :  { %431 = vmatprep.mubr.msk.f32.mxu0 %vm78_vm0, %v68_v38 }
  0x93   :  { %v234_v43 = vpop.xlane.xlu1 %233 }
  0x94   :  { %v347_v44 = vadd.f32 %v415_v42, %v234_v43 }
  0x95   :  { %432 = vmatmul.mubr.msk.f32.gmra.mxu0 %vm78_vm0, %v69_v40 }
  0x97   :  { %v240_v15 = vpop.xlane.xlu1 %239 }
  0x98   :  { %v349_v22 = vadd.f32 %v415_v42, %v240_v15 }
  0xb8   :  { %v237_v7 = vpop.xlane.xlu0 %236 }
  0xb9   :  { %v348_v16 = vadd.f32 %v415_v42, %v237_v7 }
  0xc4   :  { %v438_v45 = vpop.f32.mrf.mxu1 }
  0xc5   :  { %v351_v46 = vmul.f32 2.0, %v438_v45 }
  0xc6   :  { %v320_v52 = vpop.f32.mrf.mxu1 }
  0xc7   :  { %v355_v47 = vsub.f32 %v347_v44, %v351_v46  ;;  %v350_v54 = vmul.f32 2.0, %v320_v52 }
  0xc8   :  { %v441_v13 = vpop.f32.mrf.mxu1 }
  0xc9   :  { %v359_v48 = vmax.f32 %v355_v47, 0.0  ;;  %v354_v55 = vsub.f32 %v346_v53, %v350_v54  ;;  %v353_v21 = vmul.f32 2.0, %v441_v13 }
  0xca   :  { %v330_v14 = vpop.f32.mrf.mxu1 }
  0xcb   :  { %v363_v49 = vadd.f32 1.0, %v359_v48  ;;  %v358_v56 = vmax.f32 %v354_v55, 0.0  ;;  %v352_v17 = vmul.f32 2.0, %v330_v14  ;;  %v357_v27 = vsub.f32 %v349_v22, %v353_v21 }
  0xcd   :  { %444 = vrcp.f32 %v363_v49  ;;  %v362_v57 = vadd.f32 1.0, %v358_v56  ;;  %v356_v19 = vsub.f32 %v348_v16, %v352_v17  ;;  %v361_v32 = vmax.f32 %v357_v27, 0.0 }
  0xcf   :  { %446 = vrcp.f32 %v362_v57  ;;  %v360_v25 = vmax.f32 %v356_v19, 0.0  ;;  %v365_v36 = vadd.f32 1.0, %v361_v32 }
  0xd1   :  { %v364_v29 = vadd.f32 1.0, %v360_v25 }
  0xda   :  { %v445_v50 = vpop.eup %444 }
  0xdb   :  { %v377_v51 = vsel %vm176_vm1, %v445_v50, 0.0 }
  0xdc   :  { %378 = vadd.xlane.f32.xlu0 %v377_v51  ;;  %v447_v6 = vpop.eup %446 }
  0xdd   :  { %v374_v9 = vsel %vm176_vm1, %v447_v6, 0.0 }
 0x151   :  { %v430_v59 = vpop.f32.mrf.mxu0 }
 0x152   :  { %v163_v60 = vadd.f32 %v430_v59, %v406_v58 }
 0x153   :  { %v157_v61 = vpop.f32.mrf.mxu0 }
 0x154   :  { %v158_v62 = vadd.f32 %v406_v58, %v157_v61  ;;  %v180_v63 = vsel %vm176_vm1, %v163_v60, -inf }
 0x155   :  { %181 = vmax.xlane.f32.xlu1 %v180_v63  ;;  %v433_v0 = vpop.f32.mrf.mxu0 }
 0x156   :  { %v177_v3 = vsel %vm176_vm1, %v158_v62, -inf  ;;  %v173_v4 = vadd.f32 %v433_v0, %v406_v58 }
 0x157   :  { %v167_v1 = vpop.f32.mrf.mxu0 }
 0x158   :  { %v168_v2 = vadd.f32 %v406_v58, %v167_v1  ;;  %v186_v8 = vsel %vm176_vm1, %v173_v4, -inf }
 0x159   :  { %178 = vmax.xlane.f32.xlu1 %v177_v3 }
 0x15a   :  { %v183_v5 = vsel %vm176_vm1, %v168_v2, -inf }
 0x15d   :  { %184 = vmax.xlane.f32.xlu1 %v183_v5 }
 0x161   :  { %187 = vmax.xlane.f32.xlu1 %v186_v8 }
 0x165   :  { %375 = vadd.xlane.f32.xlu1 %v374_v9  ;;  %v379_v10 = vpop.xlane.xlu0 %378 }
 0x166   :  { %448 = vrcp.f32 %v379_v10 }
 0x173   :  { %v449_v11 = vpop.eup %448 }
 0x174   :  { %v389_v12 = vmul.f32 %v449_v11, %v445_v50 }
 0x176   :  { %395 = vst.msk [vmem:[%s624_s8 + $0x8] sm:$0xff] %vm176_vm1, %v389_v12 }
 0x1de   :  { %v182_v18 = vpop.xlane.xlu1 %181 }
 0x1df   :  { %v190_v20 = vsub.f32 %v163_v60, %v182_v18 }
 0x1e1   :  { %v195_v23 = vmul.f32 1.442695, %v190_v20 }
 0x1e2   :  { %v179_v24 = vpop.xlane.xlu1 %178 }
 0x1e3   :  { %450 = vpow2.f32 %v195_v23  ;;  %v189_v26 = vsub.f32 %v158_v62, %v179_v24 }
 0x1e5   :  { %v193_v28 = vmul.f32 1.442695, %v189_v26 }
 0x1e6   :  { %v185_v30 = vpop.xlane.xlu1 %184 }
 0x1e7   :  { %452 = vpow2.f32 %v193_v28  ;;  %v191_v31 = vsub.f32 %v168_v2, %v185_v30 }
 0x1e8   :  { %454 = vrcp.f32 %v364_v29 }
 0x1e9   :  { %v197_v33 = vmul.f32 1.442695, %v191_v31 }
 0x1ea   :  { %v188_v34 = vpop.xlane.xlu1 %187 }
 0x1eb   :  { %456 = vpow2.f32 %v197_v33  ;;  %v192_v35 = vsub.f32 %v173_v4, %v188_v34 }
 0x1ed   :  { %v199_v37 = vmul.f32 1.442695, %v192_v35 }
 0x1ee   :  { %v376_v38 = vpop.xlane.xlu1 %375 }
 0x1ef   :  { %458 = vpow2.f32 %v199_v37 }
 0x1f0   :  { %v451_v39 = vpop.eup %450  ;;  %460 = vrcp.f32 %v376_v38 }
 0x1f1   :  { %462 = vrcp.f32 %v365_v36  ;;  %v204_v40 = vsel %vm176_vm1, %v451_v39, 0.0 }
 0x1f2   :  { %205 = vadd.xlane.f32.xlu1 %v204_v40 }
 0x1f4   :  { %v453_v41 = vpop.eup %452 }
 0x1f5   :  { %v201_v42 = vsel %vm176_vm1, %v453_v41, 0.0  ;;  %v455_v43 = vpop.eup %454 }
 0x1f6   :  { %202 = vadd.xlane.f32.xlu1 %v201_v42  ;;  %v380_v46 = vsel %vm176_vm1, %v455_v43, 0.0 }
 0x1f8   :  { %v457_v44 = vpop.eup %456 }
 0x1f9   :  { %v207_v45 = vsel %vm176_vm1, %v457_v44, 0.0 }
 0x1fa   :  { %208 = vadd.xlane.f32.xlu1 %v207_v45 }
 0x1fc   :  { %v459_v47 = vpop.eup %458 }
 0x1fd   :  { %v461_v48 = vpop.eup %460  ;;  %v210_v49 = vsel %vm176_vm1, %v459_v47, 0.0 }
 0x1fe   :  { %v463_v50 = vpop.eup %462  ;;  %v387_v51 = vmul.f32 %v461_v48, %v447_v6  ;;  %381 = vadd.xlane.f32.xlu1 %v380_v46  ;;  %211 = vadd.xlane.f32.xlu0 %v210_v49 }
 0x1ff   :  { %v383_v52 = vsel %vm176_vm1, %v463_v50, 0.0 }
 0x200   :  { %394 = vst.msk [vmem:[%s624_s8] sm:$0xff] %vm176_vm1, %v387_v51 }
 0x202   :  { %384 = vadd.xlane.f32.xlu0 %v383_v52 }
 0x27b   :  { %v206_v53 = vpop.xlane.xlu1 %205 }
 0x27c   :  { %464 = vrcp.f32 %v206_v53 }
 0x27f   :  { %v203_v54 = vpop.xlane.xlu1 %202 }
 0x280   :  { %466 = vrcp.f32 %v203_v54 }
 0x283   :  { %v209_v55 = vpop.xlane.xlu1 %208 }
 0x284   :  { %468 = vrcp.f32 %v209_v55 }
 0x287   :  { %v212_v56 = vpop.xlane.xlu0 %211  ;;  %v382_v57 = vpop.xlane.xlu1 %381 }
 0x288   :  { %470 = vrcp.f32 %v212_v56 }
 0x289   :  { %v465_v58 = vpop.eup %464  ;;  %472 = vrcp.f32 %v382_v57 }
 0x28a   :  { %v216_v59 = vmul.f32 %v465_v58, %v451_v39 }
 0x28b   :  { %v385_v60 = vpop.xlane.xlu0 %384 }
 0x28c   :  { %222 = vst.msk [vmem:[%s625_s7 + $0x8] sm:$0xff] %vm176_vm1, %v216_v59  ;;  %474 = vrcp.f32 %v385_v60 }
 0x28d   :  { %v467_v61 = vpop.eup %466 }
 0x28e   :  { %v214_v62 = vmul.f32 %v467_v61, %v453_v41 }
 0x290   :  { %221 = vst.msk [vmem:[%s625_s7] sm:$0xff] %vm176_vm1, %v214_v62 }
 0x291   :  { %v469_v63 = vpop.eup %468 }
 0x292   :  { %v218_v0 = vmul.f32 %v469_v63, %v457_v44 }
 0x294   :  { %223 = vst.msk [vmem:[%s625_s7 + $0x10] sm:$0xff] %vm176_vm1, %v218_v0 }
 0x295   :  { %v471_v1 = vpop.eup %470 }
 0x296   :  { %v473_v2 = vpop.eup %472  ;;  %v220_v3 = vmul.f32 %v471_v1, %v459_v47 }
 0x297   :  { %v391_v4 = vmul.f32 %v473_v2, %v455_v43 }
 0x298   :  { %224 = vst.msk [vmem:[%s625_s7 + $0x18] sm:$0xff] %vm176_vm1, %v220_v3 }
 0x299   :  { %v475_v5 = vpop.eup %474  ;;  %396 = vst.msk [vmem:[%s624_s8 + $0x10] sm:$0xff] %vm176_vm1, %v391_v4 }
 0x29a   :  { %v393_v6 = vmul.f32 %v475_v5, %v463_v50 }
 0x29c   :  { %397 = vst.msk [vmem:[%s624_s8 + $0x18] sm:$0xff] %vm176_vm1, %v393_v6 }

// kernel: afc_forward.20
= control target key start
LH: loop header
LB: loop body
LE: loop exit
PB: predicated region body
PF: predicated region fallthrough
CT: control target
= control target key end

     0   :  { %s1770_s0 = inlined_call_operand.vmem [shape: f32[32,8], index: 0, kind: input, shape index: {}]   ;;  %s1771_s1 = inlined_call_operand.vmem [shape: f32[32,8], index: 1, kind: input, shape index: {}]   ;;  %s1772_s2 = inlined_call_operand.vmem [shape: bf16[8,500], index: 2, kind: input, shape index: {}]   ;;  %s1773_s3 = inlined_call_operand.vmem [shape: bf16[8,500], index: 3, kind: input, shape index: {}]   ;;  %s1774_s4 = inlined_call_operand.vmem [shape: f32[1,500], index: 4, kind: input, shape index: {}]   ;;  %s1775_s5 = inlined_call_operand.vmem [shape: bf16[500,100], index: 5, kind: input, shape index: {}]   ;;  %s1776_s6 = inlined_call_operand.vmem [shape: f32[1,100], index: 6, kind: input, shape index: {}]   ;;  %s1777_s7 = inlined_call_operand.vmem [shape: f32[100,1], index: 7, kind: input, shape index: {}]   ;;  %s1778_s8 = inlined_call_operand.vmem [shape: f32[100,1], index: 8, kind: input, shape index: {}]   ;;  %s1779_s9 = inlined_call_operand.<no memory space> [shape: f32[1,1], index: 9, kind: input, shape index: {}]   ;;  %s1780_s11 = inlined_call_operand.hbm [shape: f32[1,1], index: 11, kind: output, shape index: {}]   ;;  %s1781_s10 = inlined_call_operand.<no memory space> [shape: f32[1,1], index: 10, kind: input, shape index: {}]  }
   0x1   :  { %v16_v0 = vstv %s1779_s9  ;;  %v18_v1 = vstv %s1781_s10 }
   0x2   :  { %17 = vst [vmem:[#allocation2] sm:$0x1] %v16_v0  ;;  %19 = vst [vmem:[#allocation3] sm:$0x1] %v18_v1 }
   0x3   :  { %v64_v2 = vld [vmem:[%s1773_s3] sm:$0xff]  ;;  %vm83_vm0 = vcmask 1043456   ;;  %v65_v3 = vld [vmem:[%s1773_s3 + $0x8] sm:$0xff]  ;;  %v1430_v9 = vmov 0   ;;  %vm76_vm1 = vcmask 64512   ;;  %v58_v22 = vld [vmem:[%s1771_s1 + $0x10] sm:$0xff] }
   0x4   :  { %v56_v4 = vld [vmem:[%s1771_s1] sm:$0xff]  ;;  %v1132_v5 = vcombine.high %v64_v2, %v64_v2  ;;  %v1134_v6 = vcombine.high %v65_v3, %v65_v3  ;;  %v1131_v7 = vcombine.low %v64_v2, %v64_v2  ;;  %v1133_v8 = vcombine.low %v65_v3, %v65_v3  ;;  %128 = vmatprep.mubr.bf16.mxu0 %v1430_v9  ;;  %v57_v10 = vld [vmem:[%s1771_s1 + $0x8] sm:$0xff]  ;;  %v59_v23 = vld [vmem:[%s1771_s1 + $0x18] sm:$0xff] }
   0x5   :  { %v62_v11 = vld [vmem:[%s1772_s2] sm:$0xff]  ;;  %v63_v12 = vld [vmem:[%s1772_s2 + $0x8] sm:$0xff]  ;;  %181 = vmatprep.mubr.bf16.mxu1 %v1430_v9  ;;  %v60_v18 = vpack.c.bf16 %v57_v10, %v56_v4  ;;  %v61_v24 = vpack.c.bf16 %v59_v23, %v58_v22  ;;  %v52_v28 = vld [vmem:[%s1770_s0 + $0x10] sm:$0xff] }
   0x6   :  { %v1142_v13 = vcombine.high %v62_v11, %v62_v11  ;;  %v1141_v14 = vcombine.low %v62_v11, %v62_v11  ;;  %v1144_v15 = vcombine.high %v63_v12, %v63_v12  ;;  %1135 = vmatprep.subr.msk.bf16.mxu0 %vm83_vm0, %v1132_v5  ;;  %1138 = vmatprep.subr.msk.bf16.mxu1 %vm83_vm0, %v1134_v6  ;;  %v85_v16 = vsel %vm83_vm0, %v1131_v7, 0  ;;  %v50_v25 = vld [vmem:[%s1770_s0] sm:$0xff]  ;;  %v51_v26 = vld [vmem:[%s1770_s0 + $0x8] sm:$0xff]  ;;  %v53_v29 = vld [vmem:[%s1770_s0 + $0x18] sm:$0xff] }
   0x7   :  { %v91_v17 = vsel %vm83_vm0, %v1133_v8, 0  ;;  %v1143_v19 = vcombine.low %v63_v12, %v63_v12  ;;  %111 = vmatpush1.bf16.msra.mxu0 %v85_v16  ;;  %v54_v27 = vpack.c.bf16 %v51_v26, %v50_v25 }
   0x8   :  { %164 = vmatpush1.bf16.msra.mxu1 %v91_v17  ;;  %1145 = vmatprep.subr.msk.bf16.mxu0 %vm83_vm0, %v1142_v13  ;;  %v219_v20 = vsel %vm83_vm0, %v1141_v14, 0 }
   0x9   :  { %1148 = vmatprep.subr.msk.bf16.mxu1 %vm83_vm0, %v1144_v15  ;;  %v225_v21 = vsel %vm83_vm0, %v1143_v19, 0 }
   0xa   :  { %1136 = vmatmul.mubr.msk.bf16.vlgmr.msra.gmra.mxu0 %vm76_vm1, %v60_v18 }
   0xb   :  { %1139 = vmatmul.mubr.msk.bf16.vlgmr.msra.gmra.mxu1 %vm76_vm1, %v60_v18  ;;  %245 = vmatpush1.bf16.msra.mxu0 %v219_v20 }
   0xc   :  { %298 = vmatpush1.bf16.msra.mxu1 %v225_v21  ;;  %138 = vmatprep.mubr.bf16.mxu0 %v1430_v9 }
   0xd   :  { %191 = vmatprep.mubr.bf16.mxu1 %v1430_v9 }
  0x12   :  { %1137 = vmatmul.mubr.msk.bf16.gmra.mxu0 %vm76_vm1, %v61_v24 }
  0x13   :  { %1140 = vmatmul.mubr.msk.bf16.gmra.mxu1 %vm76_vm1, %v61_v24  ;;  %262 = vmatprep.mubr.bf16.mxu0 %v1430_v9 }
  0x14   :  { %315 = vmatprep.mubr.bf16.mxu1 %v1430_v9 }
  0x1a   :  { %1146 = vmatmul.mubr.msk.bf16.vlgmr.msra.gmra.mxu0 %vm76_vm1, %v54_v27 }
  0x1b   :  { %1149 = vmatmul.mubr.msk.bf16.vlgmr.msra.gmra.mxu1 %vm76_vm1, %v54_v27  ;;  %272 = vmatprep.mubr.bf16.mxu0 %v1430_v9 }
  0x1c   :  { %325 = vmatprep.mubr.bf16.mxu1 %v1430_v9 }
  0x1d   :  { %20 = vsyncpa [#allocation5], 0  ;;  %v55_v30 = vpack.c.bf16 %v53_v29, %v52_v28  ;;  %v1364_v31 = vld [vmem:[%s1775_s5 + $0x78] sm:$0xff]   ;;  %vm664_vm2 = vcmask 1041408   ;;  %v1368_v35 = vld [vmem:[%s1775_s5 + $0x70] sm:$0xff]   ;;  %v338_v9 = vlaneseq  ;;  %vm657_vm3 = vcmask 949248  }
  0x1e   :  { %v1365_v32 = vld [vmem:[%s1775_s5 + $0xf8] ss:$0 sps:$4 sm:$0x33]   ;;  %1198 = vmatprep.subr.bf16.mxu0 %v1364_v31  ;;  %v1369_v36 = vld [vmem:[%s1775_s5 + $0xf0] sm:$0xff]   ;;  %v1372_v39 = vld [vmem:[%s1775_s5 + $0x68] sm:$0xff]   ;;  %vm790_vm4 = vcmask 818176  }
  0x1f   :  { %v1366_v33 = vld [vmem:[%s1775_s5 + $0x38] sm:$0xff]   ;;  %1352 = vmatprep.subr.msk.bf16.mxu1 %vm664_vm2, %v1365_v32  ;;  %v1370_v37 = vld [vmem:[%s1775_s5 + $0x30] sm:$0xff]   ;;  %v1373_v40 = vld [vmem:[%s1775_s5 + $0xe8] sm:$0xff]   ;;  %v339_v14 = vshrl.u32 %v338_v9, 7  ;;  %vm48_vm5 = vcmask 0   ;;  %vm1099_vm6 = vcmask 7168  }
  0x20   :  { %v1367_v34 = vld [vmem:[%s1775_s5 + $0xb8] sm:$0xff]   ;;  %1199 = vmatpush3.bf16.msra.mxu0 %v1366_v33  ;;  %v1371_v38 = vld [vmem:[%s1775_s5 + $0xb0] sm:$0xff]   ;;  %v1374_v41 = vld [vmem:[%s1775_s5 + $0x28] sm:$0xff]  }
  0x21   :  { %1227 = vmatpush3.bf16.msra.mxu1 %v1367_v34  ;;  %1200 = vmatprep.subr.bf16.mxu0 %v1368_v35  ;;  %v1375_v42 = vld [vmem:[%s1775_s5 + $0xa8] sm:$0xff]   ;;  %v1376_v43 = vld [vmem:[%s1775_s5 + $0x60] sm:$0xff]   ;;  %v1380_v47 = vld [vmem:[%s1775_s5 + $0x58] sm:$0xff]   ;;  %v340_v19 = vsub.s32 0, %v339_v14  ;;  %v348_v21 = vsub.s32 2, %v339_v14  ;;  %v352_v22 = vsub.s32 3, %v339_v14 }
  0x22   :  { %1147 = vmatmul.mubr.msk.bf16.gmra.mxu0 %vm76_vm1, %v55_v30  ;;  %1228 = vmatprep.subr.bf16.mxu1 %v1369_v36  ;;  %v1377_v44 = vld [vmem:[%s1775_s5 + $0xe0] sm:$0xff]   ;;  %v1381_v48 = vld [vmem:[%s1775_s5 + $0xd8] sm:$0xff]   ;;  %v1384_v51 = vld [vmem:[%s1775_s5 + $0x50] sm:$0xff]   ;;  %v344_v25 = vsub.s32 1, %v339_v14 }
  0x23   :  { %1150 = vmatmul.mubr.msk.bf16.gmra.mxu1 %vm76_vm1, %v55_v30  ;;  %v1378_v45 = vld [vmem:[%s1775_s5 + $0x20] sm:$0xff]   ;;  %v1382_v49 = vld [vmem:[%s1775_s5 + $0x18] sm:$0xff]   ;;  %v1385_v52 = vld [vmem:[%s1775_s5 + $0xd0] sm:$0xff]  }
  0x24   :  { %1201 = vmatpush3.bf16.msra.mxu0 %v1370_v37  ;;  %v1379_v46 = vld [vmem:[%s1775_s5 + $0xa0] sm:$0xff]   ;;  %v1383_v50 = vld [vmem:[%s1775_s5 + $0x98] sm:$0xff]   ;;  %v1386_v53 = vld [vmem:[%s1775_s5 + $0x10] sm:$0xff]  }
  0x25   :  { %1229 = vmatpush3.bf16.msra.mxu1 %v1371_v38  ;;  %1202 = vmatprep.subr.bf16.mxu0 %v1372_v39  ;;  %v1387_v54 = vld [vmem:[%s1775_s5 + $0x90] sm:$0xff]   ;;  %v1388_v55 = vld [vmem:[%s1775_s5 + $0x48] sm:$0xff]   ;;  %v1392_v59 = vld [vmem:[%s1775_s5 + $0x40] sm:$0xff]  }
  0x26   :  { %1230 = vmatprep.subr.bf16.mxu1 %v1373_v40  ;;  %v1389_v56 = vld [vmem:[%s1775_s5 + $0xc8] sm:$0xff]   ;;  %v1393_v60 = vld [vmem:[%s1775_s5 + $0xc0] sm:$0xff]  }
  0x27   :  { %v1390_v57 = vld [vmem:[%s1775_s5 + $0x8] sm:$0xff]   ;;  %v1394_v61 = vld [vmem:[%s1775_s5] sm:$0xff]  }
  0x28   :  { %1203 = vmatpush3.bf16.msra.mxu0 %v1374_v41  ;;  %v1391_v58 = vld [vmem:[%s1775_s5 + $0x88] sm:$0xff]   ;;  %v1395_v62 = vld [vmem:[%s1775_s5 + $0x80] sm:$0xff]  }
  0x29   :  { %1231 = vmatpush3.bf16.msra.mxu1 %v1375_v42  ;;  %1204 = vmatprep.subr.bf16.mxu0 %v1376_v43  ;;  %v1650_v63 = vld [vmem:[%s1777_s7 + $0x60] sm:$0xf] }
  0x2a   :  { %1232 = vmatprep.subr.bf16.mxu1 %v1377_v44  ;;  %v1655_v0 = vld [vmem:[%s1778_s8 + $0x60] sm:$0xf] }
  0x2b   :  { %v336_v20 = vld [vmem:[%s1774_s4] sm:$0xf] }
  0x2c   :  { %1205 = vmatpush3.bf16.msra.mxu0 %v1378_v45  ;;  %v1668_v27 = vrot.slane %v336_v20, %v340_v19  ;;  %v349_v31 = vrot.slane %v336_v20, %v348_v21  ;;  %v353_v33 = vrot.slane %v336_v20, %v352_v22  ;;  %v345_v35 = vrot.slane %v336_v20, %v344_v25 }
  0x2d   :  { %1233 = vmatpush3.bf16.msra.mxu1 %v1379_v46  ;;  %1206 = vmatprep.subr.bf16.mxu0 %v1380_v47 }
  0x2e   :  { %1234 = vmatprep.subr.bf16.mxu1 %v1381_v48 }
  0x30   :  { %1207 = vmatpush3.bf16.msra.mxu0 %v1382_v49 }
  0x31   :  { %1235 = vmatpush3.bf16.msra.mxu1 %v1383_v50  ;;  %1208 = vmatprep.subr.bf16.mxu0 %v1384_v51 }
  0x32   :  { %1236 = vmatprep.subr.bf16.mxu1 %v1385_v52 }
  0x34   :  { %1209 = vmatpush3.bf16.msra.mxu0 %v1386_v53 }
  0x35   :  { %1237 = vmatpush3.bf16.msra.mxu1 %v1387_v54  ;;  %1210 = vmatprep.subr.bf16.mxu0 %v1388_v55 }
  0x36   :  { %1238 = vmatprep.subr.bf16.mxu1 %v1389_v56 }
  0x38   :  { %1211 = vmatpush3.bf16.msra.mxu0 %v1390_v57 }
  0x39   :  { %1239 = vmatpush3.bf16.msra.mxu1 %v1391_v58  ;;  %1212 = vmatprep.subr.bf16.mxu0 %v1392_v59 }
  0x3a   :  { %1240 = vmatprep.subr.bf16.mxu1 %v1393_v60 }
  0x3c   :  { %1213 = vmatpush3.bf16.msra.mxu0 %v1394_v61 }
  0x3d   :  { %1241 = vmatpush3.bf16.msra.mxu1 %v1395_v62  ;;  %1288 = vmatprep.subr.msk.mxu0 %vm83_vm0, %v1650_v63 }
  0x3e   :  { %1320 = vmatprep.subr.msk.mxu1 %vm83_vm0, %v1655_v0 }
  0xca   :  { %v130_v1 = vpop.f32.mrf.mxu0 }
  0xcb   :  { %v183_v2 = vpop.f32.mrf.mxu1 }
  0xcc   :  { %v132_v3 = vpop.f32.mrf.mxu0 }
  0xcd   :  { %v185_v4 = vpop.f32.mrf.mxu1 }
  0xce   :  { %v134_v5 = vpop.f32.mrf.mxu0 }
  0xcf   :  { %v187_v6 = vpop.f32.mrf.mxu1 }
  0xd0   :  { %v136_v7 = vpop.f32.mrf.mxu0 }
  0xd1   :  { %v189_v8 = vpop.f32.mrf.mxu1 }
  0xd2   :  { %v140_v10 = vpop.f32.mrf.mxu0 }
  0xd3   :  { %v193_v11 = vpop.f32.mrf.mxu1 }
  0xd4   :  { %v142_v12 = vpop.f32.mrf.mxu0 }
  0xd5   :  { %v195_v13 = vpop.f32.mrf.mxu1 }
  0xd6   :  { %v144_v15 = vpop.f32.mrf.mxu0 }
  0xd7   :  { %v197_v16 = vpop.f32.mrf.mxu1 }
  0xd8   :  { %v1661_v17 = vpop.f32.mrf.mxu0 }
  0xd9   :  { %v1663_v18 = vpop.f32.mrf.mxu1 }
  0xda   :  { %v264_v23 = vpop.f32.mrf.mxu0 }
  0xdb   :  { %v317_v24 = vpop.f32.mrf.mxu1  ;;  %v265_v26 = vadd.f32 %v264_v23, %v130_v1 }
  0xdc   :  { %v266_v28 = vpop.f32.mrf.mxu0  ;;  %v318_v30 = vadd.f32 %v317_v24, %v183_v2 }
  0xdd   :  { %v319_v29 = vpop.f32.mrf.mxu1  ;;  %v267_v34 = vadd.f32 %v266_v28, %v132_v3  ;;  %v358_v38 = vadd.f32 %v1668_v27, %v265_v26 }
  0xde   :  { %v320_v32 = vadd.f32 %v319_v29, %v185_v4  ;;  %v268_v36 = vpop.f32.mrf.mxu0  ;;  %v360_v43 = vadd.f32 %v349_v31, %v318_v30 }
  0xdf   :  { %v321_v37 = vpop.f32.mrf.mxu1  ;;  %v269_v39 = vadd.f32 %v268_v36, %v134_v5  ;;  %v359_v47 = vadd.f32 %v345_v35, %v267_v34  ;;  %v374_v54 = vmax.f32 %v358_v38, 0.0 }
  0xe0   :  { %v322_v40 = vadd.f32 %v321_v37, %v187_v6  ;;  %v270_v41 = vpop.f32.mrf.mxu0  ;;  %v361_v44 = vadd.f32 %v353_v33, %v320_v32  ;;  %v376_v59 = vmax.f32 %v360_v43, 0.0  ;;  %v778_v43 = vld [vmem:[%s1777_s7 + $0x40] sm:$0xff] }
  0xe1   :  { %v323_v42 = vpop.f32.mrf.mxu1  ;;  %v271_v45 = vadd.f32 %v270_v41, %v136_v7  ;;  %v362_v48 = vadd.f32 %v1668_v27, %v269_v39  ;;  %v375_v1 = vmax.f32 %v359_v47, 0.0  ;;  %v779_v39 = vld [vmem:[%s1777_s7 + $0x48] sm:$0xff]  ;;  %v897_v47 = vld [vmem:[%s1778_s8 + $0x30] sm:$0xff] }
  0xe2   :  { %v324_v46 = vadd.f32 %v323_v42, %v189_v8  ;;  %v364_v49 = vadd.f32 %v349_v31, %v322_v40  ;;  %v274_v50 = vpop.f32.mrf.mxu0  ;;  %v377_v60 = vmax.f32 %v361_v44, 0.0  ;;  %v899_v42 = vld [vmem:[%s1778_s8 + $0x40] sm:$0xff]  ;;  %v898_v44 = vld [vmem:[%s1778_s8 + $0x38] sm:$0xff] }
  0xe3   :  { %v327_v51 = vpop.f32.mrf.mxu1  ;;  %v363_v52 = vadd.f32 %v345_v35, %v271_v45  ;;  %v378_v55 = vmax.f32 %v362_v48, 0.0  ;;  %v275_v9 = vadd.f32 %v274_v50, %v140_v10  ;;  %v902_v10 = vld [vmem:[%s1778_s8 + $0x58] sm:$0xff]  ;;  %v775_v48 = vld [vmem:[%s1777_s7 + $0x28] sm:$0xff]  ;;  %v774_v50 = vld [vmem:[%s1777_s7 + $0x20] sm:$0xff] }
  0xe4   :  { %v365_v53 = vadd.f32 %v353_v33, %v324_v46  ;;  %v380_v56 = vmax.f32 %v364_v49, 0.0  ;;  %v276_v57 = vpop.f32.mrf.mxu0  ;;  %v328_v2 = vadd.f32 %v327_v51, %v193_v11  ;;  %v777_v45 = vld [vmem:[%s1777_s7 + $0x38] sm:$0xff]  ;;  %v776_v46 = vld [vmem:[%s1777_s7 + $0x30] sm:$0xff]  ;;  %v896_v49 = vld [vmem:[%s1778_s8 + $0x28] sm:$0xff] }
  0xe5   :  { %v329_v58 = vpop.f32.mrf.mxu1  ;;  %v379_v61 = vmax.f32 %v363_v52, 0.0  ;;  %v277_v3 = vadd.f32 %v276_v57, %v142_v12  ;;  %v390_v7 = vpack.c.bf16 %v378_v55, %v374_v54  ;;  %v895_v51 = vld [vmem:[%s1778_s8 + $0x20] sm:$0xff]  ;;  %v773_v52 = vld [vmem:[%s1777_s7 + $0x18] sm:$0xff]  ;;  %v772_v54 = vld [vmem:[%s1777_s7 + $0x10] sm:$0xff] }
  0xe6   :  { %v381_v62 = vmax.f32 %v365_v53, 0.0  ;;  %v330_v4 = vadd.f32 %v329_v58, %v195_v13  ;;  %v278_v5 = vpop.f32.mrf.mxu0  ;;  %v392_v19 = vpack.c.bf16 %v380_v56, %v376_v59  ;;  %v368_v12 = vadd.f32 %v349_v31, %v328_v2  ;;  %v894_v53 = vld [vmem:[%s1778_s8 + $0x18] sm:$0xff]  ;;  %v893_v55 = vld [vmem:[%s1778_s8 + $0x10] sm:$0xff]  ;;  %v771_v56 = vld [vmem:[%s1777_s7 + $0x8] sm:$0xff] }
  0xe7   :  { %v331_v6 = vpop.f32.mrf.mxu1  ;;  %v279_v14 = vadd.f32 %v278_v5, %v144_v15  ;;  %v367_v20 = vadd.f32 %v345_v35, %v277_v3  ;;  %v391_v24 = vpack.c.bf16 %v379_v61, %v375_v1  ;;  %v781_v15 = vld [vmem:[%s1777_s7 + $0x58] sm:$0xff]  ;;  %v892_v57 = vld [vmem:[%s1778_s8 + $0x8] sm:$0xff]  ;;  %v770_v58 = vld [vmem:[%s1777_s7] sm:$0xff] }
  0xe8   :  { %v393_v8 = vpack.c.bf16 %v381_v62, %v377_v60  ;;  %v332_v21 = vadd.f32 %v331_v6, %v197_v16  ;;  %v280_v22 = vpop.f32.mrf.mxu0  ;;  %v369_v25 = vadd.f32 %v353_v33, %v330_v4  ;;  %v366_v16 = vadd.f32 %v1668_v27, %v275_v9  ;;  %v891_v59 = vld [vmem:[%s1778_s8] sm:$0xff] }
  0xe9   :  { %v333_v23 = vpop.f32.mrf.mxu1  ;;  %v370_v26 = vadd.f32 %v1668_v27, %v279_v14  ;;  %v281_v28 = vadd.f32 %v280_v22, %v1661_v17  ;;  %700 = vmatprep.mubr.bf16.mxu0 %v391_v24  ;;  %v383_v30 = vmax.f32 %v367_v20, 0.0  ;;  %v780_v27 = vld [vmem:[%s1777_s7 + $0x50] sm:$0xff]  ;;  %v384_v36 = vmax.f32 %v368_v12, 0.0  ;;  %v1151_v1 = vld [vmem:[%s1776_s6] ss:$0 sm:$0xff]  ;;  %s1432_s6 = smov [#allocation4]  }
  0xea   :  { %v334_v11 = vadd.f32 %v333_v23, %v1663_v18  ;;  %1184 = vmatprep.mubr.msk.bf16.mxu1 %vm657_vm3, %v393_v8  ;;  %v372_v13 = vadd.f32 %v349_v31, %v332_v21  ;;  %701 = vmatmul.mubr.bf16.vlgmr.msra.gmra.mxu0 %v390_v7  ;;  %v901_v18 = vld [vmem:[%s1778_s8 + $0x50] sm:$0xff]  ;;  %v385_v32 = vmax.f32 %v369_v25, 0.0  ;;  %v382_v37 = vmax.f32 %v366_v16, 0.0  ;;  %s1123_s7 = sshll.u32 %s1432_s6, 4  ;;  %s1124_s7 = int_to_ptr.vmem [resolvable:$true] %s1123_s7 }
  0xeb   :  { %750 = vmatmul.mubr.bf16.vlgmr.msra.gmra.mxu1 %v392_v19  ;;  %v371_v29 = vadd.f32 %v345_v35, %v281_v28  ;;  %1289 = vmatpush3.msk.msra.mxu0 %vm83_vm0, %v1650_v63  ;;  %s1412_s13 = scalar_lea.vmem %s1124_s7, 32  ;;  %p1413_p1 = scmp.lt.s32.totalorder %s1124_s7, %s1124_s7 }
  0xec   :  { %v373_v17 = vadd.f32 %v353_v33, %v334_v11  ;;  %1321 = vmatpush3.msk.msra.mxu1 %vm83_vm0, %v1655_v0  ;;  %v388_v31 = vmax.f32 %v372_v13, 0.0  ;;  %v386_v33 = vmax.f32 %v370_v26, 0.0  ;;  %1290 = vmatprep.subr.mxu0 %v781_v15  ;;  %v900_v0 = vld [vmem:[%s1778_s8 + $0x48] sm:$0xff]  ;;  %s1408_s8 = scalar_lea.vmem %s1124_s7, 16 }
  0xed   :  { %1322 = vmatprep.subr.mxu1 %v902_v10  ;;  %v387_v34 = vmax.f32 %v371_v29, 0.0  ;;  %1291 = vmatpush3.msra.mxu0 %v781_v15  ;;  %p1409_p0 = scmp.ne.s32.totalorder %s1124_s7, %s1408_s8  ;;  %p1414_p2 = scmp.lt.s32.totalorder %s1412_s13, %s1408_s8 }
  0xee   :  { %v389_v35 = vmax.f32 %v373_v17, 0.0  ;;  %1323 = vmatpush3.msra.mxu1 %v902_v10  ;;  %1292 = vmatprep.subr.mxu0 %v780_v27  ;;  %v396_v40 = vpack.c.bf16 %v388_v31, %v384_v36  ;;  %v394_v41 = vpack.c.bf16 %v386_v33, %v382_v37  ;;  %v1186_v37 = vld [vmem:[#allocation2] ss:$0 sm:$0xff] }
  0xef   :  { %1324 = vmatprep.subr.mxu1 %v901_v18  ;;  %v395_v38 = vpack.c.bf16 %v387_v34, %v383_v30  ;;  %1293 = vmatpush3.msra.mxu0 %v780_v27  ;;  %p1415_p3 = por %p1414_p2, %p1413_p1 }
  0xf0   :  { %v397_v63 = vpack.c.bf16 %v389_v35, %v385_v32  ;;  %1325 = vmatpush3.msra.mxu1 %v901_v18  ;;  %1294 = vmatprep.subr.mxu0 %v779_v39  ;;  %v1431_v35 = vmov 0.0  }
  0xf1   :  { %1326 = vmatprep.subr.mxu1 %v900_v0  ;;  %708 = vmatprep.mubr.bf16.mxu0 %v395_v38  ;;  %49 = vst.msk [vmem:[#allocation4] sm:$0x1] %vm48_vm5, %v1431_v35  ;;  %p1416_p4 = pnand %p1415_p3, %p1409_p0 }
  0xf2   :  { %1185 = vmatprep.mubr.msk.bf16.mxu1 %vm657_vm3, %v397_v63  ;;  %709 = vmatmul.mubr.bf16.gmra.mxu0 %v394_v41  ;;  %v1192_v63 = vld [vmem:[#allocation3] ss:$0 sm:$0xff] }
  0xf3   :  { %758 = vmatmul.mubr.bf16.gmra.mxu1 %v396_v40  ;;  %1295 = vmatpush3.msra.mxu0 %v779_v39 }
  0xf4   :  { %1327 = vmatpush3.msra.mxu1 %v900_v0  ;;  %1296 = vmatprep.subr.mxu0 %v778_v43 }
  0xf5   :  { %1328 = vmatprep.subr.mxu1 %v899_v42  ;;  %1297 = vmatpush3.msra.mxu0 %v778_v43 }
  0xf6   :  { %1329 = vmatpush3.msra.mxu1 %v899_v42  ;;  %1298 = vmatprep.subr.mxu0 %v777_v45 }
  0xf7   :  { %1330 = vmatprep.subr.mxu1 %v898_v44  ;;  %1299 = vmatpush3.msra.mxu0 %v777_v45 }
  0xf8   :  { %1331 = vmatpush3.msra.mxu1 %v898_v44  ;;  %1300 = vmatprep.subr.mxu0 %v776_v46 }
  0xf9   :  { %1332 = vmatprep.subr.mxu1 %v897_v47  ;;  %1301 = vmatpush3.msra.mxu0 %v776_v46 }
  0xfa   :  { %1333 = vmatpush3.msra.mxu1 %v897_v47  ;;  %1302 = vmatprep.subr.mxu0 %v775_v48 }
  0xfb   :  { %1334 = vmatprep.subr.mxu1 %v896_v49  ;;  %1303 = vmatpush3.msra.mxu0 %v775_v48 }
  0xfc   :  { %1335 = vmatpush3.msra.mxu1 %v896_v49  ;;  %1304 = vmatprep.subr.mxu0 %v774_v50 }
  0xfd   :  { %1336 = vmatprep.subr.mxu1 %v895_v51  ;;  %1305 = vmatpush3.msra.mxu0 %v774_v50 }
  0xfe   :  { %1337 = vmatpush3.msra.mxu1 %v895_v51  ;;  %1306 = vmatprep.subr.mxu0 %v773_v52 }
  0xff   :  { %1338 = vmatprep.subr.mxu1 %v894_v53  ;;  %1307 = vmatpush3.msra.mxu0 %v773_v52 }
 0x100   :  { %1339 = vmatpush3.msra.mxu1 %v894_v53  ;;  %1308 = vmatprep.subr.mxu0 %v772_v54 }
 0x101   :  { %1340 = vmatprep.subr.mxu1 %v893_v55  ;;  %1309 = vmatpush3.msra.mxu0 %v772_v54 }
 0x102   :  { %1341 = vmatpush3.msra.mxu1 %v893_v55  ;;  %1310 = vmatprep.subr.mxu0 %v771_v56 }
 0x103   :  { %1342 = vmatprep.subr.mxu1 %v892_v57  ;;  %1311 = vmatpush3.msra.mxu0 %v771_v56 }
 0x104   :  { %1343 = vmatpush3.msra.mxu1 %v892_v57  ;;  %1312 = vmatprep.subr.mxu0 %v770_v58 }
 0x105   :  { %1344 = vmatprep.subr.mxu1 %v891_v59  ;;  %1313 = vmatpush3.msra.mxu0 %v770_v58 }
 0x106   :  { %1345 = vmatpush3.msra.mxu1 %v891_v59 }
 0x1aa   :  { %v1214_v61 = vpop.f32.mrf.mxu0 }
 0x1ab   :  { %v1242_v60 = vpop.f32.mrf.mxu1 }
 0x1ac   :  { %v1215_v2 = vpop.f32.mrf.mxu0 }
 0x1ad   :  { %v1243_v62 = vpop.f32.mrf.mxu1  ;;  %v1216_v3 = vadd.f32 %v1215_v2, %v1214_v61 }
 0x1ae   :  { %v1217_v5 = vpop.f32.mrf.mxu0  ;;  %v1244_v7 = vadd.f32 %v1243_v62, %v1242_v60 }
 0x1af   :  { %v1245_v4 = vpop.f32.mrf.mxu1  ;;  %v703_v6 = vadd.f32 %v1216_v3, %v1151_v1 }
 0x1b0   :  { %v1218_v9 = vpop.f32.mrf.mxu0 }
 0x1b1   :  { %v1246_v8 = vpop.f32.mrf.mxu1  ;;  %v752_v14 = vadd.f32 %v1244_v7, %v703_v6  ;;  %v1219_v19 = vadd.f32 %v1218_v9, %v1217_v5 }
 0x1b2   :  { %v1220_v21 = vpop.f32.mrf.mxu0  ;;  %v1247_v24 = vadd.f32 %v1246_v8, %v1245_v4  ;;  %v1098_v8 = vld [vmem:[#allocation4] sm:$0x1] }
 0x1b3   :  { %v1248_v20 = vpop.f32.mrf.mxu1  ;;  %v766_v22 = vmax.f32 %v752_v14, 0.0  ;;  %v706_v23 = vadd.f32 %v1219_v19, %v1151_v1 }
 0x1b4   :  { %v1221_v26 = vpop.f32.mrf.mxu0 }
 0x1b5   :  { %v1249_v25 = vpop.f32.mrf.mxu1  ;;  %v755_v28 = vadd.f32 %v1247_v24, %v706_v23  ;;  %v1222_v11 = vadd.f32 %v1221_v26, %v1220_v21  ;;  %1314 = vmatprep.mubr.msk.f32.mxu0 %vm790_vm4, %v766_v22  ;;  %1346 = vmatprep.mubr.msk.f32.mxu1 %vm790_vm4, %v766_v22 }
 0x1b6   :  { %v1223_v12 = vpop.f32.mrf.mxu0  ;;  %v1250_v16 = vadd.f32 %v1249_v25, %v1248_v20 }
 0x1b7   :  { %v1251_v10 = vpop.f32.mrf.mxu1  ;;  %v767_v13 = vmax.f32 %v755_v28, 0.0  ;;  %v711_v15 = vadd.f32 %v1222_v11, %v1151_v1 }
 0x1b8   :  { %v1224_v29 = vpop.f32.mrf.mxu0 }
 0x1b9   :  { %v1252_v17 = vpop.f32.mrf.mxu1  ;;  %v760_v18 = vadd.f32 %v1250_v16, %v711_v15  ;;  %v1225_v30 = vadd.f32 %v1224_v29, %v1223_v12  ;;  %1315 = vmatmul.mubr.msk.f32.vlgmr.msra.gmra.mxu0 %vm790_vm4, %v767_v13  ;;  %1347 = vmatmul.mubr.msk.f32.vlgmr.msra.gmra.mxu1 %vm790_vm4, %v767_v13 }
 0x1ba   :  { %v1253_v32 = vadd.f32 %v1252_v17, %v1251_v10 }
 0x1bb   :  { %v768_v31 = vmax.f32 %v760_v18, 0.0  ;;  %v714_v27 = vadd.f32 %v1225_v30, %v1151_v1 }
 0x1bd   :  { %v763_v33 = vadd.f32 %v1253_v32, %v714_v27  ;;  %1317 = vmatprep.mubr.msk.f32.mxu0 %vm790_vm4, %v768_v31  ;;  %1349 = vmatprep.mubr.msk.f32.mxu1 %vm790_vm4, %v768_v31 }
 0x1bf   :  { %v769_v34 = vmax.f32 %v763_v33, 0.0 }
 0x1c1   :  { %1318 = vmatmul.mubr.msk.f32.gmra.mxu0 %vm790_vm4, %v769_v34  ;;  %1350 = vmatmul.mubr.msk.f32.gmra.mxu1 %vm790_vm4, %v769_v34 }
 0x279   :  { %v1316_v0 = vpop.f32.mrf.mxu0  ;;  %v1348_v36 = vpop.f32.mrf.mxu1 }
 0x27b   :  { %v872_v38 = vpop.f32.mrf.mxu0  ;;  %v980_v39 = vpop.f32.mrf.mxu1 }
 0x27c   :  { %v873_v40 = vadd.f32 %v1186_v37, %v872_v38  ;;  %v981_v41 = vadd.f32 %v1192_v63, %v980_v39 }
 0x27e   :  { %v999_v42 = vsub.f32 0.0, %v873_v40  ;;  %v1023_v43 = vsub.f32 0.0, %v981_v41 }
 0x280   :  { %v1003_v44 = vmul.f32 1.442695, %v999_v42  ;;  %v1027_v45 = vmul.f32 1.442695, %v1023_v43 }
 0x281   :  { %v1319_v46 = vpop.f32.mrf.mxu0  ;;  %v1351_v47 = vpop.f32.mrf.mxu1 }
 0x282   :  { %1396 = vpow2.f32 %v1003_v44 }
 0x283   :  { %1398 = vpow2.f32 %v1027_v45  ;;  %v882_v48 = vpop.f32.mrf.mxu0  ;;  %v990_v49 = vpop.f32.mrf.mxu1 }
 0x28f   :  { %v1397_v50 = vpop.eup %1396 }
 0x290   :  { %v1399_v51 = vpop.eup %1398  ;;  %v1011_v52 = vadd.f32 1.0, %v1397_v50 }
 0x291   :  { %v1035_v53 = vadd.f32 1.0, %v1399_v51 }
 0x292   :  { %1400 = vrcp.f32 %v1011_v52 }
 0x293   :  { %1402 = vrcp.f32 %v1035_v53 }
 0x29f   :  { %v1401_v54 = vpop.eup %1400 }
 0x2a0   :  { %v1403_v55 = vpop.eup %1402 }
 0x2a1   :  { %v1047_v56 = vsub.f32 %v1401_v54, %v1403_v55 }
 0x2a3   :  { %v1051_v57 = vsub.f32 0.0, %v1047_v56 }
 0x2a5   :  { %v1055_v58 = vmul.f32 0.1, %v1051_v57 }
 0x2a7   :  { %v1059_v59 = vmul.f32 1.442695, %v1055_v58 }
 0x2a9   :  { %1404 = vpow2.f32 %v1059_v59 }
 0x2b6   :  { %v1405_v60 = vpop.eup %1404 }
 0x2b7   :  { %v1067_v61 = vadd.f32 1.0, %v1405_v60 }
 0x2b9   :  { %1406 = vrcp.f32 %v1067_v61 }
 0x2c6   :  { %v1407_v62 = vpop.eup %1406 }
 0x2c7   :  { %v1100_v1 = vsel %vm1099_vm6, %v1407_v62, 0.0 }
 0x2c8   :  { %v1107_v2 = vrot.slane %v1100_v1, 4 }
 0x2ca   :  { %v1108_v3 = vadd.f32 %v1107_v2, %v1100_v1 }
 0x2cc   :  { %v1109_v4 = vrot.slane %v1108_v3, 2 }
 0x2ce   :  { %v1110_v5 = vadd.f32 %v1109_v4, %v1108_v3 }
 0x2d0   :  { %v1111_v6 = vrot.slane %v1110_v5, 1 }
 0x2d2   :  { %v1112_v7 = vadd.f32 %v1111_v6, %v1110_v5 }
 0x2d4   :  { %v1113_v9 = vmul.f32 0.125, %v1112_v7 }
 0x2d6   :  { %v1114_v14 = vadd.f32 %v1113_v9, %v1098_v8 }
 0x2d8   :  { %1116 = vst.msk [vmem:[#allocation4] sm:$0x1] %vm48_vm5, %v1114_v14 }
 0x2d9   :  { %1419 = shalt.err (!%p1416_p4)
}
 0x2da   :  { %1126 = dma.vmem_to_hbm [thread:$0]  %s1124_s7, 16, %s1780_s11, [#allocation5]  }
 0x2db   :  { %1428 = dma.done.wait [#allocation5], 16  }
 0x2dc   :  { %1429 = vsyncadd [#allocation5], 4294967280 }
 0x2dd   :  { %1130 = vsyncpa [#allocation5], 1 }

</bundles_post_ra>
